<compile_context>
chip_gen: v5e
topology: v5e:2x2
jax: 0.10.0
libtpu: 0.0.40
codegen_flags: <defaults>
</compile_context>

<pallas_src>
import math
import functools

import jax
import jax.numpy as jnp
from jax.experimental import pallas as pl
from jax.experimental.pallas import tpu as pltpu

# ----------------------------- config ---------------------------------------
D_MODEL = 32
NHEAD = 4
HEAD_DIM = D_MODEL // NHEAD
DIM_FF = 64
NUM_LAYERS = 2
S_TGT = 8
S_MEM = 10
BATCH = 2
EPS = 1e-5        # torch.nn.LayerNorm default
VEC_W = 128       # lane width of the packed bias / LayerNorm table

# Row indices of the packed per-layer vector table (one vector per row,
# zero-padded to VEC_W lanes).  The cross-attention K/V bias is NOT here:
# it is hoisted with the K/V projection.
(I_SA_BQKV, I_SA_BO, I_CA_BQ, I_CA_BO, I_L1_B, I_L2_B,
 I_N1_G, I_N1_B, I_N2_G, I_N2_B, I_N3_G, I_N3_B, N_VEC_ROWS) = range(13)


# --------------------------- in-kernel math ----------------------------------
def _layernorm(x, gamma, beta):
    # x: (R, E); gamma/beta: (1, E)
    mean = jnp.mean(x, axis=-1, keepdims=True)
    var = jnp.mean((x - mean) ** 2, axis=-1, keepdims=True)
    return (x - mean) * jax.lax.rsqrt(var + EPS) * gamma + beta


def _mha(q3, q_off, kv3, k_off, v_off, wo, bo):
    """Multi-head attention core, batched over the batch dim per head.

    q3:  (B, Sq, Lq) window container; per-head Q lanes start at q_off
         (already 1/sqrt(head_dim)-scaled at pack time).
    kv3: (B, Skv, Lkv) window container; per-head K/V lanes start at
         k_off / v_off.
    wo:  (E, E) pre-transposed out-projection (input-dim major); bo: (1, E).

    The out-projection is folded per head, so no lane-axis concatenate is
    needed:   concat_h(head_h) @ Wo == sum_h head_h @ Wo[h*hd:(h+1)*hd, :]
    """
    b, sq = q3.shape[0], q3.shape[1]
    acc = None
    for h in range(NHEAD):
        lo = h * HEAD_DIM
        qh = q3[:, :, q_off + lo:q_off + lo + HEAD_DIM]
        kh = kv3[:, :, k_off + lo:k_off + lo + HEAD_DIM]
        vh = kv3[:, :, v_off + lo:v_off + lo + HEAD_DIM]
        s = jnp.einsum('bqd,bkd->bqk', qh, kh,
                       preferred_element_type=jnp.float32)
        p = jnp.exp(s - jnp.max(s, axis=-1, keepdims=True))
        p = p / jnp.sum(p, axis=-1, keepdims=True)   # exact softmax divide
        head = jnp.einsum('bqk,bkd->bqd', p, vh,
                          preferred_element_type=jnp.float32)
        contrib = jnp.dot(head.reshape(b * sq, HEAD_DIM),
                          wo[lo:lo + HEAD_DIM, :],
                          preferred_element_type=jnp.float32)
        acc = contrib if acc is None else acc + contrib
    return acc + bo


def decoder_kernel(tgt_ref, mem_ref, w_ref, ca_wkv_ref, ca_bkv_ref, l2_ref,
                   vecs_ref, fn_ref, out_ref, *, batch, s_tgt, s_mem,
                   apply_final_norm):
    e = tgt_ref.shape[-1]
    f = l2_ref.shape[1]
    num_layers = w_ref.shape[0]

    x = tgt_ref[...]      # (batch*s_tgt, E)  -- batch folded into row axis
    mem = mem_ref[...]    # (batch*s_mem, E)

    # ---- hoisted cross-attention K/V for ALL layers (layer-invariant) -------
    # one (b*s_mem, E) @ (E, L*2E) matmul + one 128-lane bias add
    kv_all = jnp.dot(mem, ca_wkv_ref[...], preferred_element_type=jnp.float32)
    kv_all = kv_all + ca_bkv_ref[...]
    kv3 = kv_all.reshape(batch, s_mem, num_layers * 2 * e)

    # static lane offsets inside the per-layer (E, 256) weight slab
    o_sa_qkv = 0
    o_sa_wo = 3 * e
    o_ca_wq = 4 * e
    o_ca_wo = 5 * e
    o_l1 = 6 * e

    for l in range(num_layers):          # static unroll; all weights in VMEM
        w = w_ref[l]                     # (E, 256)
        vec = vecs_ref[l]                # (N_VEC_ROWS, VEC_W)

        # ---- 1) self-attention sublayer (dropout = identity in eval) -------
        qkv = jnp.dot(x, w[:, o_sa_qkv:o_sa_qkv + 3 * e],
                      preferred_element_type=jnp.float32)
        qkv = qkv + vec[I_SA_BQKV:I_SA_BQKV + 1, 0:3 * e]
        qkv3 = qkv.reshape(batch, s_tgt, 3 * e)   # lanes: [Q | K | V]
        sa = _mha(qkv3, 0, qkv3, e, 2 * e,
                  w[:, o_sa_wo:o_sa_wo + e], vec[I_SA_BO:I_SA_BO + 1, 0:e])
        x = _layernorm(x + sa, vec[I_N1_G:I_N1_G + 1, 0:e],
                       vec[I_N1_B:I_N1_B + 1, 0:e])

        # ---- 2) cross-attention over encoder memory (K/V hoisted above) ----
        q = jnp.dot(x, w[:, o_ca_wq:o_ca_wq + e],
                    preferred_element_type=jnp.float32)
        q = q + vec[I_CA_BQ:I_CA_BQ + 1, 0:e]
        q3 = q.reshape(batch, s_tgt, e)
        base = l * 2 * e
        ca = _mha(q3, 0, kv3, base, base + e,
                  w[:, o_ca_wo:o_ca_wo + e], vec[I_CA_BO:I_CA_BO + 1, 0:e])
        x = _layernorm(x + ca, vec[I_N2_G:I_N2_G + 1, 0:e],
                       vec[I_N2_B:I_N2_B + 1, 0:e])

        # ---- 3) feed-forward: linear2(relu(linear1(x))) ---------------------
        h = jnp.dot(x, w[:, o_l1:o_l1 + f],
                    preferred_element_type=jnp.float32)
        h = jnp.maximum(h + vec[I_L1_B:I_L1_B + 1, 0:f], 0.0)
        ff = jnp.dot(h, l2_ref[l], preferred_element_type=jnp.float32)
        ff = ff + vec[I_L2_B:I_L2_B + 1, 0:e]
        x = _layernorm(x + ff, vec[I_N3_G:I_N3_G + 1, 0:e],
                       vec[I_N3_B:I_N3_B + 1, 0:e])

    if apply_final_norm:
        fn = fn_ref[...]                 # (2, E): [gamma; beta]
        x = _layernorm(x, fn[0:1, :], fn[1:2, :])

    out_ref[...] = x


# ------------------------------ packing (one-time, NOT in the hot path) ------
def pack_params(layer_params, final_norm):
    """Pre-transpose, scale-fold and lane-concatenate weights once."""
    e = D_MODEL
    scale = 1.0 / math.sqrt(HEAD_DIM)

    def slab(p):
        # fold the attention scale into the Q weight columns / bias rows
        sa_wqkv = jnp.concatenate(
            [p["sa_in_w"][0:e] * scale, p["sa_in_w"][e:]], axis=0).T   # (E,3E)
        sa_wo = p["sa_out_w"].T                                        # (E,E)
        ca_wq = (p["ca_in_w"][0:e] * scale).T                          # (E,E)
        ca_wo = p["ca_out_w"].T                                        # (E,E)
        l1_w = p["lin1_w"].T                                           # (E,F)
        return jnp.concatenate([sa_wqkv, sa_wo, ca_wq, ca_wo, l1_w], axis=1)

    w_slab = jnp.stack([slab(p) for p in layer_params], axis=0)   # (L, E, 256)

    # layer-invariant cross-attention K/V projection, lane-concatenated over L
    ca_wkv = jnp.concatenate([p["ca_in_w"][e:].T for p in layer_params],
                             axis=1)                               # (E, L*2E)
    ca_bkv = jnp.concatenate([p["ca_in_b"][e:] for p in layer_params],
                             axis=0).reshape(1, -1)                # (1, L*2E)

    l2_w = jnp.stack([p["lin2_w"].T for p in layer_params], axis=0)  # (L,F,E)

    def pad_row(v):
        return jnp.zeros((VEC_W,), jnp.float32).at[:v.shape[0]].set(v)

    def vec_table(p):
        rows = [None] * N_VEC_ROWS
        rows[I_SA_BQKV] = jnp.concatenate(
            [p["sa_in_b"][0:e] * scale, p["sa_in_b"][e:]], axis=0)
        rows[I_SA_BO] = p["sa_out_b"]
        rows[I_CA_BQ] = p["ca_in_b"][0:e] * scale
        rows[I_CA_BO] = p["ca_out_b"]
        rows[I_L1_B] = p["lin1_b"]
        rows[I_L2_B] = p["lin2_b"]
        rows[I_N1_G] = p["n1_g"]
        rows[I_N1_B] = p["n1_b"]
        rows[I_N2_G] = p["n2_g"]
        rows[I_N2_B] = p["n2_b"]
        rows[I_N3_G] = p["n3_g"]
        rows[I_N3_B] = p["n3_b"]
        return jnp.stack([pad_row(r) for r in rows], axis=0)

    vecs = jnp.stack([vec_table(p) for p in layer_params], axis=0)  # (L,12,128)

    if final_norm is not None:
        fn = jnp.stack([final_norm["g"], final_norm["b"]], axis=0)  # (2, E)
    else:
        fn = jnp.zeros((2, e), jnp.float32)
    return (w_slab, ca_wkv, ca_bkv, l2_w, vecs, fn)


# ------------------------------ wrapper --------------------------------------
def transformer_decoder(tgt_sne, memory_sne, packed, *, apply_final_norm=True):
    """Pallas TransformerDecoder.forward; tgt/memory use PyTorch (S, N, E).

    `packed` is the pre-transposed weight tuple from pack_params (built once,
    outside the hot path).
    """
    s_t, n, e = tgt_sne.shape
    s_m = memory_sne.shape[0]

    # fold batch into the matmul row axis: (S, N, E) -> (N*S, E)
    x = jnp.transpose(tgt_sne, (1, 0, 2)).reshape(n * s_t, e)
    mem = jnp.transpose(memory_sne, (1, 0, 2)).reshape(n * s_m, e)

    kernel = functools.partial(
        decoder_kernel, batch=n, s_tgt=s_t, s_mem=s_m,
        apply_final_norm=apply_final_norm)

    out = pl.pallas_call(
        kernel,
        out_shape=jax.ShapeDtypeStruct((n * s_t, e), jnp.float32),
        compiler_params=pltpu.CompilerParams(
            vmem_limit_bytes=16 * 1024 * 1024),
    )(x, mem, *packed)

    return jnp.transpose(out.reshape(n, s_t, e), (1, 0, 2))  # back to (S, N, E)


# --------------------------- parameter init ----------------------------------
def _xavier_uniform(key, shape):
    fan_out, fan_in = shape
    limit = math.sqrt(6.0 / (fan_in + fan_out))
    return jax.random.uniform(key, shape, jnp.float32, -limit, limit)


def init_params(key):
    layers = []
    for i in range(NUM_LAYERS):
        ks = jax.random.split(jax.random.fold_in(key, i), 18)
        layers.append(dict(
            sa_in_w=_xavier_uniform(ks[0], (3 * D_MODEL, D_MODEL)),
            sa_in_b=0.02 * jax.random.normal(ks[1], (3 * D_MODEL,), jnp.float32),
            sa_out_w=_xavier_uniform(ks[2], (D_MODEL, D_MODEL)),
            sa_out_b=0.02 * jax.random.normal(ks[3], (D_MODEL,), jnp.float32),
            ca_in_w=_xavier_uniform(ks[4], (3 * D_MODEL, D_MODEL)),
            ca_in_b=0.02 * jax.random.normal(ks[5], (3 * D_MODEL,), jnp.float32),
            ca_out_w=_xavier_uniform(ks[6], (D_MODEL, D_MODEL)),
            ca_out_b=0.02 * jax.random.normal(ks[7], (D_MODEL,), jnp.float32),
            lin1_w=_xavier_uniform(ks[8], (DIM_FF, D_MODEL)),
            lin1_b=0.02 * jax.random.normal(ks[9], (DIM_FF,), jnp.float32),
            lin2_w=_xavier_uniform(ks[10], (D_MODEL, DIM_FF)),
            lin2_b=0.02 * jax.random.normal(ks[11], (D_MODEL,), jnp.float32),
            n1_g=1.0 + 0.1 * jax.random.normal(ks[12], (D_MODEL,), jnp.float32),
            n1_b=0.1 * jax.random.normal(ks[13], (D_MODEL,), jnp.float32),
            n2_g=1.0 + 0.1 * jax.random.normal(ks[14], (D_MODEL,), jnp.float32),
            n2_b=0.1 * jax.random.normal(ks[15], (D_MODEL,), jnp.float32),
            n3_g=1.0 + 0.1 * jax.random.normal(ks[16], (D_MODEL,), jnp.float32),
            n3_b=0.1 * jax.random.normal(ks[17], (D_MODEL,), jnp.float32),
        ))
    final_norm = dict(g=jnp.ones((D_MODEL,), jnp.float32),
                      b=jnp.zeros((D_MODEL,), jnp.float32))
    return layers, final_norm


# -------------------------- pure-JAX reference -------------------------------
def _ref_mha(q_in, kv_in, in_w, in_b, out_w, out_b):
    e = D_MODEL
    q = q_in @ in_w[0:e].T + in_b[0:e]
    k = kv_in @ in_w[e:2 * e].T + in_b[e:2 * e]
    v = kv_in @ in_w[2 * e:].T + in_b[2 * e:]
    q = q / math.sqrt(HEAD_DIM)
    outs = []
    for h in range(NHEAD):
        sl = slice(h * HEAD_DIM, (h + 1) * HEAD_DIM)
        a = jax.nn.softmax(q[:, sl] @ k[:, sl].T, axis=-1)
        outs.append(a @ v[:, sl])
    return jnp.concatenate(outs, axis=-1) @ out_w.T + out_b


def _ref_ln(x, g, b):
    m = jnp.mean(x, -1, keepdims=True)
    v = jnp.mean((x - m) ** 2, -1, keepdims=True)
    return (x - m) / jnp.sqrt(v + EPS) * g + b


def reference_decoder(tgt_sne, memory_sne, layer_params, final_norm):
    x = jnp.transpose(tgt_sne, (1, 0, 2))        # (N, S_t, E)
    mem = jnp.transpose(memory_sne, (1, 0, 2))   # (N, S_m, E)
    outs = []
    for b in range(x.shape[0]):
        xb, mb = x[b], mem[b]
        for p in layer_params:
            xb = _ref_ln(xb + _ref_mha(xb, xb, p["sa_in_w"], p["sa_in_b"],
                                       p["sa_out_w"], p["sa_out_b"]),
                         p["n1_g"], p["n1_b"])
            xb = _ref_ln(xb + _ref_mha(xb, mb, p["ca_in_w"], p["ca_in_b"],
                                       p["ca_out_w"], p["ca_out_b"]),
                         p["n2_g"], p["n2_b"])
            ff = (jnp.maximum(xb @ p["lin1_w"].T + p["lin1_b"], 0.0)
                  @ p["lin2_w"].T + p["lin2_b"])
            xb = _ref_ln(xb + ff, p["n3_g"], p["n3_b"])
        if final_norm is not None:
            xb = _ref_ln(xb, final_norm["g"], final_norm["b"])
        outs.append(xb)
    return jnp.transpose(jnp.stack(outs, 0), (1, 0, 2))


# --------------------------------- main ---------------------------------------
if __name__ == "__main__":
    key = jax.random.PRNGKey(0)
    k_tgt, k_mem, k_par = jax.random.split(key, 3)

    # PyTorch convention: tgt (S_t, N, E), memory (S_m, N, E)
    tgt = jax.random.normal(k_tgt, (S_TGT, BATCH, D_MODEL), jnp.float32)
    memory = jax.random.normal(k_mem, (S_MEM, BATCH, D_MODEL), jnp.float32)

    layer_params, final_norm = init_params(k_par)

    # Pack / pre-transpose / scale-fold weights ONCE, outside the hot path.
    packed = jax.block_until_ready(pack_params(layer_params, final_norm))

    # Jitted forward: only the input (S,N,E)->(N*S,E) fold + the fused kernel.
    fwd = jax.jit(functools.partial(transformer_decoder, apply_final_norm=True))

    out = fwd(tgt, memory, packed)
    out = jax.block_until_ready(out)
    assert out.shape == (S_TGT, BATCH, D_MODEL)

    ref = reference_decoder(tgt, memory, layer_params, final_norm)
    # Exact softmax divide now used in-kernel; remaining diff is f32
    # reassociation only, so the tolerance is tightened vs. the old 5e-3.
    assert jnp.allclose(out, ref, atol=2e-4, rtol=2e-4), "mismatch vs reference"

    # TODO(synk): tgt_mask / memory_mask / key_padding_mask and training-mode
    # dropout are not implemented (forward exercised with masks=None, eval mode).
    print("KERNEL_OK")
</pallas_src>

<mosaic_0001>
module attributes {stable_mosaic.version = 11 : i64} {
  func.func @decoder_kernel(%arg0: memref<16x32xf32, #tpu.memory_space<vmem>>, %arg1: memref<20x32xf32, #tpu.memory_space<vmem>>, %arg2: memref<2x32x256xf32, #tpu.memory_space<vmem>>, %arg3: memref<32x128xf32, #tpu.memory_space<vmem>>, %arg4: memref<1x128xf32, #tpu.memory_space<vmem>>, %arg5: memref<2x64x32xf32, #tpu.memory_space<vmem>>, %arg6: memref<2x12x128xf32, #tpu.memory_space<vmem>>, %arg7: memref<2x32xf32, #tpu.memory_space<vmem>>, %arg8: memref<16x32xf32, #tpu.memory_space<vmem>>) attributes {dimension_semantics = [], scalar_prefetch = 0 : i64, scratch_operands = 0 : i64, tpu.core_type = #tpu.core_type<tc>} {
    %c0 = arith.constant 0 : index
    %c0_0 = arith.constant 0 : index
    %0 = vector.load %arg0[%c0, %c0_0] : memref<16x32xf32, #tpu.memory_space<vmem>>, vector<16x32xf32>
    %c0_1 = arith.constant 0 : index
    %c0_2 = arith.constant 0 : index
    %1 = vector.load %arg1[%c0_1, %c0_2] : memref<20x32xf32, #tpu.memory_space<vmem>>, vector<20x32xf32>
    %c0_3 = arith.constant 0 : index
    %c0_4 = arith.constant 0 : index
    %2 = vector.load %arg3[%c0_3, %c0_4] : memref<32x128xf32, #tpu.memory_space<vmem>>, vector<32x128xf32>
    %cst = arith.constant dense<0.000000e+00> : vector<20x128xf32>
    %3 = tpu.matmul %1, %2, %cst {dimension_numbers = #tpu.dot_dimension_numbers<[1], [0], [0], [1], [0, 0, 1, 1], [], []>} : vector<20x32xf32>, vector<32x128xf32>, vector<20x128xf32> -> vector<20x128xf32>
    %c0_5 = arith.constant 0 : index
    %c0_6 = arith.constant 0 : index
    %4 = vector.load %arg4[%c0_5, %c0_6] : memref<1x128xf32, #tpu.memory_space<vmem>>, vector<1x128xf32>
    %5 = vector.broadcast %4 : vector<1x128xf32> to vector<20x128xf32>
    %6 = arith.addf %3, %5 : vector<20x128xf32>
    %7 = vector.shape_cast %6 : vector<20x128xf32> to vector<2x10x128xf32>
    %c0_7 = arith.constant 0 : index
    %c0_8 = arith.constant 0 : index
    %c0_9 = arith.constant 0 : index
    %8 = vector.load %arg2[%c0_7, %c0_8, %c0_9] : memref<2x32x256xf32, #tpu.memory_space<vmem>>, vector<1x32x256xf32>
    %9 = vector.shape_cast %8 : vector<1x32x256xf32> to vector<32x256xf32>
    %c0_10 = arith.constant 0 : index
    %c0_11 = arith.constant 0 : index
    %c0_12 = arith.constant 0 : index
    %10 = vector.load %arg6[%c0_10, %c0_11, %c0_12] : memref<2x12x128xf32, #tpu.memory_space<vmem>>, vector<1x12x128xf32>
    %11 = vector.shape_cast %10 : vector<1x12x128xf32> to vector<12x128xf32>
    %12 = vector.extract_strided_slice %9 {offsets = [0, 0], sizes = [32, 96], strides = [1, 1]} : vector<32x256xf32> to vector<32x96xf32>
    %cst_13 = arith.constant dense<0.000000e+00> : vector<16x96xf32>
    %13 = tpu.matmul %0, %12, %cst_13 {dimension_numbers = #tpu.dot_dimension_numbers<[1], [0], [0], [1], [0, 0, 1, 1], [], []>} : vector<16x32xf32>, vector<32x96xf32>, vector<16x96xf32> -> vector<16x96xf32>
    %14 = vector.extract_strided_slice %11 {offsets = [0, 0], sizes = [1, 96], strides = [1, 1]} : vector<12x128xf32> to vector<1x96xf32>
    %15 = vector.broadcast %14 : vector<1x96xf32> to vector<16x96xf32>
    %16 = arith.addf %13, %15 : vector<16x96xf32>
    %17 = vector.shape_cast %16 : vector<16x96xf32> to vector<2x8x96xf32>
    %18 = vector.extract_strided_slice %9 {offsets = [0, 96], sizes = [32, 32], strides = [1, 1]} : vector<32x256xf32> to vector<32x32xf32>
    %19 = vector.extract_strided_slice %11 {offsets = [1, 0], sizes = [1, 32], strides = [1, 1]} : vector<12x128xf32> to vector<1x32xf32>
    %20 = vector.extract_strided_slice %17 {offsets = [0, 0, 0], sizes = [2, 8, 8], strides = [1, 1, 1]} : vector<2x8x96xf32> to vector<2x8x8xf32>
    %21 = vector.extract_strided_slice %17 {offsets = [0, 0, 32], sizes = [2, 8, 8], strides = [1, 1, 1]} : vector<2x8x96xf32> to vector<2x8x8xf32>
    %22 = vector.extract_strided_slice %17 {offsets = [0, 0, 64], sizes = [2, 8, 8], strides = [1, 1, 1]} : vector<2x8x96xf32> to vector<2x8x8xf32>
    "tpu.trace_start"() <{level = 10 : i32, message = "bqd,bkd->bqk"}> : () -> ()
    %cst_14 = arith.constant dense<0.000000e+00> : vector<2x8x8xf32>
    %23 = tpu.matmul %20, %21, %cst_14 {dimension_numbers = #tpu.dot_dimension_numbers<[2], [2], [1], [1], [0, 0, 0, 1, 1, 1], [0], [0]>} : vector<2x8x8xf32>, vector<2x8x8xf32>, vector<2x8x8xf32> -> vector<2x8x8xf32>
    "tpu.trace_stop"() : () -> ()
    %cst_15 = arith.constant dense<0xFF800000> : vector<2x8xf32>
    %24 = vector.multi_reduction <maximumf>, %23, %cst_15 [2] : vector<2x8x8xf32> to vector<2x8xf32>
    %25 = vector.shape_cast %24 : vector<2x8xf32> to vector<2x8x1xf32>
    %26 = vector.broadcast %25 : vector<2x8x1xf32> to vector<2x8x8xf32>
    %27 = arith.subf %23, %26 : vector<2x8x8xf32>
    %28 = math.exp %27 : vector<2x8x8xf32>
    %cst_16 = arith.constant dense<0.000000e+00> : vector<2x8xf32>
    %29 = vector.multi_reduction <add>, %28, %cst_16 [2] : vector<2x8x8xf32> to vector<2x8xf32>
    %30 = vector.shape_cast %29 : vector<2x8xf32> to vector<2x8x1xf32>
    %31 = vector.broadcast %30 : vector<2x8x1xf32> to vector<2x8x8xf32>
    %32 = arith.divf %28, %31 : vector<2x8x8xf32>
    "tpu.trace_start"() <{level = 10 : i32, message = "bqk,bkd->bqd"}> : () -> ()
    %cst_17 = arith.constant dense<0.000000e+00> : vector<2x8x8xf32>
    %33 = tpu.matmul %32, %22, %cst_17 {dimension_numbers = #tpu.dot_dimension_numbers<[2], [1], [1], [2], [0, 0, 0, 1, 1, 2], [0], [0]>} : vector<2x8x8xf32>, vector<2x8x8xf32>, vector<2x8x8xf32> -> vector<2x8x8xf32>
    "tpu.trace_stop"() : () -> ()
    %34 = vector.shape_cast %33 : vector<2x8x8xf32> to vector<16x8xf32>
    %35 = vector.extract_strided_slice %18 {offsets = [0, 0], sizes = [8, 32], strides = [1, 1]} : vector<32x32xf32> to vector<8x32xf32>
    %cst_18 = arith.constant dense<0.000000e+00> : vector<16x32xf32>
    %36 = tpu.matmul %34, %35, %cst_18 {dimension_numbers = #tpu.dot_dimension_numbers<[1], [0], [0], [1], [0, 0, 1, 1], [], []>} : vector<16x8xf32>, vector<8x32xf32>, vector<16x32xf32> -> vector<16x32xf32>
    %37 = vector.extract_strided_slice %17 {offsets = [0, 0, 8], sizes = [2, 8, 8], strides = [1, 1, 1]} : vector<2x8x96xf32> to vector<2x8x8xf32>
    %38 = vector.extract_strided_slice %17 {offsets = [0, 0, 40], sizes = [2, 8, 8], strides = [1, 1, 1]} : vector<2x8x96xf32> to vector<2x8x8xf32>
    %39 = vector.extract_strided_slice %17 {offsets = [0, 0, 72], sizes = [2, 8, 8], strides = [1, 1, 1]} : vector<2x8x96xf32> to vector<2x8x8xf32>
    "tpu.trace_start"() <{level = 10 : i32, message = "bqd,bkd->bqk"}> : () -> ()
    %cst_19 = arith.constant dense<0.000000e+00> : vector<2x8x8xf32>
    %40 = tpu.matmul %37, %38, %cst_19 {dimension_numbers = #tpu.dot_dimension_numbers<[2], [2], [1], [1], [0, 0, 0, 1, 1, 1], [0], [0]>} : vector<2x8x8xf32>, vector<2x8x8xf32>, vector<2x8x8xf32> -> vector<2x8x8xf32>
    "tpu.trace_stop"() : () -> ()
    %cst_20 = arith.constant dense<0xFF800000> : vector<2x8xf32>
    %41 = vector.multi_reduction <maximumf>, %40, %cst_20 [2] : vector<2x8x8xf32> to vector<2x8xf32>
    %42 = vector.shape_cast %41 : vector<2x8xf32> to vector<2x8x1xf32>
    %43 = vector.broadcast %42 : vector<2x8x1xf32> to vector<2x8x8xf32>
    %44 = arith.subf %40, %43 : vector<2x8x8xf32>
    %45 = math.exp %44 : vector<2x8x8xf32>
    %cst_21 = arith.constant dense<0.000000e+00> : vector<2x8xf32>
    %46 = vector.multi_reduction <add>, %45, %cst_21 [2] : vector<2x8x8xf32> to vector<2x8xf32>
    %47 = vector.shape_cast %46 : vector<2x8xf32> to vector<2x8x1xf32>
    %48 = vector.broadcast %47 : vector<2x8x1xf32> to vector<2x8x8xf32>
    %49 = arith.divf %45, %48 : vector<2x8x8xf32>
    "tpu.trace_start"() <{level = 10 : i32, message = "bqk,bkd->bqd"}> : () -> ()
    %cst_22 = arith.constant dense<0.000000e+00> : vector<2x8x8xf32>
    %50 = tpu.matmul %49, %39, %cst_22 {dimension_numbers = #tpu.dot_dimension_numbers<[2], [1], [1], [2], [0, 0, 0, 1, 1, 2], [0], [0]>} : vector<2x8x8xf32>, vector<2x8x8xf32>, vector<2x8x8xf32> -> vector<2x8x8xf32>
    "tpu.trace_stop"() : () -> ()
    %51 = vector.shape_cast %50 : vector<2x8x8xf32> to vector<16x8xf32>
    %52 = vector.extract_strided_slice %18 {offsets = [8, 0], sizes = [8, 32], strides = [1, 1]} : vector<32x32xf32> to vector<8x32xf32>
    %cst_23 = arith.constant dense<0.000000e+00> : vector<16x32xf32>
    %53 = tpu.matmul %51, %52, %cst_23 {dimension_numbers = #tpu.dot_dimension_numbers<[1], [0], [0], [1], [0, 0, 1, 1], [], []>} : vector<16x8xf32>, vector<8x32xf32>, vector<16x32xf32> -> vector<16x32xf32>
    %54 = arith.addf %36, %53 : vector<16x32xf32>
    %55 = vector.extract_strided_slice %17 {offsets = [0, 0, 16], sizes = [2, 8, 8], strides = [1, 1, 1]} : vector<2x8x96xf32> to vector<2x8x8xf32>
    %56 = vector.extract_strided_slice %17 {offsets = [0, 0, 48], sizes = [2, 8, 8], strides = [1, 1, 1]} : vector<2x8x96xf32> to vector<2x8x8xf32>
    %57 = vector.extract_strided_slice %17 {offsets = [0, 0, 80], sizes = [2, 8, 8], strides = [1, 1, 1]} : vector<2x8x96xf32> to vector<2x8x8xf32>
    "tpu.trace_start"() <{level = 10 : i32, message = "bqd,bkd->bqk"}> : () -> ()
    %cst_24 = arith.constant dense<0.000000e+00> : vector<2x8x8xf32>
    %58 = tpu.matmul %55, %56, %cst_24 {dimension_numbers = #tpu.dot_dimension_numbers<[2], [2], [1], [1], [0, 0, 0, 1, 1, 1], [0], [0]>} : vector<2x8x8xf32>, vector<2x8x8xf32>, vector<2x8x8xf32> -> vector<2x8x8xf32>
    "tpu.trace_stop"() : () -> ()
    %cst_25 = arith.constant dense<0xFF800000> : vector<2x8xf32>
    %59 = vector.multi_reduction <maximumf>, %58, %cst_25 [2] : vector<2x8x8xf32> to vector<2x8xf32>
    %60 = vector.shape_cast %59 : vector<2x8xf32> to vector<2x8x1xf32>
    %61 = vector.broadcast %60 : vector<2x8x1xf32> to vector<2x8x8xf32>
    %62 = arith.subf %58, %61 : vector<2x8x8xf32>
    %63 = math.exp %62 : vector<2x8x8xf32>
    %cst_26 = arith.constant dense<0.000000e+00> : vector<2x8xf32>
    %64 = vector.multi_reduction <add>, %63, %cst_26 [2] : vector<2x8x8xf32> to vector<2x8xf32>
    %65 = vector.shape_cast %64 : vector<2x8xf32> to vector<2x8x1xf32>
    %66 = vector.broadcast %65 : vector<2x8x1xf32> to vector<2x8x8xf32>
    %67 = arith.divf %63, %66 : vector<2x8x8xf32>
    "tpu.trace_start"() <{level = 10 : i32, message = "bqk,bkd->bqd"}> : () -> ()
    %cst_27 = arith.constant dense<0.000000e+00> : vector<2x8x8xf32>
    %68 = tpu.matmul %67, %57, %cst_27 {dimension_numbers = #tpu.dot_dimension_numbers<[2], [1], [1], [2], [0, 0, 0, 1, 1, 2], [0], [0]>} : vector<2x8x8xf32>, vector<2x8x8xf32>, vector<2x8x8xf32> -> vector<2x8x8xf32>
    "tpu.trace_stop"() : () -> ()
    %69 = vector.shape_cast %68 : vector<2x8x8xf32> to vector<16x8xf32>
    %70 = vector.extract_strided_slice %18 {offsets = [16, 0], sizes = [8, 32], strides = [1, 1]} : vector<32x32xf32> to vector<8x32xf32>
    %cst_28 = arith.constant dense<0.000000e+00> : vector<16x32xf32>
    %71 = tpu.matmul %69, %70, %cst_28 {dimension_numbers = #tpu.dot_dimension_numbers<[1], [0], [0], [1], [0, 0, 1, 1], [], []>} : vector<16x8xf32>, vector<8x32xf32>, vector<16x32xf32> -> vector<16x32xf32>
    %72 = arith.addf %54, %71 : vector<16x32xf32>
    %73 = vector.extract_strided_slice %17 {offsets = [0, 0, 24], sizes = [2, 8, 8], strides = [1, 1, 1]} : vector<2x8x96xf32> to vector<2x8x8xf32>
    %74 = vector.extract_strided_slice %17 {offsets = [0, 0, 56], sizes = [2, 8, 8], strides = [1, 1, 1]} : vector<2x8x96xf32> to vector<2x8x8xf32>
    %75 = vector.extract_strided_slice %17 {offsets = [0, 0, 88], sizes = [2, 8, 8], strides = [1, 1, 1]} : vector<2x8x96xf32> to vector<2x8x8xf32>
    "tpu.trace_start"() <{level = 10 : i32, message = "bqd,bkd->bqk"}> : () -> ()
    %cst_29 = arith.constant dense<0.000000e+00> : vector<2x8x8xf32>
    %76 = tpu.matmul %73, %74, %cst_29 {dimension_numbers = #tpu.dot_dimension_numbers<[2], [2], [1], [1], [0, 0, 0, 1, 1, 1], [0], [0]>} : vector<2x8x8xf32>, vector<2x8x8xf32>, vector<2x8x8xf32> -> vector<2x8x8xf32>
    "tpu.trace_stop"() : () -> ()
    %cst_30 = arith.constant dense<0xFF800000> : vector<2x8xf32>
    %77 = vector.multi_reduction <maximumf>, %76, %cst_30 [2] : vector<2x8x8xf32> to vector<2x8xf32>
    %78 = vector.shape_cast %77 : vector<2x8xf32> to vector<2x8x1xf32>
    %79 = vector.broadcast %78 : vector<2x8x1xf32> to vector<2x8x8xf32>
    %80 = arith.subf %76, %79 : vector<2x8x8xf32>
    %81 = math.exp %80 : vector<2x8x8xf32>
    %cst_31 = arith.constant dense<0.000000e+00> : vector<2x8xf32>
    %82 = vector.multi_reduction <add>, %81, %cst_31 [2] : vector<2x8x8xf32> to vector<2x8xf32>
    %83 = vector.shape_cast %82 : vector<2x8xf32> to vector<2x8x1xf32>
    %84 = vector.broadcast %83 : vector<2x8x1xf32> to vector<2x8x8xf32>
    %85 = arith.divf %81, %84 : vector<2x8x8xf32>
    "tpu.trace_start"() <{level = 10 : i32, message = "bqk,bkd->bqd"}> : () -> ()
    %cst_32 = arith.constant dense<0.000000e+00> : vector<2x8x8xf32>
    %86 = tpu.matmul %85, %75, %cst_32 {dimension_numbers = #tpu.dot_dimension_numbers<[2], [1], [1], [2], [0, 0, 0, 1, 1, 2], [0], [0]>} : vector<2x8x8xf32>, vector<2x8x8xf32>, vector<2x8x8xf32> -> vector<2x8x8xf32>
    "tpu.trace_stop"() : () -> ()
    %87 = vector.shape_cast %86 : vector<2x8x8xf32> to vector<16x8xf32>
    %88 = vector.extract_strided_slice %18 {offsets = [24, 0], sizes = [8, 32], strides = [1, 1]} : vector<32x32xf32> to vector<8x32xf32>
    %cst_33 = arith.constant dense<0.000000e+00> : vector<16x32xf32>
    %89 = tpu.matmul %87, %88, %cst_33 {dimension_numbers = #tpu.dot_dimension_numbers<[1], [0], [0], [1], [0, 0, 1, 1], [], []>} : vector<16x8xf32>, vector<8x32xf32>, vector<16x32xf32> -> vector<16x32xf32>
    %90 = arith.addf %72, %89 : vector<16x32xf32>
    %91 = vector.broadcast %19 : vector<1x32xf32> to vector<16x32xf32>
    %92 = arith.addf %90, %91 : vector<16x32xf32>
    %93 = arith.addf %0, %92 : vector<16x32xf32>
    %94 = vector.extract_strided_slice %11 {offsets = [6, 0], sizes = [1, 32], strides = [1, 1]} : vector<12x128xf32> to vector<1x32xf32>
    %95 = vector.extract_strided_slice %11 {offsets = [7, 0], sizes = [1, 32], strides = [1, 1]} : vector<12x128xf32> to vector<1x32xf32>
    %cst_34 = arith.constant dense<0.000000e+00> : vector<16xf32>
    %96 = vector.multi_reduction <add>, %93, %cst_34 [1] : vector<16x32xf32> to vector<16xf32>
    %97 = vector.shape_cast %96 : vector<16xf32> to vector<16x1xf32>
    %cst_35 = arith.constant 3.200000e+01 : f32
    %98 = vector.broadcast %cst_35 : f32 to vector<16x1xf32>
    %99 = arith.divf %97, %98 : vector<16x1xf32>
    %100 = vector.broadcast %99 : vector<16x1xf32> to vector<16x32xf32>
    %101 = arith.subf %93, %100 : vector<16x32xf32>
    %102 = arith.mulf %101, %101 : vector<16x32xf32>
    %cst_36 = arith.constant dense<0.000000e+00> : vector<16xf32>
    %103 = vector.multi_reduction <add>, %102, %cst_36 [1] : vector<16x32xf32> to vector<16xf32>
    %104 = vector.shape_cast %103 : vector<16xf32> to vector<16x1xf32>
    %cst_37 = arith.constant 3.200000e+01 : f32
    %105 = vector.broadcast %cst_37 : f32 to vector<16x1xf32>
    %106 = arith.divf %104, %105 : vector<16x1xf32>
    %107 = vector.broadcast %99 : vector<16x1xf32> to vector<16x32xf32>
    %108 = arith.subf %93, %107 : vector<16x32xf32>
    %cst_38 = arith.constant 9.99999974E-6 : f32
    %109 = vector.broadcast %cst_38 : f32 to vector<16x1xf32>
    %110 = arith.addf %106, %109 : vector<16x1xf32>
    %111 = math.rsqrt %110 : vector<16x1xf32>
    %112 = vector.broadcast %111 : vector<16x1xf32> to vector<16x32xf32>
    %113 = arith.mulf %108, %112 : vector<16x32xf32>
    %114 = vector.broadcast %94 : vector<1x32xf32> to vector<16x32xf32>
    %115 = arith.mulf %113, %114 : vector<16x32xf32>
    %116 = vector.broadcast %95 : vector<1x32xf32> to vector<16x32xf32>
    %117 = arith.addf %115, %116 : vector<16x32xf32>
    %118 = vector.extract_strided_slice %9 {offsets = [0, 128], sizes = [32, 32], strides = [1, 1]} : vector<32x256xf32> to vector<32x32xf32>
    %cst_39 = arith.constant dense<0.000000e+00> : vector<16x32xf32>
    %119 = tpu.matmul %117, %118, %cst_39 {dimension_numbers = #tpu.dot_dimension_numbers<[1], [0], [0], [1], [0, 0, 1, 1], [], []>} : vector<16x32xf32>, vector<32x32xf32>, vector<16x32xf32> -> vector<16x32xf32>
    %120 = vector.extract_strided_slice %11 {offsets = [2, 0], sizes = [1, 32], strides = [1, 1]} : vector<12x128xf32> to vector<1x32xf32>
    %121 = vector.broadcast %120 : vector<1x32xf32> to vector<16x32xf32>
    %122 = arith.addf %119, %121 : vector<16x32xf32>
    %123 = vector.shape_cast %122 : vector<16x32xf32> to vector<2x8x32xf32>
    %124 = vector.extract_strided_slice %9 {offsets = [0, 160], sizes = [32, 32], strides = [1, 1]} : vector<32x256xf32> to vector<32x32xf32>
    %125 = vector.extract_strided_slice %11 {offsets = [3, 0], sizes = [1, 32], strides = [1, 1]} : vector<12x128xf32> to vector<1x32xf32>
    %126 = vector.extract_strided_slice %123 {offsets = [0, 0, 0], sizes = [2, 8, 8], strides = [1, 1, 1]} : vector<2x8x32xf32> to vector<2x8x8xf32>
    %127 = vector.extract_strided_slice %7 {offsets = [0, 0, 0], sizes = [2, 10, 8], strides = [1, 1, 1]} : vector<2x10x128xf32> to vector<2x10x8xf32>
    %128 = vector.extract_strided_slice %7 {offsets = [0, 0, 32], sizes = [2, 10, 8], strides = [1, 1, 1]} : vector<2x10x128xf32> to vector<2x10x8xf32>
    "tpu.trace_start"() <{level = 10 : i32, message = "bqd,bkd->bqk"}> : () -> ()
    %cst_40 = arith.constant dense<0.000000e+00> : vector<2x8x10xf32>
    %129 = tpu.matmul %126, %127, %cst_40 {dimension_numbers = #tpu.dot_dimension_numbers<[2], [2], [1], [1], [0, 0, 0, 1, 1, 1], [0], [0]>} : vector<2x8x8xf32>, vector<2x10x8xf32>, vector<2x8x10xf32> -> vector<2x8x10xf32>
    "tpu.trace_stop"() : () -> ()
    %cst_41 = arith.constant dense<0xFF800000> : vector<2x8xf32>
    %130 = vector.multi_reduction <maximumf>, %129, %cst_41 [2] : vector<2x8x10xf32> to vector<2x8xf32>
    %131 = vector.shape_cast %130 : vector<2x8xf32> to vector<2x8x1xf32>
    %132 = vector.broadcast %131 : vector<2x8x1xf32> to vector<2x8x10xf32>
    %133 = arith.subf %129, %132 : vector<2x8x10xf32>
    %134 = math.exp %133 : vector<2x8x10xf32>
    %cst_42 = arith.constant dense<0.000000e+00> : vector<2x8xf32>
    %135 = vector.multi_reduction <add>, %134, %cst_42 [2] : vector<2x8x10xf32> to vector<2x8xf32>
    %136 = vector.shape_cast %135 : vector<2x8xf32> to vector<2x8x1xf32>
    %137 = vector.broadcast %136 : vector<2x8x1xf32> to vector<2x8x10xf32>
    %138 = arith.divf %134, %137 : vector<2x8x10xf32>
    "tpu.trace_start"() <{level = 10 : i32, message = "bqk,bkd->bqd"}> : () -> ()
    %cst_43 = arith.constant dense<0.000000e+00> : vector<2x8x8xf32>
    %139 = tpu.matmul %138, %128, %cst_43 {dimension_numbers = #tpu.dot_dimension_numbers<[2], [1], [1], [2], [0, 0, 0, 1, 1, 2], [0], [0]>} : vector<2x8x10xf32>, vector<2x10x8xf32>, vector<2x8x8xf32> -> vector<2x8x8xf32>
    "tpu.trace_stop"() : () -> ()
    %140 = vector.shape_cast %139 : vector<2x8x8xf32> to vector<16x8xf32>
    %141 = vector.extract_strided_slice %124 {offsets = [0, 0], sizes = [8, 32], strides = [1, 1]} : vector<32x32xf32> to vector<8x32xf32>
    %cst_44 = arith.constant dense<0.000000e+00> : vector<16x32xf32>
    %142 = tpu.matmul %140, %141, %cst_44 {dimension_numbers = #tpu.dot_dimension_numbers<[1], [0], [0], [1], [0, 0, 1, 1], [], []>} : vector<16x8xf32>, vector<8x32xf32>, vector<16x32xf32> -> vector<16x32xf32>
    %143 = vector.extract_strided_slice %123 {offsets = [0, 0, 8], sizes = [2, 8, 8], strides = [1, 1, 1]} : vector<2x8x32xf32> to vector<2x8x8xf32>
    %144 = vector.extract_strided_slice %7 {offsets = [0, 0, 8], sizes = [2, 10, 8], strides = [1, 1, 1]} : vector<2x10x128xf32> to vector<2x10x8xf32>
    %145 = vector.extract_strided_slice %7 {offsets = [0, 0, 40], sizes = [2, 10, 8], strides = [1, 1, 1]} : vector<2x10x128xf32> to vector<2x10x8xf32>
    "tpu.trace_start"() <{level = 10 : i32, message = "bqd,bkd->bqk"}> : () -> ()
    %cst_45 = arith.constant dense<0.000000e+00> : vector<2x8x10xf32>
    %146 = tpu.matmul %143, %144, %cst_45 {dimension_numbers = #tpu.dot_dimension_numbers<[2], [2], [1], [1], [0, 0, 0, 1, 1, 1], [0], [0]>} : vector<2x8x8xf32>, vector<2x10x8xf32>, vector<2x8x10xf32> -> vector<2x8x10xf32>
    "tpu.trace_stop"() : () -> ()
    %cst_46 = arith.constant dense<0xFF800000> : vector<2x8xf32>
    %147 = vector.multi_reduction <maximumf>, %146, %cst_46 [2] : vector<2x8x10xf32> to vector<2x8xf32>
    %148 = vector.shape_cast %147 : vector<2x8xf32> to vector<2x8x1xf32>
    %149 = vector.broadcast %148 : vector<2x8x1xf32> to vector<2x8x10xf32>
    %150 = arith.subf %146, %149 : vector<2x8x10xf32>
    %151 = math.exp %150 : vector<2x8x10xf32>
    %cst_47 = arith.constant dense<0.000000e+00> : vector<2x8xf32>
    %152 = vector.multi_reduction <add>, %151, %cst_47 [2] : vector<2x8x10xf32> to vector<2x8xf32>
    %153 = vector.shape_cast %152 : vector<2x8xf32> to vector<2x8x1xf32>
    %154 = vector.broadcast %153 : vector<2x8x1xf32> to vector<2x8x10xf32>
    %155 = arith.divf %151, %154 : vector<2x8x10xf32>
    "tpu.trace_start"() <{level = 10 : i32, message = "bqk,bkd->bqd"}> : () -> ()
    %cst_48 = arith.constant dense<0.000000e+00> : vector<2x8x8xf32>
    %156 = tpu.matmul %155, %145, %cst_48 {dimension_numbers = #tpu.dot_dimension_numbers<[2], [1], [1], [2], [0, 0, 0, 1, 1, 2], [0], [0]>} : vector<2x8x10xf32>, vector<2x10x8xf32>, vector<2x8x8xf32> -> vector<2x8x8xf32>
    "tpu.trace_stop"() : () -> ()
    %157 = vector.shape_cast %156 : vector<2x8x8xf32> to vector<16x8xf32>
    %158 = vector.extract_strided_slice %124 {offsets = [8, 0], sizes = [8, 32], strides = [1, 1]} : vector<32x32xf32> to vector<8x32xf32>
    %cst_49 = arith.constant dense<0.000000e+00> : vector<16x32xf32>
    %159 = tpu.matmul %157, %158, %cst_49 {dimension_numbers = #tpu.dot_dimension_numbers<[1], [0], [0], [1], [0, 0, 1, 1], [], []>} : vector<16x8xf32>, vector<8x32xf32>, vector<16x32xf32> -> vector<16x32xf32>
    %160 = arith.addf %142, %159 : vector<16x32xf32>
    %161 = vector.extract_strided_slice %123 {offsets = [0, 0, 16], sizes = [2, 8, 8], strides = [1, 1, 1]} : vector<2x8x32xf32> to vector<2x8x8xf32>
    %162 = vector.extract_strided_slice %7 {offsets = [0, 0, 16], sizes = [2, 10, 8], strides = [1, 1, 1]} : vector<2x10x128xf32> to vector<2x10x8xf32>
    %163 = vector.extract_strided_slice %7 {offsets = [0, 0, 48], sizes = [2, 10, 8], strides = [1, 1, 1]} : vector<2x10x128xf32> to vector<2x10x8xf32>
    "tpu.trace_start"() <{level = 10 : i32, message = "bqd,bkd->bqk"}> : () -> ()
    %cst_50 = arith.constant dense<0.000000e+00> : vector<2x8x10xf32>
    %164 = tpu.matmul %161, %162, %cst_50 {dimension_numbers = #tpu.dot_dimension_numbers<[2], [2], [1], [1], [0, 0, 0, 1, 1, 1], [0], [0]>} : vector<2x8x8xf32>, vector<2x10x8xf32>, vector<2x8x10xf32> -> vector<2x8x10xf32>
    "tpu.trace_stop"() : () -> ()
    %cst_51 = arith.constant dense<0xFF800000> : vector<2x8xf32>
    %165 = vector.multi_reduction <maximumf>, %164, %cst_51 [2] : vector<2x8x10xf32> to vector<2x8xf32>
    %166 = vector.shape_cast %165 : vector<2x8xf32> to vector<2x8x1xf32>
    %167 = vector.broadcast %166 : vector<2x8x1xf32> to vector<2x8x10xf32>
    %168 = arith.subf %164, %167 : vector<2x8x10xf32>
    %169 = math.exp %168 : vector<2x8x10xf32>
    %cst_52 = arith.constant dense<0.000000e+00> : vector<2x8xf32>
    %170 = vector.multi_reduction <add>, %169, %cst_52 [2] : vector<2x8x10xf32> to vector<2x8xf32>
    %171 = vector.shape_cast %170 : vector<2x8xf32> to vector<2x8x1xf32>
    %172 = vector.broadcast %171 : vector<2x8x1xf32> to vector<2x8x10xf32>
    %173 = arith.divf %169, %172 : vector<2x8x10xf32>
    "tpu.trace_start"() <{level = 10 : i32, message = "bqk,bkd->bqd"}> : () -> ()
    %cst_53 = arith.constant dense<0.000000e+00> : vector<2x8x8xf32>
    %174 = tpu.matmul %173, %163, %cst_53 {dimension_numbers = #tpu.dot_dimension_numbers<[2], [1], [1], [2], [0, 0, 0, 1, 1, 2], [0], [0]>} : vector<2x8x10xf32>, vector<2x10x8xf32>, vector<2x8x8xf32> -> vector<2x8x8xf32>
    "tpu.trace_stop"() : () -> ()
    %175 = vector.shape_cast %174 : vector<2x8x8xf32> to vector<16x8xf32>
    %176 = vector.extract_strided_slice %124 {offsets = [16, 0], sizes = [8, 32], strides = [1, 1]} : vector<32x32xf32> to vector<8x32xf32>
    %cst_54 = arith.constant dense<0.000000e+00> : vector<16x32xf32>
    %177 = tpu.matmul %175, %176, %cst_54 {dimension_numbers = #tpu.dot_dimension_numbers<[1], [0], [0], [1], [0, 0, 1, 1], [], []>} : vector<16x8xf32>, vector<8x32xf32>, vector<16x32xf32> -> vector<16x32xf32>
    %178 = arith.addf %160, %177 : vector<16x32xf32>
    %179 = vector.extract_strided_slice %123 {offsets = [0, 0, 24], sizes = [2, 8, 8], strides = [1, 1, 1]} : vector<2x8x32xf32> to vector<2x8x8xf32>
    %180 = vector.extract_strided_slice %7 {offsets = [0, 0, 24], sizes = [2, 10, 8], strides = [1, 1, 1]} : vector<2x10x128xf32> to vector<2x10x8xf32>
    %181 = vector.extract_strided_slice %7 {offsets = [0, 0, 56], sizes = [2, 10, 8], strides = [1, 1, 1]} : vector<2x10x128xf32> to vector<2x10x8xf32>
    "tpu.trace_start"() <{level = 10 : i32, message = "bqd,bkd->bqk"}> : () -> ()
    %cst_55 = arith.constant dense<0.000000e+00> : vector<2x8x10xf32>
    %182 = tpu.matmul %179, %180, %cst_55 {dimension_numbers = #tpu.dot_dimension_numbers<[2], [2], [1], [1], [0, 0, 0, 1, 1, 1], [0], [0]>} : vector<2x8x8xf32>, vector<2x10x8xf32>, vector<2x8x10xf32> -> vector<2x8x10xf32>
    "tpu.trace_stop"() : () -> ()
    %cst_56 = arith.constant dense<0xFF800000> : vector<2x8xf32>
    %183 = vector.multi_reduction <maximumf>, %182, %cst_56 [2] : vector<2x8x10xf32> to vector<2x8xf32>
    %184 = vector.shape_cast %183 : vector<2x8xf32> to vector<2x8x1xf32>
    %185 = vector.broadcast %184 : vector<2x8x1xf32> to vector<2x8x10xf32>
    %186 = arith.subf %182, %185 : vector<2x8x10xf32>
    %187 = math.exp %186 : vector<2x8x10xf32>
    %cst_57 = arith.constant dense<0.000000e+00> : vector<2x8xf32>
    %188 = vector.multi_reduction <add>, %187, %cst_57 [2] : vector<2x8x10xf32> to vector<2x8xf32>
    %189 = vector.shape_cast %188 : vector<2x8xf32> to vector<2x8x1xf32>
    %190 = vector.broadcast %189 : vector<2x8x1xf32> to vector<2x8x10xf32>
    %191 = arith.divf %187, %190 : vector<2x8x10xf32>
    "tpu.trace_start"() <{level = 10 : i32, message = "bqk,bkd->bqd"}> : () -> ()
    %cst_58 = arith.constant dense<0.000000e+00> : vector<2x8x8xf32>
    %192 = tpu.matmul %191, %181, %cst_58 {dimension_numbers = #tpu.dot_dimension_numbers<[2], [1], [1], [2], [0, 0, 0, 1, 1, 2], [0], [0]>} : vector<2x8x10xf32>, vector<2x10x8xf32>, vector<2x8x8xf32> -> vector<2x8x8xf32>
    "tpu.trace_stop"() : () -> ()
    %193 = vector.shape_cast %192 : vector<2x8x8xf32> to vector<16x8xf32>
    %194 = vector.extract_strided_slice %124 {offsets = [24, 0], sizes = [8, 32], strides = [1, 1]} : vector<32x32xf32> to vector<8x32xf32>
    %cst_59 = arith.constant dense<0.000000e+00> : vector<16x32xf32>
    %195 = tpu.matmul %193, %194, %cst_59 {dimension_numbers = #tpu.dot_dimension_numbers<[1], [0], [0], [1], [0, 0, 1, 1], [], []>} : vector<16x8xf32>, vector<8x32xf32>, vector<16x32xf32> -> vector<16x32xf32>
    %196 = arith.addf %178, %195 : vector<16x32xf32>
    %197 = vector.broadcast %125 : vector<1x32xf32> to vector<16x32xf32>
    %198 = arith.addf %196, %197 : vector<16x32xf32>
    %199 = arith.addf %117, %198 : vector<16x32xf32>
    %200 = vector.extract_strided_slice %11 {offsets = [8, 0], sizes = [1, 32], strides = [1, 1]} : vector<12x128xf32> to vector<1x32xf32>
    %201 = vector.extract_strided_slice %11 {offsets = [9, 0], sizes = [1, 32], strides = [1, 1]} : vector<12x128xf32> to vector<1x32xf32>
    %cst_60 = arith.constant dense<0.000000e+00> : vector<16xf32>
    %202 = vector.multi_reduction <add>, %199, %cst_60 [1] : vector<16x32xf32> to vector<16xf32>
    %203 = vector.shape_cast %202 : vector<16xf32> to vector<16x1xf32>
    %cst_61 = arith.constant 3.200000e+01 : f32
    %204 = vector.broadcast %cst_61 : f32 to vector<16x1xf32>
    %205 = arith.divf %203, %204 : vector<16x1xf32>
    %206 = vector.broadcast %205 : vector<16x1xf32> to vector<16x32xf32>
    %207 = arith.subf %199, %206 : vector<16x32xf32>
    %208 = arith.mulf %207, %207 : vector<16x32xf32>
    %cst_62 = arith.constant dense<0.000000e+00> : vector<16xf32>
    %209 = vector.multi_reduction <add>, %208, %cst_62 [1] : vector<16x32xf32> to vector<16xf32>
    %210 = vector.shape_cast %209 : vector<16xf32> to vector<16x1xf32>
    %cst_63 = arith.constant 3.200000e+01 : f32
    %211 = vector.broadcast %cst_63 : f32 to vector<16x1xf32>
    %212 = arith.divf %210, %211 : vector<16x1xf32>
    %213 = vector.broadcast %205 : vector<16x1xf32> to vector<16x32xf32>
    %214 = arith.subf %199, %213 : vector<16x32xf32>
    %cst_64 = arith.constant 9.99999974E-6 : f32
    %215 = vector.broadcast %cst_64 : f32 to vector<16x1xf32>
    %216 = arith.addf %212, %215 : vector<16x1xf32>
    %217 = math.rsqrt %216 : vector<16x1xf32>
    %218 = vector.broadcast %217 : vector<16x1xf32> to vector<16x32xf32>
    %219 = arith.mulf %214, %218 : vector<16x32xf32>
    %220 = vector.broadcast %200 : vector<1x32xf32> to vector<16x32xf32>
    %221 = arith.mulf %219, %220 : vector<16x32xf32>
    %222 = vector.broadcast %201 : vector<1x32xf32> to vector<16x32xf32>
    %223 = arith.addf %221, %222 : vector<16x32xf32>
    %224 = vector.extract_strided_slice %9 {offsets = [0, 192], sizes = [32, 64], strides = [1, 1]} : vector<32x256xf32> to vector<32x64xf32>
    %cst_65 = arith.constant dense<0.000000e+00> : vector<16x64xf32>
    %225 = tpu.matmul %223, %224, %cst_65 {dimension_numbers = #tpu.dot_dimension_numbers<[1], [0], [0], [1], [0, 0, 1, 1], [], []>} : vector<16x32xf32>, vector<32x64xf32>, vector<16x64xf32> -> vector<16x64xf32>
    %226 = vector.extract_strided_slice %11 {offsets = [4, 0], sizes = [1, 64], strides = [1, 1]} : vector<12x128xf32> to vector<1x64xf32>
    %227 = vector.broadcast %226 : vector<1x64xf32> to vector<16x64xf32>
    %228 = arith.addf %225, %227 : vector<16x64xf32>
    %cst_66 = arith.constant 0.000000e+00 : f32
    %229 = vector.broadcast %cst_66 : f32 to vector<16x64xf32>
    %230 = arith.maximumf %228, %229 : vector<16x64xf32>
    %c0_67 = arith.constant 0 : index
    %c0_68 = arith.constant 0 : index
    %c0_69 = arith.constant 0 : index
    %231 = vector.load %arg5[%c0_67, %c0_68, %c0_69] : memref<2x64x32xf32, #tpu.memory_space<vmem>>, vector<1x64x32xf32>
    %232 = vector.shape_cast %231 : vector<1x64x32xf32> to vector<64x32xf32>
    %cst_70 = arith.constant dense<0.000000e+00> : vector<16x32xf32>
    %233 = tpu.matmul %230, %232, %cst_70 {dimension_numbers = #tpu.dot_dimension_numbers<[1], [0], [0], [1], [0, 0, 1, 1], [], []>} : vector<16x64xf32>, vector<64x32xf32>, vector<16x32xf32> -> vector<16x32xf32>
    %234 = vector.extract_strided_slice %11 {offsets = [5, 0], sizes = [1, 32], strides = [1, 1]} : vector<12x128xf32> to vector<1x32xf32>
    %235 = vector.broadcast %234 : vector<1x32xf32> to vector<16x32xf32>
    %236 = arith.addf %233, %235 : vector<16x32xf32>
    %237 = arith.addf %223, %236 : vector<16x32xf32>
    %238 = vector.extract_strided_slice %11 {offsets = [10, 0], sizes = [1, 32], strides = [1, 1]} : vector<12x128xf32> to vector<1x32xf32>
    %239 = vector.extract_strided_slice %11 {offsets = [11, 0], sizes = [1, 32], strides = [1, 1]} : vector<12x128xf32> to vector<1x32xf32>
    %cst_71 = arith.constant dense<0.000000e+00> : vector<16xf32>
    %240 = vector.multi_reduction <add>, %237, %cst_71 [1] : vector<16x32xf32> to vector<16xf32>
    %241 = vector.shape_cast %240 : vector<16xf32> to vector<16x1xf32>
    %cst_72 = arith.constant 3.200000e+01 : f32
    %242 = vector.broadcast %cst_72 : f32 to vector<16x1xf32>
    %243 = arith.divf %241, %242 : vector<16x1xf32>
    %244 = vector.broadcast %243 : vector<16x1xf32> to vector<16x32xf32>
    %245 = arith.subf %237, %244 : vector<16x32xf32>
    %246 = arith.mulf %245, %245 : vector<16x32xf32>
    %cst_73 = arith.constant dense<0.000000e+00> : vector<16xf32>
    %247 = vector.multi_reduction <add>, %246, %cst_73 [1] : vector<16x32xf32> to vector<16xf32>
    %248 = vector.shape_cast %247 : vector<16xf32> to vector<16x1xf32>
    %cst_74 = arith.constant 3.200000e+01 : f32
    %249 = vector.broadcast %cst_74 : f32 to vector<16x1xf32>
    %250 = arith.divf %248, %249 : vector<16x1xf32>
    %251 = vector.broadcast %243 : vector<16x1xf32> to vector<16x32xf32>
    %252 = arith.subf %237, %251 : vector<16x32xf32>
    %cst_75 = arith.constant 9.99999974E-6 : f32
    %253 = vector.broadcast %cst_75 : f32 to vector<16x1xf32>
    %254 = arith.addf %250, %253 : vector<16x1xf32>
    %255 = math.rsqrt %254 : vector<16x1xf32>
    %256 = vector.broadcast %255 : vector<16x1xf32> to vector<16x32xf32>
    %257 = arith.mulf %252, %256 : vector<16x32xf32>
    %258 = vector.broadcast %238 : vector<1x32xf32> to vector<16x32xf32>
    %259 = arith.mulf %257, %258 : vector<16x32xf32>
    %260 = vector.broadcast %239 : vector<1x32xf32> to vector<16x32xf32>
    %261 = arith.addf %259, %260 : vector<16x32xf32>
    %c1 = arith.constant 1 : index
    %c0_76 = arith.constant 0 : index
    %c0_77 = arith.constant 0 : index
    %262 = vector.load %arg2[%c1, %c0_76, %c0_77] : memref<2x32x256xf32, #tpu.memory_space<vmem>>, vector<1x32x256xf32>
    %263 = vector.shape_cast %262 : vector<1x32x256xf32> to vector<32x256xf32>
    %c1_78 = arith.constant 1 : index
    %c0_79 = arith.constant 0 : index
    %c0_80 = arith.constant 0 : index
    %264 = vector.load %arg6[%c1_78, %c0_79, %c0_80] : memref<2x12x128xf32, #tpu.memory_space<vmem>>, vector<1x12x128xf32>
    %265 = vector.shape_cast %264 : vector<1x12x128xf32> to vector<12x128xf32>
    %266 = vector.extract_strided_slice %263 {offsets = [0, 0], sizes = [32, 96], strides = [1, 1]} : vector<32x256xf32> to vector<32x96xf32>
    %cst_81 = arith.constant dense<0.000000e+00> : vector<16x96xf32>
    %267 = tpu.matmul %261, %266, %cst_81 {dimension_numbers = #tpu.dot_dimension_numbers<[1], [0], [0], [1], [0, 0, 1, 1], [], []>} : vector<16x32xf32>, vector<32x96xf32>, vector<16x96xf32> -> vector<16x96xf32>
    %268 = vector.extract_strided_slice %265 {offsets = [0, 0], sizes = [1, 96], strides = [1, 1]} : vector<12x128xf32> to vector<1x96xf32>
    %269 = vector.broadcast %268 : vector<1x96xf32> to vector<16x96xf32>
    %270 = arith.addf %267, %269 : vector<16x96xf32>
    %271 = vector.shape_cast %270 : vector<16x96xf32> to vector<2x8x96xf32>
    %272 = vector.extract_strided_slice %263 {offsets = [0, 96], sizes = [32, 32], strides = [1, 1]} : vector<32x256xf32> to vector<32x32xf32>
    %273 = vector.extract_strided_slice %265 {offsets = [1, 0], sizes = [1, 32], strides = [1, 1]} : vector<12x128xf32> to vector<1x32xf32>
    %274 = vector.extract_strided_slice %271 {offsets = [0, 0, 0], sizes = [2, 8, 8], strides = [1, 1, 1]} : vector<2x8x96xf32> to vector<2x8x8xf32>
    %275 = vector.extract_strided_slice %271 {offsets = [0, 0, 32], sizes = [2, 8, 8], strides = [1, 1, 1]} : vector<2x8x96xf32> to vector<2x8x8xf32>
    %276 = vector.extract_strided_slice %271 {offsets = [0, 0, 64], sizes = [2, 8, 8], strides = [1, 1, 1]} : vector<2x8x96xf32> to vector<2x8x8xf32>
    "tpu.trace_start"() <{level = 10 : i32, message = "bqd,bkd->bqk"}> : () -> ()
    %cst_82 = arith.constant dense<0.000000e+00> : vector<2x8x8xf32>
    %277 = tpu.matmul %274, %275, %cst_82 {dimension_numbers = #tpu.dot_dimension_numbers<[2], [2], [1], [1], [0, 0, 0, 1, 1, 1], [0], [0]>} : vector<2x8x8xf32>, vector<2x8x8xf32>, vector<2x8x8xf32> -> vector<2x8x8xf32>
    "tpu.trace_stop"() : () -> ()
    %cst_83 = arith.constant dense<0xFF800000> : vector<2x8xf32>
    %278 = vector.multi_reduction <maximumf>, %277, %cst_83 [2] : vector<2x8x8xf32> to vector<2x8xf32>
    %279 = vector.shape_cast %278 : vector<2x8xf32> to vector<2x8x1xf32>
    %280 = vector.broadcast %279 : vector<2x8x1xf32> to vector<2x8x8xf32>
    %281 = arith.subf %277, %280 : vector<2x8x8xf32>
    %282 = math.exp %281 : vector<2x8x8xf32>
    %cst_84 = arith.constant dense<0.000000e+00> : vector<2x8xf32>
    %283 = vector.multi_reduction <add>, %282, %cst_84 [2] : vector<2x8x8xf32> to vector<2x8xf32>
    %284 = vector.shape_cast %283 : vector<2x8xf32> to vector<2x8x1xf32>
    %285 = vector.broadcast %284 : vector<2x8x1xf32> to vector<2x8x8xf32>
    %286 = arith.divf %282, %285 : vector<2x8x8xf32>
    "tpu.trace_start"() <{level = 10 : i32, message = "bqk,bkd->bqd"}> : () -> ()
    %cst_85 = arith.constant dense<0.000000e+00> : vector<2x8x8xf32>
    %287 = tpu.matmul %286, %276, %cst_85 {dimension_numbers = #tpu.dot_dimension_numbers<[2], [1], [1], [2], [0, 0, 0, 1, 1, 2], [0], [0]>} : vector<2x8x8xf32>, vector<2x8x8xf32>, vector<2x8x8xf32> -> vector<2x8x8xf32>
    "tpu.trace_stop"() : () -> ()
    %288 = vector.shape_cast %287 : vector<2x8x8xf32> to vector<16x8xf32>
    %289 = vector.extract_strided_slice %272 {offsets = [0, 0], sizes = [8, 32], strides = [1, 1]} : vector<32x32xf32> to vector<8x32xf32>
    %cst_86 = arith.constant dense<0.000000e+00> : vector<16x32xf32>
    %290 = tpu.matmul %288, %289, %cst_86 {dimension_numbers = #tpu.dot_dimension_numbers<[1], [0], [0], [1], [0, 0, 1, 1], [], []>} : vector<16x8xf32>, vector<8x32xf32>, vector<16x32xf32> -> vector<16x32xf32>
    %291 = vector.extract_strided_slice %271 {offsets = [0, 0, 8], sizes = [2, 8, 8], strides = [1, 1, 1]} : vector<2x8x96xf32> to vector<2x8x8xf32>
    %292 = vector.extract_strided_slice %271 {offsets = [0, 0, 40], sizes = [2, 8, 8], strides = [1, 1, 1]} : vector<2x8x96xf32> to vector<2x8x8xf32>
    %293 = vector.extract_strided_slice %271 {offsets = [0, 0, 72], sizes = [2, 8, 8], strides = [1, 1, 1]} : vector<2x8x96xf32> to vector<2x8x8xf32>
    "tpu.trace_start"() <{level = 10 : i32, message = "bqd,bkd->bqk"}> : () -> ()
    %cst_87 = arith.constant dense<0.000000e+00> : vector<2x8x8xf32>
    %294 = tpu.matmul %291, %292, %cst_87 {dimension_numbers = #tpu.dot_dimension_numbers<[2], [2], [1], [1], [0, 0, 0, 1, 1, 1], [0], [0]>} : vector<2x8x8xf32>, vector<2x8x8xf32>, vector<2x8x8xf32> -> vector<2x8x8xf32>
    "tpu.trace_stop"() : () -> ()
    %cst_88 = arith.constant dense<0xFF800000> : vector<2x8xf32>
    %295 = vector.multi_reduction <maximumf>, %294, %cst_88 [2] : vector<2x8x8xf32> to vector<2x8xf32>
    %296 = vector.shape_cast %295 : vector<2x8xf32> to vector<2x8x1xf32>
    %297 = vector.broadcast %296 : vector<2x8x1xf32> to vector<2x8x8xf32>
    %298 = arith.subf %294, %297 : vector<2x8x8xf32>
    %299 = math.exp %298 : vector<2x8x8xf32>
    %cst_89 = arith.constant dense<0.000000e+00> : vector<2x8xf32>
    %300 = vector.multi_reduction <add>, %299, %cst_89 [2] : vector<2x8x8xf32> to vector<2x8xf32>
    %301 = vector.shape_cast %300 : vector<2x8xf32> to vector<2x8x1xf32>
    %302 = vector.broadcast %301 : vector<2x8x1xf32> to vector<2x8x8xf32>
    %303 = arith.divf %299, %302 : vector<2x8x8xf32>
    "tpu.trace_start"() <{level = 10 : i32, message = "bqk,bkd->bqd"}> : () -> ()
    %cst_90 = arith.constant dense<0.000000e+00> : vector<2x8x8xf32>
    %304 = tpu.matmul %303, %293, %cst_90 {dimension_numbers = #tpu.dot_dimension_numbers<[2], [1], [1], [2], [0, 0, 0, 1, 1, 2], [0], [0]>} : vector<2x8x8xf32>, vector<2x8x8xf32>, vector<2x8x8xf32> -> vector<2x8x8xf32>
    "tpu.trace_stop"() : () -> ()
    %305 = vector.shape_cast %304 : vector<2x8x8xf32> to vector<16x8xf32>
    %306 = vector.extract_strided_slice %272 {offsets = [8, 0], sizes = [8, 32], strides = [1, 1]} : vector<32x32xf32> to vector<8x32xf32>
    %cst_91 = arith.constant dense<0.000000e+00> : vector<16x32xf32>
    %307 = tpu.matmul %305, %306, %cst_91 {dimension_numbers = #tpu.dot_dimension_numbers<[1], [0], [0], [1], [0, 0, 1, 1], [], []>} : vector<16x8xf32>, vector<8x32xf32>, vector<16x32xf32> -> vector<16x32xf32>
    %308 = arith.addf %290, %307 : vector<16x32xf32>
    %309 = vector.extract_strided_slice %271 {offsets = [0, 0, 16], sizes = [2, 8, 8], strides = [1, 1, 1]} : vector<2x8x96xf32> to vector<2x8x8xf32>
    %310 = vector.extract_strided_slice %271 {offsets = [0, 0, 48], sizes = [2, 8, 8], strides = [1, 1, 1]} : vector<2x8x96xf32> to vector<2x8x8xf32>
    %311 = vector.extract_strided_slice %271 {offsets = [0, 0, 80], sizes = [2, 8, 8], strides = [1, 1, 1]} : vector<2x8x96xf32> to vector<2x8x8xf32>
    "tpu.trace_start"() <{level = 10 : i32, message = "bqd,bkd->bqk"}> : () -> ()
    %cst_92 = arith.constant dense<0.000000e+00> : vector<2x8x8xf32>
    %312 = tpu.matmul %309, %310, %cst_92 {dimension_numbers = #tpu.dot_dimension_numbers<[2], [2], [1], [1], [0, 0, 0, 1, 1, 1], [0], [0]>} : vector<2x8x8xf32>, vector<2x8x8xf32>, vector<2x8x8xf32> -> vector<2x8x8xf32>
    "tpu.trace_stop"() : () -> ()
    %cst_93 = arith.constant dense<0xFF800000> : vector<2x8xf32>
    %313 = vector.multi_reduction <maximumf>, %312, %cst_93 [2] : vector<2x8x8xf32> to vector<2x8xf32>
    %314 = vector.shape_cast %313 : vector<2x8xf32> to vector<2x8x1xf32>
    %315 = vector.broadcast %314 : vector<2x8x1xf32> to vector<2x8x8xf32>
    %316 = arith.subf %312, %315 : vector<2x8x8xf32>
    %317 = math.exp %316 : vector<2x8x8xf32>
    %cst_94 = arith.constant dense<0.000000e+00> : vector<2x8xf32>
    %318 = vector.multi_reduction <add>, %317, %cst_94 [2] : vector<2x8x8xf32> to vector<2x8xf32>
    %319 = vector.shape_cast %318 : vector<2x8xf32> to vector<2x8x1xf32>
    %320 = vector.broadcast %319 : vector<2x8x1xf32> to vector<2x8x8xf32>
    %321 = arith.divf %317, %320 : vector<2x8x8xf32>
    "tpu.trace_start"() <{level = 10 : i32, message = "bqk,bkd->bqd"}> : () -> ()
    %cst_95 = arith.constant dense<0.000000e+00> : vector<2x8x8xf32>
    %322 = tpu.matmul %321, %311, %cst_95 {dimension_numbers = #tpu.dot_dimension_numbers<[2], [1], [1], [2], [0, 0, 0, 1, 1, 2], [0], [0]>} : vector<2x8x8xf32>, vector<2x8x8xf32>, vector<2x8x8xf32> -> vector<2x8x8xf32>
    "tpu.trace_stop"() : () -> ()
    %323 = vector.shape_cast %322 : vector<2x8x8xf32> to vector<16x8xf32>
    %324 = vector.extract_strided_slice %272 {offsets = [16, 0], sizes = [8, 32], strides = [1, 1]} : vector<32x32xf32> to vector<8x32xf32>
    %cst_96 = arith.constant dense<0.000000e+00> : vector<16x32xf32>
    %325 = tpu.matmul %323, %324, %cst_96 {dimension_numbers = #tpu.dot_dimension_numbers<[1], [0], [0], [1], [0, 0, 1, 1], [], []>} : vector<16x8xf32>, vector<8x32xf32>, vector<16x32xf32> -> vector<16x32xf32>
    %326 = arith.addf %308, %325 : vector<16x32xf32>
    %327 = vector.extract_strided_slice %271 {offsets = [0, 0, 24], sizes = [2, 8, 8], strides = [1, 1, 1]} : vector<2x8x96xf32> to vector<2x8x8xf32>
    %328 = vector.extract_strided_slice %271 {offsets = [0, 0, 56], sizes = [2, 8, 8], strides = [1, 1, 1]} : vector<2x8x96xf32> to vector<2x8x8xf32>
    %329 = vector.extract_strided_slice %271 {offsets = [0, 0, 88], sizes = [2, 8, 8], strides = [1, 1, 1]} : vector<2x8x96xf32> to vector<2x8x8xf32>
    "tpu.trace_start"() <{level = 10 : i32, message = "bqd,bkd->bqk"}> : () -> ()
    %cst_97 = arith.constant dense<0.000000e+00> : vector<2x8x8xf32>
    %330 = tpu.matmul %327, %328, %cst_97 {dimension_numbers = #tpu.dot_dimension_numbers<[2], [2], [1], [1], [0, 0, 0, 1, 1, 1], [0], [0]>} : vector<2x8x8xf32>, vector<2x8x8xf32>, vector<2x8x8xf32> -> vector<2x8x8xf32>
    "tpu.trace_stop"() : () -> ()
    %cst_98 = arith.constant dense<0xFF800000> : vector<2x8xf32>
    %331 = vector.multi_reduction <maximumf>, %330, %cst_98 [2] : vector<2x8x8xf32> to vector<2x8xf32>
    %332 = vector.shape_cast %331 : vector<2x8xf32> to vector<2x8x1xf32>
    %333 = vector.broadcast %332 : vector<2x8x1xf32> to vector<2x8x8xf32>
    %334 = arith.subf %330, %333 : vector<2x8x8xf32>
    %335 = math.exp %334 : vector<2x8x8xf32>
    %cst_99 = arith.constant dense<0.000000e+00> : vector<2x8xf32>
    %336 = vector.multi_reduction <add>, %335, %cst_99 [2] : vector<2x8x8xf32> to vector<2x8xf32>
    %337 = vector.shape_cast %336 : vector<2x8xf32> to vector<2x8x1xf32>
    %338 = vector.broadcast %337 : vector<2x8x1xf32> to vector<2x8x8xf32>
    %339 = arith.divf %335, %338 : vector<2x8x8xf32>
    "tpu.trace_start"() <{level = 10 : i32, message = "bqk,bkd->bqd"}> : () -> ()
    %cst_100 = arith.constant dense<0.000000e+00> : vector<2x8x8xf32>
    %340 = tpu.matmul %339, %329, %cst_100 {dimension_numbers = #tpu.dot_dimension_numbers<[2], [1], [1], [2], [0, 0, 0, 1, 1, 2], [0], [0]>} : vector<2x8x8xf32>, vector<2x8x8xf32>, vector<2x8x8xf32> -> vector<2x8x8xf32>
    "tpu.trace_stop"() : () -> ()
    %341 = vector.shape_cast %340 : vector<2x8x8xf32> to vector<16x8xf32>
    %342 = vector.extract_strided_slice %272 {offsets = [24, 0], sizes = [8, 32], strides = [1, 1]} : vector<32x32xf32> to vector<8x32xf32>
    %cst_101 = arith.constant dense<0.000000e+00> : vector<16x32xf32>
    %343 = tpu.matmul %341, %342, %cst_101 {dimension_numbers = #tpu.dot_dimension_numbers<[1], [0], [0], [1], [0, 0, 1, 1], [], []>} : vector<16x8xf32>, vector<8x32xf32>, vector<16x32xf32> -> vector<16x32xf32>
    %344 = arith.addf %326, %343 : vector<16x32xf32>
    %345 = vector.broadcast %273 : vector<1x32xf32> to vector<16x32xf32>
    %346 = arith.addf %344, %345 : vector<16x32xf32>
    %347 = arith.addf %261, %346 : vector<16x32xf32>
    %348 = vector.extract_strided_slice %265 {offsets = [6, 0], sizes = [1, 32], strides = [1, 1]} : vector<12x128xf32> to vector<1x32xf32>
    %349 = vector.extract_strided_slice %265 {offsets = [7, 0], sizes = [1, 32], strides = [1, 1]} : vector<12x128xf32> to vector<1x32xf32>
    %cst_102 = arith.constant dense<0.000000e+00> : vector<16xf32>
    %350 = vector.multi_reduction <add>, %347, %cst_102 [1] : vector<16x32xf32> to vector<16xf32>
    %351 = vector.shape_cast %350 : vector<16xf32> to vector<16x1xf32>
    %cst_103 = arith.constant 3.200000e+01 : f32
    %352 = vector.broadcast %cst_103 : f32 to vector<16x1xf32>
    %353 = arith.divf %351, %352 : vector<16x1xf32>
    %354 = vector.broadcast %353 : vector<16x1xf32> to vector<16x32xf32>
    %355 = arith.subf %347, %354 : vector<16x32xf32>
    %356 = arith.mulf %355, %355 : vector<16x32xf32>
    %cst_104 = arith.constant dense<0.000000e+00> : vector<16xf32>
    %357 = vector.multi_reduction <add>, %356, %cst_104 [1] : vector<16x32xf32> to vector<16xf32>
    %358 = vector.shape_cast %357 : vector<16xf32> to vector<16x1xf32>
    %cst_105 = arith.constant 3.200000e+01 : f32
    %359 = vector.broadcast %cst_105 : f32 to vector<16x1xf32>
    %360 = arith.divf %358, %359 : vector<16x1xf32>
    %361 = vector.broadcast %353 : vector<16x1xf32> to vector<16x32xf32>
    %362 = arith.subf %347, %361 : vector<16x32xf32>
    %cst_106 = arith.constant 9.99999974E-6 : f32
    %363 = vector.broadcast %cst_106 : f32 to vector<16x1xf32>
    %364 = arith.addf %360, %363 : vector<16x1xf32>
    %365 = math.rsqrt %364 : vector<16x1xf32>
    %366 = vector.broadcast %365 : vector<16x1xf32> to vector<16x32xf32>
    %367 = arith.mulf %362, %366 : vector<16x32xf32>
    %368 = vector.broadcast %348 : vector<1x32xf32> to vector<16x32xf32>
    %369 = arith.mulf %367, %368 : vector<16x32xf32>
    %370 = vector.broadcast %349 : vector<1x32xf32> to vector<16x32xf32>
    %371 = arith.addf %369, %370 : vector<16x32xf32>
    %372 = vector.extract_strided_slice %263 {offsets = [0, 128], sizes = [32, 32], strides = [1, 1]} : vector<32x256xf32> to vector<32x32xf32>
    %cst_107 = arith.constant dense<0.000000e+00> : vector<16x32xf32>
    %373 = tpu.matmul %371, %372, %cst_107 {dimension_numbers = #tpu.dot_dimension_numbers<[1], [0], [0], [1], [0, 0, 1, 1], [], []>} : vector<16x32xf32>, vector<32x32xf32>, vector<16x32xf32> -> vector<16x32xf32>
    %374 = vector.extract_strided_slice %265 {offsets = [2, 0], sizes = [1, 32], strides = [1, 1]} : vector<12x128xf32> to vector<1x32xf32>
    %375 = vector.broadcast %374 : vector<1x32xf32> to vector<16x32xf32>
    %376 = arith.addf %373, %375 : vector<16x32xf32>
    %377 = vector.shape_cast %376 : vector<16x32xf32> to vector<2x8x32xf32>
    %378 = vector.extract_strided_slice %263 {offsets = [0, 160], sizes = [32, 32], strides = [1, 1]} : vector<32x256xf32> to vector<32x32xf32>
    %379 = vector.extract_strided_slice %265 {offsets = [3, 0], sizes = [1, 32], strides = [1, 1]} : vector<12x128xf32> to vector<1x32xf32>
    %380 = vector.extract_strided_slice %377 {offsets = [0, 0, 0], sizes = [2, 8, 8], strides = [1, 1, 1]} : vector<2x8x32xf32> to vector<2x8x8xf32>
    %381 = vector.extract_strided_slice %7 {offsets = [0, 0, 64], sizes = [2, 10, 8], strides = [1, 1, 1]} : vector<2x10x128xf32> to vector<2x10x8xf32>
    %382 = vector.extract_strided_slice %7 {offsets = [0, 0, 96], sizes = [2, 10, 8], strides = [1, 1, 1]} : vector<2x10x128xf32> to vector<2x10x8xf32>
    "tpu.trace_start"() <{level = 10 : i32, message = "bqd,bkd->bqk"}> : () -> ()
    %cst_108 = arith.constant dense<0.000000e+00> : vector<2x8x10xf32>
    %383 = tpu.matmul %380, %381, %cst_108 {dimension_numbers = #tpu.dot_dimension_numbers<[2], [2], [1], [1], [0, 0, 0, 1, 1, 1], [0], [0]>} : vector<2x8x8xf32>, vector<2x10x8xf32>, vector<2x8x10xf32> -> vector<2x8x10xf32>
    "tpu.trace_stop"() : () -> ()
    %cst_109 = arith.constant dense<0xFF800000> : vector<2x8xf32>
    %384 = vector.multi_reduction <maximumf>, %383, %cst_109 [2] : vector<2x8x10xf32> to vector<2x8xf32>
    %385 = vector.shape_cast %384 : vector<2x8xf32> to vector<2x8x1xf32>
    %386 = vector.broadcast %385 : vector<2x8x1xf32> to vector<2x8x10xf32>
    %387 = arith.subf %383, %386 : vector<2x8x10xf32>
    %388 = math.exp %387 : vector<2x8x10xf32>
    %cst_110 = arith.constant dense<0.000000e+00> : vector<2x8xf32>
    %389 = vector.multi_reduction <add>, %388, %cst_110 [2] : vector<2x8x10xf32> to vector<2x8xf32>
    %390 = vector.shape_cast %389 : vector<2x8xf32> to vector<2x8x1xf32>
    %391 = vector.broadcast %390 : vector<2x8x1xf32> to vector<2x8x10xf32>
    %392 = arith.divf %388, %391 : vector<2x8x10xf32>
    "tpu.trace_start"() <{level = 10 : i32, message = "bqk,bkd->bqd"}> : () -> ()
    %cst_111 = arith.constant dense<0.000000e+00> : vector<2x8x8xf32>
    %393 = tpu.matmul %392, %382, %cst_111 {dimension_numbers = #tpu.dot_dimension_numbers<[2], [1], [1], [2], [0, 0, 0, 1, 1, 2], [0], [0]>} : vector<2x8x10xf32>, vector<2x10x8xf32>, vector<2x8x8xf32> -> vector<2x8x8xf32>
    "tpu.trace_stop"() : () -> ()
    %394 = vector.shape_cast %393 : vector<2x8x8xf32> to vector<16x8xf32>
    %395 = vector.extract_strided_slice %378 {offsets = [0, 0], sizes = [8, 32], strides = [1, 1]} : vector<32x32xf32> to vector<8x32xf32>
    %cst_112 = arith.constant dense<0.000000e+00> : vector<16x32xf32>
    %396 = tpu.matmul %394, %395, %cst_112 {dimension_numbers = #tpu.dot_dimension_numbers<[1], [0], [0], [1], [0, 0, 1, 1], [], []>} : vector<16x8xf32>, vector<8x32xf32>, vector<16x32xf32> -> vector<16x32xf32>
    %397 = vector.extract_strided_slice %377 {offsets = [0, 0, 8], sizes = [2, 8, 8], strides = [1, 1, 1]} : vector<2x8x32xf32> to vector<2x8x8xf32>
    %398 = vector.extract_strided_slice %7 {offsets = [0, 0, 72], sizes = [2, 10, 8], strides = [1, 1, 1]} : vector<2x10x128xf32> to vector<2x10x8xf32>
    %399 = vector.extract_strided_slice %7 {offsets = [0, 0, 104], sizes = [2, 10, 8], strides = [1, 1, 1]} : vector<2x10x128xf32> to vector<2x10x8xf32>
    "tpu.trace_start"() <{level = 10 : i32, message = "bqd,bkd->bqk"}> : () -> ()
    %cst_113 = arith.constant dense<0.000000e+00> : vector<2x8x10xf32>
    %400 = tpu.matmul %397, %398, %cst_113 {dimension_numbers = #tpu.dot_dimension_numbers<[2], [2], [1], [1], [0, 0, 0, 1, 1, 1], [0], [0]>} : vector<2x8x8xf32>, vector<2x10x8xf32>, vector<2x8x10xf32> -> vector<2x8x10xf32>
    "tpu.trace_stop"() : () -> ()
    %cst_114 = arith.constant dense<0xFF800000> : vector<2x8xf32>
    %401 = vector.multi_reduction <maximumf>, %400, %cst_114 [2] : vector<2x8x10xf32> to vector<2x8xf32>
    %402 = vector.shape_cast %401 : vector<2x8xf32> to vector<2x8x1xf32>
    %403 = vector.broadcast %402 : vector<2x8x1xf32> to vector<2x8x10xf32>
    %404 = arith.subf %400, %403 : vector<2x8x10xf32>
    %405 = math.exp %404 : vector<2x8x10xf32>
    %cst_115 = arith.constant dense<0.000000e+00> : vector<2x8xf32>
    %406 = vector.multi_reduction <add>, %405, %cst_115 [2] : vector<2x8x10xf32> to vector<2x8xf32>
    %407 = vector.shape_cast %406 : vector<2x8xf32> to vector<2x8x1xf32>
    %408 = vector.broadcast %407 : vector<2x8x1xf32> to vector<2x8x10xf32>
    %409 = arith.divf %405, %408 : vector<2x8x10xf32>
    "tpu.trace_start"() <{level = 10 : i32, message = "bqk,bkd->bqd"}> : () -> ()
    %cst_116 = arith.constant dense<0.000000e+00> : vector<2x8x8xf32>
    %410 = tpu.matmul %409, %399, %cst_116 {dimension_numbers = #tpu.dot_dimension_numbers<[2], [1], [1], [2], [0, 0, 0, 1, 1, 2], [0], [0]>} : vector<2x8x10xf32>, vector<2x10x8xf32>, vector<2x8x8xf32> -> vector<2x8x8xf32>
    "tpu.trace_stop"() : () -> ()
    %411 = vector.shape_cast %410 : vector<2x8x8xf32> to vector<16x8xf32>
    %412 = vector.extract_strided_slice %378 {offsets = [8, 0], sizes = [8, 32], strides = [1, 1]} : vector<32x32xf32> to vector<8x32xf32>
    %cst_117 = arith.constant dense<0.000000e+00> : vector<16x32xf32>
    %413 = tpu.matmul %411, %412, %cst_117 {dimension_numbers = #tpu.dot_dimension_numbers<[1], [0], [0], [1], [0, 0, 1, 1], [], []>} : vector<16x8xf32>, vector<8x32xf32>, vector<16x32xf32> -> vector<16x32xf32>
    %414 = arith.addf %396, %413 : vector<16x32xf32>
    %415 = vector.extract_strided_slice %377 {offsets = [0, 0, 16], sizes = [2, 8, 8], strides = [1, 1, 1]} : vector<2x8x32xf32> to vector<2x8x8xf32>
    %416 = vector.extract_strided_slice %7 {offsets = [0, 0, 80], sizes = [2, 10, 8], strides = [1, 1, 1]} : vector<2x10x128xf32> to vector<2x10x8xf32>
    %417 = vector.extract_strided_slice %7 {offsets = [0, 0, 112], sizes = [2, 10, 8], strides = [1, 1, 1]} : vector<2x10x128xf32> to vector<2x10x8xf32>
    "tpu.trace_start"() <{level = 10 : i32, message = "bqd,bkd->bqk"}> : () -> ()
    %cst_118 = arith.constant dense<0.000000e+00> : vector<2x8x10xf32>
    %418 = tpu.matmul %415, %416, %cst_118 {dimension_numbers = #tpu.dot_dimension_numbers<[2], [2], [1], [1], [0, 0, 0, 1, 1, 1], [0], [0]>} : vector<2x8x8xf32>, vector<2x10x8xf32>, vector<2x8x10xf32> -> vector<2x8x10xf32>
    "tpu.trace_stop"() : () -> ()
    %cst_119 = arith.constant dense<0xFF800000> : vector<2x8xf32>
    %419 = vector.multi_reduction <maximumf>, %418, %cst_119 [2] : vector<2x8x10xf32> to vector<2x8xf32>
    %420 = vector.shape_cast %419 : vector<2x8xf32> to vector<2x8x1xf32>
    %421 = vector.broadcast %420 : vector<2x8x1xf32> to vector<2x8x10xf32>
    %422 = arith.subf %418, %421 : vector<2x8x10xf32>
    %423 = math.exp %422 : vector<2x8x10xf32>
    %cst_120 = arith.constant dense<0.000000e+00> : vector<2x8xf32>
    %424 = vector.multi_reduction <add>, %423, %cst_120 [2] : vector<2x8x10xf32> to vector<2x8xf32>
    %425 = vector.shape_cast %424 : vector<2x8xf32> to vector<2x8x1xf32>
    %426 = vector.broadcast %425 : vector<2x8x1xf32> to vector<2x8x10xf32>
    %427 = arith.divf %423, %426 : vector<2x8x10xf32>
    "tpu.trace_start"() <{level = 10 : i32, message = "bqk,bkd->bqd"}> : () -> ()
    %cst_121 = arith.constant dense<0.000000e+00> : vector<2x8x8xf32>
    %428 = tpu.matmul %427, %417, %cst_121 {dimension_numbers = #tpu.dot_dimension_numbers<[2], [1], [1], [2], [0, 0, 0, 1, 1, 2], [0], [0]>} : vector<2x8x10xf32>, vector<2x10x8xf32>, vector<2x8x8xf32> -> vector<2x8x8xf32>
    "tpu.trace_stop"() : () -> ()
    %429 = vector.shape_cast %428 : vector<2x8x8xf32> to vector<16x8xf32>
    %430 = vector.extract_strided_slice %378 {offsets = [16, 0], sizes = [8, 32], strides = [1, 1]} : vector<32x32xf32> to vector<8x32xf32>
    %cst_122 = arith.constant dense<0.000000e+00> : vector<16x32xf32>
    %431 = tpu.matmul %429, %430, %cst_122 {dimension_numbers = #tpu.dot_dimension_numbers<[1], [0], [0], [1], [0, 0, 1, 1], [], []>} : vector<16x8xf32>, vector<8x32xf32>, vector<16x32xf32> -> vector<16x32xf32>
    %432 = arith.addf %414, %431 : vector<16x32xf32>
    %433 = vector.extract_strided_slice %377 {offsets = [0, 0, 24], sizes = [2, 8, 8], strides = [1, 1, 1]} : vector<2x8x32xf32> to vector<2x8x8xf32>
    %434 = vector.extract_strided_slice %7 {offsets = [0, 0, 88], sizes = [2, 10, 8], strides = [1, 1, 1]} : vector<2x10x128xf32> to vector<2x10x8xf32>
    %435 = vector.extract_strided_slice %7 {offsets = [0, 0, 120], sizes = [2, 10, 8], strides = [1, 1, 1]} : vector<2x10x128xf32> to vector<2x10x8xf32>
    "tpu.trace_start"() <{level = 10 : i32, message = "bqd,bkd->bqk"}> : () -> ()
    %cst_123 = arith.constant dense<0.000000e+00> : vector<2x8x10xf32>
    %436 = tpu.matmul %433, %434, %cst_123 {dimension_numbers = #tpu.dot_dimension_numbers<[2], [2], [1], [1], [0, 0, 0, 1, 1, 1], [0], [0]>} : vector<2x8x8xf32>, vector<2x10x8xf32>, vector<2x8x10xf32> -> vector<2x8x10xf32>
    "tpu.trace_stop"() : () -> ()
    %cst_124 = arith.constant dense<0xFF800000> : vector<2x8xf32>
    %437 = vector.multi_reduction <maximumf>, %436, %cst_124 [2] : vector<2x8x10xf32> to vector<2x8xf32>
    %438 = vector.shape_cast %437 : vector<2x8xf32> to vector<2x8x1xf32>
    %439 = vector.broadcast %438 : vector<2x8x1xf32> to vector<2x8x10xf32>
    %440 = arith.subf %436, %439 : vector<2x8x10xf32>
    %441 = math.exp %440 : vector<2x8x10xf32>
    %cst_125 = arith.constant dense<0.000000e+00> : vector<2x8xf32>
    %442 = vector.multi_reduction <add>, %441, %cst_125 [2] : vector<2x8x10xf32> to vector<2x8xf32>
    %443 = vector.shape_cast %442 : vector<2x8xf32> to vector<2x8x1xf32>
    %444 = vector.broadcast %443 : vector<2x8x1xf32> to vector<2x8x10xf32>
    %445 = arith.divf %441, %444 : vector<2x8x10xf32>
    "tpu.trace_start"() <{level = 10 : i32, message = "bqk,bkd->bqd"}> : () -> ()
    %cst_126 = arith.constant dense<0.000000e+00> : vector<2x8x8xf32>
    %446 = tpu.matmul %445, %435, %cst_126 {dimension_numbers = #tpu.dot_dimension_numbers<[2], [1], [1], [2], [0, 0, 0, 1, 1, 2], [0], [0]>} : vector<2x8x10xf32>, vector<2x10x8xf32>, vector<2x8x8xf32> -> vector<2x8x8xf32>
    "tpu.trace_stop"() : () -> ()
    %447 = vector.shape_cast %446 : vector<2x8x8xf32> to vector<16x8xf32>
    %448 = vector.extract_strided_slice %378 {offsets = [24, 0], sizes = [8, 32], strides = [1, 1]} : vector<32x32xf32> to vector<8x32xf32>
    %cst_127 = arith.constant dense<0.000000e+00> : vector<16x32xf32>
    %449 = tpu.matmul %447, %448, %cst_127 {dimension_numbers = #tpu.dot_dimension_numbers<[1], [0], [0], [1], [0, 0, 1, 1], [], []>} : vector<16x8xf32>, vector<8x32xf32>, vector<16x32xf32> -> vector<16x32xf32>
    %450 = arith.addf %432, %449 : vector<16x32xf32>
    %451 = vector.broadcast %379 : vector<1x32xf32> to vector<16x32xf32>
    %452 = arith.addf %450, %451 : vector<16x32xf32>
    %453 = arith.addf %371, %452 : vector<16x32xf32>
    %454 = vector.extract_strided_slice %265 {offsets = [8, 0], sizes = [1, 32], strides = [1, 1]} : vector<12x128xf32> to vector<1x32xf32>
    %455 = vector.extract_strided_slice %265 {offsets = [9, 0], sizes = [1, 32], strides = [1, 1]} : vector<12x128xf32> to vector<1x32xf32>
    %cst_128 = arith.constant dense<0.000000e+00> : vector<16xf32>
    %456 = vector.multi_reduction <add>, %453, %cst_128 [1] : vector<16x32xf32> to vector<16xf32>
    %457 = vector.shape_cast %456 : vector<16xf32> to vector<16x1xf32>
    %cst_129 = arith.constant 3.200000e+01 : f32
    %458 = vector.broadcast %cst_129 : f32 to vector<16x1xf32>
    %459 = arith.divf %457, %458 : vector<16x1xf32>
    %460 = vector.broadcast %459 : vector<16x1xf32> to vector<16x32xf32>
    %461 = arith.subf %453, %460 : vector<16x32xf32>
    %462 = arith.mulf %461, %461 : vector<16x32xf32>
    %cst_130 = arith.constant dense<0.000000e+00> : vector<16xf32>
    %463 = vector.multi_reduction <add>, %462, %cst_130 [1] : vector<16x32xf32> to vector<16xf32>
    %464 = vector.shape_cast %463 : vector<16xf32> to vector<16x1xf32>
    %cst_131 = arith.constant 3.200000e+01 : f32
    %465 = vector.broadcast %cst_131 : f32 to vector<16x1xf32>
    %466 = arith.divf %464, %465 : vector<16x1xf32>
    %467 = vector.broadcast %459 : vector<16x1xf32> to vector<16x32xf32>
    %468 = arith.subf %453, %467 : vector<16x32xf32>
    %cst_132 = arith.constant 9.99999974E-6 : f32
    %469 = vector.broadcast %cst_132 : f32 to vector<16x1xf32>
    %470 = arith.addf %466, %469 : vector<16x1xf32>
    %471 = math.rsqrt %470 : vector<16x1xf32>
    %472 = vector.broadcast %471 : vector<16x1xf32> to vector<16x32xf32>
    %473 = arith.mulf %468, %472 : vector<16x32xf32>
    %474 = vector.broadcast %454 : vector<1x32xf32> to vector<16x32xf32>
    %475 = arith.mulf %473, %474 : vector<16x32xf32>
    %476 = vector.broadcast %455 : vector<1x32xf32> to vector<16x32xf32>
    %477 = arith.addf %475, %476 : vector<16x32xf32>
    %478 = vector.extract_strided_slice %263 {offsets = [0, 192], sizes = [32, 64], strides = [1, 1]} : vector<32x256xf32> to vector<32x64xf32>
    %cst_133 = arith.constant dense<0.000000e+00> : vector<16x64xf32>
    %479 = tpu.matmul %477, %478, %cst_133 {dimension_numbers = #tpu.dot_dimension_numbers<[1], [0], [0], [1], [0, 0, 1, 1], [], []>} : vector<16x32xf32>, vector<32x64xf32>, vector<16x64xf32> -> vector<16x64xf32>
    %480 = vector.extract_strided_slice %265 {offsets = [4, 0], sizes = [1, 64], strides = [1, 1]} : vector<12x128xf32> to vector<1x64xf32>
    %481 = vector.broadcast %480 : vector<1x64xf32> to vector<16x64xf32>
    %482 = arith.addf %479, %481 : vector<16x64xf32>
    %cst_134 = arith.constant 0.000000e+00 : f32
    %483 = vector.broadcast %cst_134 : f32 to vector<16x64xf32>
    %484 = arith.maximumf %482, %483 : vector<16x64xf32>
    %c1_135 = arith.constant 1 : index
    %c0_136 = arith.constant 0 : index
    %c0_137 = arith.constant 0 : index
    %485 = vector.load %arg5[%c1_135, %c0_136, %c0_137] : memref<2x64x32xf32, #tpu.memory_space<vmem>>, vector<1x64x32xf32>
    %486 = vector.shape_cast %485 : vector<1x64x32xf32> to vector<64x32xf32>
    %cst_138 = arith.constant dense<0.000000e+00> : vector<16x32xf32>
    %487 = tpu.matmul %484, %486, %cst_138 {dimension_numbers = #tpu.dot_dimension_numbers<[1], [0], [0], [1], [0, 0, 1, 1], [], []>} : vector<16x64xf32>, vector<64x32xf32>, vector<16x32xf32> -> vector<16x32xf32>
    %488 = vector.extract_strided_slice %265 {offsets = [5, 0], sizes = [1, 32], strides = [1, 1]} : vector<12x128xf32> to vector<1x32xf32>
    %489 = vector.broadcast %488 : vector<1x32xf32> to vector<16x32xf32>
    %490 = arith.addf %487, %489 : vector<16x32xf32>
    %491 = arith.addf %477, %490 : vector<16x32xf32>
    %492 = vector.extract_strided_slice %265 {offsets = [10, 0], sizes = [1, 32], strides = [1, 1]} : vector<12x128xf32> to vector<1x32xf32>
    %493 = vector.extract_strided_slice %265 {offsets = [11, 0], sizes = [1, 32], strides = [1, 1]} : vector<12x128xf32> to vector<1x32xf32>
    %cst_139 = arith.constant dense<0.000000e+00> : vector<16xf32>
    %494 = vector.multi_reduction <add>, %491, %cst_139 [1] : vector<16x32xf32> to vector<16xf32>
    %495 = vector.shape_cast %494 : vector<16xf32> to vector<16x1xf32>
    %cst_140 = arith.constant 3.200000e+01 : f32
    %496 = vector.broadcast %cst_140 : f32 to vector<16x1xf32>
    %497 = arith.divf %495, %496 : vector<16x1xf32>
    %498 = vector.broadcast %497 : vector<16x1xf32> to vector<16x32xf32>
    %499 = arith.subf %491, %498 : vector<16x32xf32>
    %500 = arith.mulf %499, %499 : vector<16x32xf32>
    %cst_141 = arith.constant dense<0.000000e+00> : vector<16xf32>
    %501 = vector.multi_reduction <add>, %500, %cst_141 [1] : vector<16x32xf32> to vector<16xf32>
    %502 = vector.shape_cast %501 : vector<16xf32> to vector<16x1xf32>
    %cst_142 = arith.constant 3.200000e+01 : f32
    %503 = vector.broadcast %cst_142 : f32 to vector<16x1xf32>
    %504 = arith.divf %502, %503 : vector<16x1xf32>
    %505 = vector.broadcast %497 : vector<16x1xf32> to vector<16x32xf32>
    %506 = arith.subf %491, %505 : vector<16x32xf32>
    %cst_143 = arith.constant 9.99999974E-6 : f32
    %507 = vector.broadcast %cst_143 : f32 to vector<16x1xf32>
    %508 = arith.addf %504, %507 : vector<16x1xf32>
    %509 = math.rsqrt %508 : vector<16x1xf32>
    %510 = vector.broadcast %509 : vector<16x1xf32> to vector<16x32xf32>
    %511 = arith.mulf %506, %510 : vector<16x32xf32>
    %512 = vector.broadcast %492 : vector<1x32xf32> to vector<16x32xf32>
    %513 = arith.mulf %511, %512 : vector<16x32xf32>
    %514 = vector.broadcast %493 : vector<1x32xf32> to vector<16x32xf32>
    %515 = arith.addf %513, %514 : vector<16x32xf32>
    %c0_144 = arith.constant 0 : index
    %c0_145 = arith.constant 0 : index
    %516 = vector.load %arg7[%c0_144, %c0_145] : memref<2x32xf32, #tpu.memory_space<vmem>>, vector<2x32xf32>
    %517 = vector.extract_strided_slice %516 {offsets = [0, 0], sizes = [1, 32], strides = [1, 1]} : vector<2x32xf32> to vector<1x32xf32>
    %518 = vector.extract_strided_slice %516 {offsets = [1, 0], sizes = [1, 32], strides = [1, 1]} : vector<2x32xf32> to vector<1x32xf32>
    %cst_146 = arith.constant dense<0.000000e+00> : vector<16xf32>
    %519 = vector.multi_reduction <add>, %515, %cst_146 [1] : vector<16x32xf32> to vector<16xf32>
    %520 = vector.shape_cast %519 : vector<16xf32> to vector<16x1xf32>
    %cst_147 = arith.constant 3.200000e+01 : f32
    %521 = vector.broadcast %cst_147 : f32 to vector<16x1xf32>
    %522 = arith.divf %520, %521 : vector<16x1xf32>
    %523 = vector.broadcast %522 : vector<16x1xf32> to vector<16x32xf32>
    %524 = arith.subf %515, %523 : vector<16x32xf32>
    %525 = arith.mulf %524, %524 : vector<16x32xf32>
    %cst_148 = arith.constant dense<0.000000e+00> : vector<16xf32>
    %526 = vector.multi_reduction <add>, %525, %cst_148 [1] : vector<16x32xf32> to vector<16xf32>
    %527 = vector.shape_cast %526 : vector<16xf32> to vector<16x1xf32>
    %cst_149 = arith.constant 3.200000e+01 : f32
    %528 = vector.broadcast %cst_149 : f32 to vector<16x1xf32>
    %529 = arith.divf %527, %528 : vector<16x1xf32>
    %530 = vector.broadcast %522 : vector<16x1xf32> to vector<16x32xf32>
    %531 = arith.subf %515, %530 : vector<16x32xf32>
    %cst_150 = arith.constant 9.99999974E-6 : f32
    %532 = vector.broadcast %cst_150 : f32 to vector<16x1xf32>
    %533 = arith.addf %529, %532 : vector<16x1xf32>
    %534 = math.rsqrt %533 : vector<16x1xf32>
    %535 = vector.broadcast %534 : vector<16x1xf32> to vector<16x32xf32>
    %536 = arith.mulf %531, %535 : vector<16x32xf32>
    %537 = vector.broadcast %517 : vector<1x32xf32> to vector<16x32xf32>
    %538 = arith.mulf %536, %537 : vector<16x32xf32>
    %539 = vector.broadcast %518 : vector<1x32xf32> to vector<16x32xf32>
    %540 = arith.addf %538, %539 : vector<16x32xf32>
    %c0_151 = arith.constant 0 : index
    %c0_152 = arith.constant 0 : index
    %541 = vector.load %arg8[%c0_151, %c0_152] : memref<16x32xf32, #tpu.memory_space<vmem>>, vector<16x32xf32>
    tpu.vector_store %arg8[%c0_151, %c0_152], %540 {strides = array<i32>} : memref<16x32xf32, #tpu.memory_space<vmem>>, vector<16x32xf32>,
    return
  }
}

</mosaic_0001>

<bundles_post_ra>
// kernel: transformer_decoder.1
= control target key start
LH: loop header
LB: loop body
LE: loop exit
PB: predicated region body
PF: predicated region fallthrough
CT: control target
= control target key end

     0   :  { %vm42_vm0 = vcmask 261120   ;;  %s4704_s19 = smov 96   ;;  %s4705_s20 = smov 88   ;;  %vm131_vm1 = vcmask 64512   ;;  %s6090_s2 = inlined_call_operand.vmem [shape: f32[2,32,256], index: 2, kind: input, shape index: {}]   ;;  %s6091_s0 = inlined_call_operand.vmem [shape: f32[16,32], index: 0, kind: input, shape index: {}]   ;;  %s6092_s6 = inlined_call_operand.vmem [shape: f32[2,12,128], index: 6, kind: input, shape index: {}]   ;;  %s6093_s3 = inlined_call_operand.vmem [shape: f32[32,128], index: 3, kind: input, shape index: {}]   ;;  %s6094_s1 = inlined_call_operand.vmem [shape: f32[20,32], index: 1, kind: input, shape index: {}]   ;;  %s6095_s4 = inlined_call_operand.vmem [shape: f32[1,128], index: 4, kind: input, shape index: {}]   ;;  %s6096_s5 = inlined_call_operand.vmem [shape: f32[2,64,32], index: 5, kind: input, shape index: {}]   ;;  %s6097_s7 = inlined_call_operand.vmem [shape: f32[2,32], index: 7, kind: input, shape index: {}]   ;;  %s6098_s8 = inlined_call_operand.vmem [shape: f32[16,32], index: 8, kind: output, shape index: {}]  }
   0x1   :  { %v4768_v0 = vld [vmem:[%s6090_s2 + $0x30] sm:$0xff]  ;;  %v4773_v1 = vld [vmem:[%s6090_s2 + $0x20] sm:$0xff]  ;;  %v30_v5 = vld [vmem:[%s6091_s0 + $0x8] sm:$0xff]  ;;  %s4706_s21 = smov 64   ;;  %s4707_s22 = smov 120  }
   0x2   :  { %117 = vmatpush.msra.mxu1 %v4768_v0  ;;  %v4779_v2 = vld [vmem:[%s6090_s2 + $0x10] sm:$0xff]  ;;  %v4785_v3 = vld [vmem:[%s6090_s2] sm:$0xff]  ;;  %s4708_s11 = smov 80   ;;  %s4709_s12 = smov 56  }
   0x3   :  { %v29_v4 = vld [vmem:[%s6091_s0] sm:$0xff]  ;;  %s4710_s16 = smov 72   ;;  %s4711_s18 = smov 112  }
   0x4   :  { %118 = vmatpush.msra.mxu1 %v4773_v1  ;;  %v96_v6 = vld [vmem:[%s6092_s6] sm:$0xff]  ;;  %s4713_s23 = smov 104   ;;  %s4714_s24 = smov 48  }
   0x5   :  { %v98_v7 = vperm.slane %v96_v6, 0  ;;  %v35_v6 = vld [vmem:[%s6093_s3 + $0x8] sm:$0xff]  ;;  %s4715_s25 = smov 40  }
   0x6   :  { %119 = vmatpush.msra.mxu1 %v4779_v2 }
   0x8   :  { %120 = vmatpush.msra.mxu1 %v4785_v3 }
   0x9   :  { %4294 = vmatmul.msk.f32.vlgmr.msra.gmra.mxu1 %vm42_vm0, %v29_v4  ;;  %v37_v4 = vld [vmem:[%s6093_s3 + $0x18] sm:$0xff] }
   0xa   :  { %64 = vmatpush.msra.mxu0 %v37_v4 }
  0x11   :  { %4295 = vmatmul.msk.f32.gmra.mxu1 %vm42_vm0, %v30_v5  ;;  %v36_v5 = vld [vmem:[%s6093_s3 + $0x10] sm:$0xff] }
  0x12   :  { %65 = vmatpush.msra.mxu0 %v36_v5 }
  0x14   :  { %66 = vmatpush.msra.mxu0 %v35_v6 }
  0x86   :  { %v122_v8 = vpop.f32.mrf.mxu1 }
  0x87   :  { %v4800_v9 = vadd.f32 %v122_v8, %v98_v7  ;;  %v31_v8 = vld [vmem:[%s6094_s1] sm:$0xff] }
  0x89   :  { %129 = vrot.lane.b32.xlu0 %v4800_v9, %s4704_s19 }
  0x8e   :  { %v125_v10 = vpop.f32.mrf.mxu1 }
  0x8f   :  { %v4804_v11 = vadd.f32 %v125_v10, %v98_v7  ;;  %v34_v7 = vld [vmem:[%s6093_s3] sm:$0xff]  ;;  %v32_v10 = vld [vmem:[%s6094_s1 + $0x8] sm:$0xff] }
  0x90   :  { %67 = vmatpush.msra.mxu0 %v34_v7 }
  0x91   :  { %157 = vrot.lane.b32.xlu0 %v4804_v11, %s4704_s19  ;;  %4291 = vmatmul.msk.f32.vlgmr.msra.gmra.mxu0 %vm42_vm0, %v31_v8 }
  0x99   :  { %285 = vrot.lane.b32.xlu0 %v4800_v9, %s4705_s20  ;;  %4292 = vmatmul.msk.f32.gmra.mxu0 %vm42_vm0, %v32_v10 }
  0xfb   :  { %v130_v12 = vpop.permute.xlu0 %129 }
  0xfc   :  { %4296 = vmatpush.xpose.msk.msra.mxu2 %vm131_vm1, %v130_v12  ;;  %v33_v12 = vld [vmem:[%s6094_s1 + $0x10] sm:$0xf] }
  0xfd   :  { %4293 = vmatmul.msk.f32.gmra.mxu0 %vm42_vm0, %v33_v12 }
  0xff   :  { %4297 = vmatmul.msk.f32.vlgmr.msra.gmra.mxu2 %vm131_vm1, %v4800_v9 }
 0x103   :  { %v158_v13 = vpop.permute.xlu0 %157 }
 0x104   :  { %4298 = vmatpush.xpose.msk.msra.mxu3 %vm131_vm1, %v158_v13 }
 0x107   :  { %4299 = vmatmul.msk.f32.vlgmr.msra.gmra.mxu3 %vm131_vm1, %v4804_v11 }
 0x10b   :  { %v286_v27 = vpop.permute.xlu0 %285 }
 0x182   :  { %v153_v14 = vpop.f32.mrf.mxu2 }
 0x183   :  { %v183_v15 = vsel %vm131_vm1, %v153_v14, -inf }
 0x184   :  { %184 = vmax.xlane.f32.xlu1 %v183_v15 }
 0x18a   :  { %v180_v16 = vpop.f32.mrf.mxu3 }
 0x18b   :  { %v186_v17 = vsel %vm131_vm1, %v180_v16, -inf }
 0x18c   :  { %187 = vmax.xlane.f32.xlu2 %v186_v17 }
 0x1a4   :  { %231 = vrot.lane.b32.xlu2 %v4800_v9, %s4706_s21 }
 0x1ac   :  { %257 = vrot.lane.b32.xlu2 %v4804_v11, %s4706_s21 }
 0x1b4   :  { %313 = vrot.lane.b32.xlu2 %v4804_v11, %s4705_s20 }
 0x1f7   :  { %v185_v18 = vpop.xlane.xlu1 %184 }
 0x1f8   :  { %v189_v19 = vsub.f32 %v153_v14, %v185_v18 }
 0x1fa   :  { %v191_v20 = vmul.f32 1.442695, %v189_v19 }
 0x1fc   :  { %4541 = vpow2.f32 %v191_v20 }
 0x1ff   :  { %v188_v21 = vpop.xlane.xlu2 %187 }
 0x200   :  { %v190_v22 = vsub.f32 %v180_v16, %v188_v21 }
 0x202   :  { %v4542_v23 = vpop.eup %4541  ;;  %v193_v24 = vmul.f32 1.442695, %v190_v22 }
 0x203   :  { %v195_v25 = vsel %vm131_vm1, %v4542_v23, 0.0 }
 0x204   :  { %4543 = vpow2.f32 %v193_v24  ;;  %196 = vadd.xlane.f32.xlu1 %v195_v25 }
 0x207   :  { %v232_v26 = vpop.permute.xlu2 %231 }
 0x208   :  { %252 = vmatpush.msrb.mxu2 %v232_v26  ;;  %v4540_v26 = vld [vmem:[%s6095_s4] ss:$0 sm:$0xff]  ;;  %s4712_s4 = smov 32  }
 0x20a   :  { %4302 = vmatpush.xpose.msk.msra.mxu2 %vm131_vm1, %v286_v27  ;;  %v4544_v28 = vpop.eup %4543  ;;  %v69_v27 = vpop.f32.mrf.mxu0 }
 0x20b   :  { %v198_v29 = vsel %vm131_vm1, %v4544_v28, 0.0 }
 0x20c   :  { %199 = vadd.xlane.f32.xlu0 %v198_v29 }
 0x20f   :  { %v258_v30 = vpop.permute.xlu2 %257 }
 0x210   :  { %278 = vmatpush.msrb.mxu3 %v258_v30 }
 0x217   :  { %v314_v31 = vpop.permute.xlu2 %313 }
 0x218   :  { %4304 = vmatpush.xpose.msk.msra.mxu3 %vm131_vm1, %v314_v31 }
 0x21d   :  { %283 = vrot.lane.b32.xlu1 %v4800_v9, %s4707_s22 }
 0x225   :  { %311 = vrot.lane.b32.xlu1 %v4804_v11, %s4707_s22 }
 0x277   :  { %v197_v32 = vpop.xlane.xlu1 %196 }
 0x278   :  { %4545 = vrcp.f32 %v197_v32  ;;  %v212_v37 = vand.u32 2147483648, %v197_v32  ;;  %v210_v39 = vand.u32 2147483647, %v197_v32  ;;  %vm206_vm3 = vweird.f32 %v197_v32 }
 0x27a   :  { %v213_v42 = vor.u32 1.1754944e-38, %v212_v37  ;;  %vm211_vm5 = vcmp.eq.f32.partialorder %v210_v39, 8.507059e+37 }
 0x27e   :  { %v4546_v33 = vpop.eup %4545 }
 0x27f   :  { %v202_v34 = vmul.f32 %v4546_v33, %v197_v32  ;;  %v200_v35 = vpop.xlane.xlu0 %199  ;;  %vm207_vm2 = vweird.f32 %v4546_v33  ;;  %v72_v32 = vpop.f32.mrf.mxu0 }
 0x280   :  { %4547 = vrcp.f32 %v200_v35  ;;  %vm208_vm4 = vmor %vm206_vm3, %vm207_vm2  ;;  %v227_v48 = vand.u32 2147483648, %v200_v35  ;;  %v225_v50 = vand.u32 2147483647, %v200_v35  ;;  %vm221_vm7 = vweird.f32 %v200_v35 }
 0x281   :  { %v203_v36 = vsub.f32 1.0, %v202_v34 }
 0x282   :  { %v228_v52 = vor.u32 1.1754944e-38, %v227_v48  ;;  %vm226_vm9 = vcmp.eq.f32.partialorder %v225_v50, 8.507059e+37 }
 0x283   :  { %v204_v38 = vmul.f32 %v4546_v33, %v203_v36 }
 0x285   :  { %v205_v40 = vadd.f32 %v4546_v33, %v204_v38 }
 0x286   :  { %v4548_v41 = vpop.eup %4547 }
 0x287   :  { %v217_v43 = vmul.f32 %v4548_v41, %v200_v35  ;;  %v209_v44 = vsel %vm208_vm4, %v4546_v33, %v205_v40  ;;  %vm222_vm6 = vweird.f32 %v4548_v41  ;;  %v4905_v33 = vadd.f32 %v4540_v26, %v72_v32  ;;  %v75_v38 = vpop.f32.mrf.mxu0 }
 0x288   :  { %v214_v45 = vsel %vm211_vm5, %v213_v42, %v209_v44  ;;  %vm223_vm8 = vmor %vm221_vm7, %vm222_vm6  ;;  %v4924_v39 = vadd.f32 %v4540_v26, %v75_v38 }
 0x289   :  { %v218_v46 = vsub.f32 1.0, %v217_v43  ;;  %v215_v47 = vmul.f32 %v4542_v23, %v214_v45  ;;  %v4908_v34 = vrot.slane %v4905_v33, 2  ;;  %987 = vst [vmem:[#allocation1 + $0x20] ss:$4 sm:$0xff] %v4905_v33  ;;  %v4914_v35 = vrot.slane %v4905_v33, 4 }
 0x28a   :  { %v4917_v36 = vrot.slane %v4905_v33, 6 }
 0x28b   :  { %v219_v49 = vmul.f32 %v4548_v41, %v218_v46  ;;  %4300 = vmatmul.msk.f32.vlgmr.msrb.gmra.mxu2 %vm131_vm1, %v215_v47 }
 0x28d   :  { %v220_v51 = vadd.f32 %v4548_v41, %v219_v49 }
 0x28f   :  { %v224_v53 = vsel %vm223_vm8, %v4548_v41, %v220_v51  ;;  %v284_v54 = vpop.permute.xlu1 %283 }
 0x290   :  { %v229_v55 = vsel %vm226_vm9, %v228_v52, %v224_v53  ;;  %v4926_v40 = vld.sshfl [vmem:[#allocation1 + $0x20] sm:$0xff pattern:$0x73625140] }
 0x291   :  { %v230_v56 = vmul.f32 %v4544_v28, %v229_v55  ;;  %v4888_v28 = vadd.f32 %v4540_v26, %v69_v27 }
 0x293   :  { %4301 = vmatmul.msk.f32.vlgmr.msrb.gmra.mxu3 %vm131_vm1, %v230_v56  ;;  %4303 = vmatmul.msk.f32.vlgmr.msra.gmra.mxu2 %vm131_vm1, %v284_v54  ;;  %v4891_v29 = vrot.slane %v4888_v28, 2  ;;  %v4894_v30 = vrot.slane %v4888_v28, 4  ;;  %v4897_v31 = vrot.slane %v4888_v28, 6  ;;  %979 = vst [vmem:[#allocation1] ss:$4 sm:$0xff] %v4888_v28 }
 0x295   :  { %981 = vst [vmem:[#allocation1 + $0x1] ss:$4 sm:$0xff] %v4891_v29 }
 0x296   :  { %983 = vst [vmem:[#allocation1 + $0x2] ss:$4 sm:$0xff] %v4894_v30 }
 0x297   :  { %v312_v57 = vpop.permute.xlu1 %311  ;;  %985 = vst [vmem:[#allocation1 + $0x3] ss:$4 sm:$0xff] %v4897_v31 }
 0x29b   :  { %4305 = vmatmul.msk.f32.vlgmr.msra.gmra.mxu3 %vm131_vm1, %v312_v57 }
 0x29e   :  { %v4919_v37 = vld.sshfl [vmem:[#allocation1] sm:$0xff pattern:$0x73625140] }
 0x29f   :  { %1017 = vst [vmem:[#allocation1] ss:$4 sm:$0xff] %v4908_v34 }
 0x2a0   :  { %1019 = vst [vmem:[#allocation1 + $0x1] ss:$4 sm:$0xff] %v4914_v35 }
 0x2a1   :  { %1021 = vst [vmem:[#allocation1 + $0x2] ss:$4 sm:$0xff] %v4917_v36 }
 0x2a2   :  { %1023 = vst [vmem:[#allocation1 + $0x3] ss:$4 sm:$0xff] %v4924_v39 }
 0x2a9   :  { %v4935_v41 = vld.sshfl [vmem:[#allocation1] sm:$0xff pattern:$0x73625140] }
 0x2aa   :  { %1104 = vst [vmem:[#allocation1] ss:$4 sm:$0xff] %v4888_v28 }
 0x2ab   :  { %1106 = vst [vmem:[#allocation1 + $0x1] ss:$4 sm:$0xff] %v4891_v29 }
 0x2ac   :  { %1108 = vst [vmem:[#allocation1 + $0x2] ss:$4 sm:$0xff] %v4894_v30 }
 0x2ad   :  { %1110 = vst [vmem:[#allocation1 + $0x3] ss:$4 sm:$0xff] %v4897_v31 }
 0x2b4   :  { %v4943_v42 = vld.sshfl [vmem:[#allocation1] sm:$0xff pattern:$0x73625140] }
 0x2b5   :  { %1146 = vst [vmem:[#allocation1] ss:$4 sm:$0xff] %v4908_v34 }
 0x2b6   :  { %1148 = vst [vmem:[#allocation1 + $0x1] ss:$4 sm:$0xff] %v4914_v35 }
 0x2b7   :  { %1150 = vst [vmem:[#allocation1 + $0x2] ss:$4 sm:$0xff] %v4917_v36 }
 0x2b8   :  { %1152 = vst [vmem:[#allocation1 + $0x3] ss:$4 sm:$0xff] %v4924_v39 }
 0x2bf   :  { %v4949_v43 = vld.sshfl [vmem:[#allocation1] sm:$0xff pattern:$0x73625140] }
 0x2c0   :  { %1189 = vst [vmem:[#allocation1] ss:$4 sm:$0xff] %v4888_v28 }
 0x2c1   :  { %1191 = vst [vmem:[#allocation1 + $0x1] ss:$4 sm:$0xff] %v4891_v29 }
 0x2c2   :  { %1193 = vst [vmem:[#allocation1 + $0x2] ss:$4 sm:$0xff] %v4894_v30 }
 0x2c3   :  { %1195 = vst [vmem:[#allocation1 + $0x3] ss:$4 sm:$0xff] %v4897_v31 }
 0x2ca   :  { %v4955_v44 = vld.sshfl [vmem:[#allocation1] sm:$0xff pattern:$0x73625140] }
 0x2cb   :  { %1232 = vst [vmem:[#allocation1] ss:$4 sm:$0xff] %v4908_v34 }
 0x2cc   :  { %1234 = vst [vmem:[#allocation1 + $0x1] ss:$4 sm:$0xff] %v4914_v35 }
 0x2cd   :  { %1236 = vst [vmem:[#allocation1 + $0x2] ss:$4 sm:$0xff] %v4917_v36 }
 0x2ce   :  { %1238 = vst [vmem:[#allocation1 + $0x3] ss:$4 sm:$0xff] %v4924_v39 }
 0x2d5   :  { %v4961_v45 = vld.sshfl [vmem:[#allocation1] sm:$0xff pattern:$0x73625140] }
 0x2d6   :  { %1321 = vst [vmem:[#allocation1] ss:$4 sm:$0xff] %v4888_v28 }
 0x2d7   :  { %1323 = vst [vmem:[#allocation1 + $0x1] ss:$4 sm:$0xff] %v4891_v29 }
 0x2d8   :  { %1325 = vst [vmem:[#allocation1 + $0x2] ss:$4 sm:$0xff] %v4894_v30 }
 0x2d9   :  { %1327 = vst [vmem:[#allocation1 + $0x3] ss:$4 sm:$0xff] %v4897_v31 }
 0x2e0   :  { %v4970_v47 = vld.sshfl [vmem:[#allocation1] sm:$0xff pattern:$0x73625140] }
 0x2e1   :  { %1362 = vst [vmem:[#allocation1] ss:$4 sm:$0xff] %v4908_v34 }
 0x2e2   :  { %1364 = vst [vmem:[#allocation1 + $0x1] ss:$4 sm:$0xff] %v4914_v35 }
 0x2e3   :  { %1366 = vst [vmem:[#allocation1 + $0x2] ss:$4 sm:$0xff] %v4917_v36 }
 0x2e4   :  { %1368 = vst [vmem:[#allocation1 + $0x3] ss:$4 sm:$0xff] %v4924_v39 }
 0x2eb   :  { %v4979_v49 = vld.sshfl [vmem:[#allocation1] sm:$0xff pattern:$0x73625140] }
 0x2ec   :  { %1471 = vst [vmem:[#allocation1] ss:$4 sm:$0xff] %v4888_v28 }
 0x2ed   :  { %1473 = vst [vmem:[#allocation1 + $0x1] ss:$4 sm:$0xff] %v4891_v29 }
 0x2ee   :  { %1475 = vst [vmem:[#allocation1 + $0x2] ss:$4 sm:$0xff] %v4894_v30 }
 0x2ef   :  { %1477 = vst [vmem:[#allocation1 + $0x3] ss:$4 sm:$0xff] %v4897_v31 }
 0x2f6   :  { %v4988_v55 = vld.sshfl [vmem:[#allocation1] sm:$0xff pattern:$0x73625140] }
 0x2f7   :  { %1514 = vst [vmem:[#allocation1] ss:$4 sm:$0xff] %v4908_v34 }
 0x2f8   :  { %1516 = vst [vmem:[#allocation1 + $0x1] ss:$4 sm:$0xff] %v4914_v35 }
 0x2f9   :  { %1518 = vst [vmem:[#allocation1 + $0x2] ss:$4 sm:$0xff] %v4917_v36 }
 0x2fa   :  { %1520 = vst [vmem:[#allocation1 + $0x3] ss:$4 sm:$0xff] %v4924_v39 }
 0x30e   :  { %v4836_v58 = vpop.f32.mrf.mxu2 }
 0x316   :  { %v4838_v59 = vpop.f32.mrf.mxu3  ;;  %v308_v60 = vpop.f32.mrf.mxu2 }
 0x317   :  { %v339_v61 = vsel %vm131_vm1, %v308_v60, -inf }
 0x318   :  { %340 = vmax.xlane.f32.xlu2 %v339_v61 }
 0x31e   :  { %v336_v62 = vpop.f32.mrf.mxu3 }
 0x31f   :  { %v342_v63 = vsel %vm131_vm1, %v336_v62, -inf }
 0x320   :  { %343 = vmax.xlane.f32.xlu0 %v342_v63 }
 0x330   :  { %507 = vrot.lane.b32.xlu2 %v4800_v9, %s4708_s11 }
 0x334   :  { %387 = vrot.lane.b32.xlu0 %v4800_v9, %s4709_s12 }
 0x338   :  { %413 = vrot.lane.b32.xlu2 %v4804_v11, %s4709_s12 }
 0x340   :  { %535 = vrot.lane.b32.xlu2 %v4804_v11, %s4708_s11 }
 0x348   :  { %698 = vrot.lane.b32.xlu2 %v4800_v9, %s4710_s16 }
 0x38b   :  { %v341_v13 = vpop.xlane.xlu2 %340 }
 0x38c   :  { %v345_v14 = vsub.f32 %v308_v60, %v341_v13 }
 0x38e   :  { %v347_v15 = vmul.f32 1.442695, %v345_v14  ;;  %v4998_v14 = vld.sshfl [vmem:[#allocation1] sm:$0xff pattern:$0x73625140] }
 0x38f   :  { %1603 = vst [vmem:[#allocation1] ss:$4 sm:$0xff] %v4888_v28 }
 0x390   :  { %4549 = vpow2.f32 %v347_v15  ;;  %1605 = vst [vmem:[#allocation1 + $0x1] ss:$4 sm:$0xff] %v4891_v29 }
 0x391   :  { %1607 = vst [vmem:[#allocation1 + $0x2] ss:$4 sm:$0xff] %v4894_v30 }
 0x392   :  { %1609 = vst [vmem:[#allocation1 + $0x3] ss:$4 sm:$0xff] %v4897_v31 }
 0x393   :  { %v508_v16 = vpop.permute.xlu2 %507  ;;  %v344_v17 = vpop.xlane.xlu0 %343 }
 0x394   :  { %v346_v18 = vsub.f32 %v336_v62, %v344_v17 }
 0x396   :  { %v4876_v19 = vpop.eup %4549  ;;  %v349_v20 = vmul.f32 1.442695, %v346_v18 }
 0x397   :  { %v351_v21 = vsel %vm131_vm1, %v4876_v19, 0.0 }
 0x398   :  { %4551 = vpow2.f32 %v349_v20  ;;  %352 = vadd.xlane.f32.xlu1 %v351_v21 }
 0x399   :  { %v5011_v26 = vld.sshfl [vmem:[#allocation1] sm:$0xff pattern:$0x73625140] }
 0x39a   :  { %1644 = vst [vmem:[#allocation1] ss:$4 sm:$0xff] %v4908_v34 }
 0x39b   :  { %v414_v22 = vpop.permute.xlu2 %413  ;;  %1646 = vst [vmem:[#allocation1 + $0x1] ss:$4 sm:$0xff] %v4914_v35 }
 0x39c   :  { %434 = vmatpush.msrb.mxu2 %v414_v22  ;;  %1648 = vst [vmem:[#allocation1 + $0x2] ss:$4 sm:$0xff] %v4917_v36 }
 0x39d   :  { %1650 = vst [vmem:[#allocation1 + $0x3] ss:$4 sm:$0xff] %v4924_v39 }
 0x39e   :  { %v4880_v23 = vpop.eup %4551 }
 0x39f   :  { %v354_v24 = vsel %vm131_vm1, %v4880_v23, 0.0 }
 0x3a0   :  { %355 = vadd.xlane.f32.xlu0 %v354_v24 }
 0x3a3   :  { %v536_v20 = vpop.permute.xlu2 %535 }
 0x3a6   :  { %v388_v25 = vpop.permute.xlu0 %387 }
 0x3a7   :  { %408 = vmatpush.msrb.mxu1 %v388_v25 }
 0x3a9   :  { %4312 = vmatpush.xpose.msk.msra.mxu1 %vm131_vm1, %v508_v16 }
 0x3ab   :  { %v699_v38 = vpop.permute.xlu2 %698 }
 0x3b1   :  { %505 = vrot.lane.b32.xlu1 %v4800_v9, %s4711_s18 }
 0x3b9   :  { %473 = vrot.lane.b32.xlu1 %v4785_v3, %s4712_s4  ;;  %v4929_v3 = vrot.slane %v4924_v39, 2 }
 0x3bb   :  { %1025 = vst [vmem:[#allocation1 + $0x20] ss:$4 sm:$0xff] %v4929_v3 }
 0x3c1   :  { %533 = vrot.lane.b32.xlu1 %v4804_v11, %s4711_s18 }
 0x3c2   :  { %v4967_v46 = vld.sshfl [vmem:[#allocation1 + $0x20] sm:$0xff pattern:$0x73625140] }
 0x3c3   :  { %1112 = vst [vmem:[#allocation1 + $0x20] ss:$4 sm:$0xff] %v4905_v33 }
 0x3c9   :  { %696 = vrot.lane.b32.xlu1 %v4800_v9, %s4713_s23 }
 0x3ca   :  { %v4976_v48 = vld.sshfl [vmem:[#allocation1 + $0x20] sm:$0xff pattern:$0x73625140] }
 0x3cb   :  { %1154 = vst [vmem:[#allocation1 + $0x20] ss:$4 sm:$0xff] %v4929_v3 }
 0x3d2   :  { %v4985_v51 = vld.sshfl [vmem:[#allocation1 + $0x20] sm:$0xff pattern:$0x73625140] }
 0x3d3   :  { %1197 = vst [vmem:[#allocation1 + $0x20] ss:$4 sm:$0xff] %v4905_v33 }
 0x3da   :  { %v4992_v60 = vld.sshfl [vmem:[#allocation1 + $0x20] sm:$0xff pattern:$0x73625140] }
 0x3db   :  { %1240 = vst [vmem:[#allocation1 + $0x20] ss:$4 sm:$0xff] %v4929_v3 }
 0x3e2   :  { %v5003_v18 = vld.sshfl [vmem:[#allocation1 + $0x20] sm:$0xff pattern:$0x73625140] }
 0x3e3   :  { %1329 = vst [vmem:[#allocation1 + $0x20] ss:$4 sm:$0xff] %v4905_v33 }
 0x3ea   :  { %v5015_v32 = vld.sshfl [vmem:[#allocation1 + $0x20] sm:$0xff pattern:$0x73625140] }
 0x3eb   :  { %1370 = vst [vmem:[#allocation1 + $0x20] ss:$4 sm:$0xff] %v4929_v3 }
 0x40b   :  { %v353_v50 = vpop.xlane.xlu1 %352 }
 0x40c   :  { %4553 = vrcp.f32 %v353_v50  ;;  %v368_v57 = vand.u32 2147483648, %v353_v50  ;;  %v366_v62 = vand.u32 2147483647, %v353_v50  ;;  %vm362_vm11 = vweird.f32 %v353_v50 }
 0x40e   :  { %v369_v5 = vor.u32 1.1754944e-38, %v368_v57  ;;  %vm367_vm13 = vcmp.eq.f32.partialorder %v366_v62, 8.507059e+37 }
 0x412   :  { %v4554_v52 = vpop.eup %4553 }
 0x413   :  { %v358_v53 = vmul.f32 %v4554_v52, %v353_v50  ;;  %v356_v54 = vpop.xlane.xlu0 %355  ;;  %vm363_vm10 = vweird.f32 %v4554_v52  ;;  %v5026_v50 = vld.sshfl [vmem:[#allocation1] sm:$0xff pattern:$0x73625140] }
 0x414   :  { %4555 = vrcp.f32 %v356_v54  ;;  %vm364_vm12 = vmor %vm362_vm11, %vm363_vm10  ;;  %v383_v13 = vand.u32 2147483648, %v356_v54  ;;  %v381_v16 = vand.u32 2147483647, %v356_v54  ;;  %vm377_vm15 = vweird.f32 %v356_v54  ;;  %1722 = vst [vmem:[#allocation1] ss:$4 sm:$0xff] %v4888_v28 }
 0x415   :  { %v359_v56 = vsub.f32 1.0, %v358_v53  ;;  %1724 = vst [vmem:[#allocation1 + $0x1] ss:$4 sm:$0xff] %v4891_v29 }
 0x416   :  { %vm382_vm3 = vcmp.eq.f32.partialorder %v381_v16, 8.507059e+37  ;;  %1726 = vst [vmem:[#allocation1 + $0x2] ss:$4 sm:$0xff] %v4894_v30 }
 0x417   :  { %v360_v61 = vmul.f32 %v4554_v52, %v359_v56  ;;  %1728 = vst [vmem:[#allocation1 + $0x3] ss:$4 sm:$0xff] %v4897_v31 }
 0x419   :  { %v361_v63 = vadd.f32 %v4554_v52, %v360_v61 }
 0x41a   :  { %v4556_v4 = vpop.eup %4555 }
 0x41b   :  { %v373_v6 = vmul.f32 %v4556_v4, %v356_v54  ;;  %v365_v7 = vsel %vm364_vm12, %v4554_v52, %v361_v63  ;;  %vm378_vm14 = vweird.f32 %v4556_v4 }
 0x41c   :  { %v370_v8 = vsel %vm367_vm13, %v369_v5, %v365_v7  ;;  %vm379_vm2 = vmor %vm377_vm15, %vm378_vm14 }
 0x41d   :  { %v374_v10 = vsub.f32 1.0, %v373_v6  ;;  %v371_v12 = vmul.f32 %v4876_v19, %v370_v8  ;;  %v384_v19 = vor.u32 1.1754944e-38, %v383_v13 }
 0x41e   :  { %v5037_v52 = vld.sshfl [vmem:[#allocation1] sm:$0xff pattern:$0x73625140] }
 0x41f   :  { %v375_v15 = vmul.f32 %v4556_v4, %v374_v10  ;;  %4306 = vmatmul.msk.f32.vlgmr.msrb.gmra.mxu1 %vm131_vm1, %v371_v12  ;;  %1765 = vst [vmem:[#allocation1] ss:$4 sm:$0xff] %v4908_v34 }
 0x420   :  { %1767 = vst [vmem:[#allocation1 + $0x1] ss:$4 sm:$0xff] %v4914_v35 }
 0x421   :  { %v376_v17 = vadd.f32 %v4556_v4, %v375_v15  ;;  %1769 = vst [vmem:[#allocation1 + $0x2] ss:$4 sm:$0xff] %v4917_v36 }
 0x422   :  { %1771 = vst [vmem:[#allocation1 + $0x3] ss:$4 sm:$0xff] %v4924_v39 }
 0x423   :  { %v380_v21 = vsel %vm379_vm2, %v4556_v4, %v376_v17  ;;  %v506_v22 = vpop.permute.xlu1 %505 }
 0x424   :  { %v385_v24 = vsel %vm382_vm3, %v384_v19, %v380_v21 }
 0x425   :  { %v386_v25 = vmul.f32 %v4880_v23, %v385_v24 }
 0x427   :  { %4307 = vmatmul.msk.f32.vlgmr.msrb.gmra.mxu2 %vm131_vm1, %v386_v25  ;;  %4313 = vmatmul.msk.f32.vlgmr.msra.gmra.mxu1 %vm131_vm1, %v506_v22 }
 0x429   :  { %v5046_v54 = vld.sshfl [vmem:[#allocation1] sm:$0xff pattern:$0x73625140] }
 0x42a   :  { %1854 = vst [vmem:[#allocation1] ss:$4 sm:$0xff] %v4888_v28 }
 0x42b   :  { %v474_v27 = vpop.permute.xlu1 %473  ;;  %1856 = vst [vmem:[#allocation1 + $0x1] ss:$4 sm:$0xff] %v4891_v29 }
 0x42c   :  { %497 = vmatpush.msrb.mxu0 %v474_v27  ;;  %4488 = vmatpush.msra.mxu2 %v474_v27  ;;  %1858 = vst [vmem:[#allocation1 + $0x2] ss:$4 sm:$0xff] %v4894_v30 }
 0x42d   :  { %4310 = vmatmul.msk.f32.vlgmr.msrb.gmra.mxu0 %vm131_vm1, %v4836_v58  ;;  %v5031_v58 = vld.sshfl [vmem:[#allocation1 + $0x20] sm:$0xff pattern:$0x73625140]  ;;  %1860 = vst [vmem:[#allocation1 + $0x3] ss:$4 sm:$0xff] %v4897_v31 }
 0x42e   :  { %4314 = vmatpush.xpose.msk.msrb.mxu2 %vm131_vm1, %v536_v20  ;;  %4320 = vmatpush.xpose.msk.msra.mxu0 %vm131_vm1, %v699_v38  ;;  %1479 = vst [vmem:[#allocation1 + $0x20] ss:$4 sm:$0xff] %v4905_v33 }
 0x42f   :  { %4311 = vmatmul.msk.f32.vlgmr.msra.gmra.mxu2 %vm131_vm1, %v4838_v59 }
 0x433   :  { %v534_v23 = vpop.permute.xlu1 %533 }
 0x434   :  { %v5055_v57 = vld.sshfl [vmem:[#allocation1] sm:$0xff pattern:$0x73625140] }
 0x435   :  { %v5041_v53 = vld.sshfl [vmem:[#allocation1 + $0x20] sm:$0xff pattern:$0x73625140]  ;;  %1895 = vst [vmem:[#allocation1] ss:$4 sm:$0xff] %v4908_v34 }
 0x436   :  { %1522 = vst [vmem:[#allocation1 + $0x20] ss:$4 sm:$0xff] %v4929_v3 }
 0x437   :  { %4315 = vmatmul.msk.f32.vlgmr.msrb.gmra.mxu2 %vm131_vm1, %v534_v23  ;;  %1897 = vst [vmem:[#allocation1 + $0x1] ss:$4 sm:$0xff] %v4914_v35 }
 0x438   :  { %1899 = vst [vmem:[#allocation1 + $0x2] ss:$4 sm:$0xff] %v4917_v36 }
 0x439   :  { %1901 = vst [vmem:[#allocation1 + $0x3] ss:$4 sm:$0xff] %v4924_v39 }
 0x43b   :  { %v697_v59 = vpop.permute.xlu1 %696 }
 0x43c   :  { %4321 = vmatmul.msk.f32.vlgmr.msra.gmra.mxu0 %vm131_vm1, %v697_v59 }
 0x43d   :  { %v5050_v56 = vld.sshfl [vmem:[#allocation1 + $0x20] sm:$0xff pattern:$0x73625140] }
 0x43e   :  { %1611 = vst [vmem:[#allocation1 + $0x20] ss:$4 sm:$0xff] %v4905_v33 }
 0x440   :  { %v5064_v62 = vld.sshfl [vmem:[#allocation1] sm:$0xff pattern:$0x73625140] }
 0x441   :  { %3046 = vst [vmem:[#allocation1] ss:$4 sm:$0xff] %v4888_v28 }
 0x442   :  { %3048 = vst [vmem:[#allocation1 + $0x1] ss:$4 sm:$0xff] %v4891_v29 }
 0x443   :  { %3050 = vst [vmem:[#allocation1 + $0x2] ss:$4 sm:$0xff] %v4894_v30 }
 0x444   :  { %3052 = vst [vmem:[#allocation1 + $0x3] ss:$4 sm:$0xff] %v4897_v31 }
 0x445   :  { %v5059_v61 = vld.sshfl [vmem:[#allocation1 + $0x20] sm:$0xff pattern:$0x73625140] }
 0x446   :  { %1652 = vst [vmem:[#allocation1 + $0x20] ss:$4 sm:$0xff] %v4929_v3 }
 0x44b   :  { %v5073_v4 = vld.sshfl [vmem:[#allocation1] sm:$0xff pattern:$0x73625140] }
 0x44c   :  { %3088 = vst [vmem:[#allocation1] ss:$4 sm:$0xff] %v4908_v34 }
 0x44d   :  { %v5068_v63 = vld.sshfl [vmem:[#allocation1 + $0x20] sm:$0xff pattern:$0x73625140]  ;;  %3090 = vst [vmem:[#allocation1 + $0x1] ss:$4 sm:$0xff] %v4914_v35 }
 0x44e   :  { %1730 = vst [vmem:[#allocation1 + $0x20] ss:$4 sm:$0xff] %v4905_v33 }
 0x44f   :  { %3092 = vst [vmem:[#allocation1 + $0x2] ss:$4 sm:$0xff] %v4917_v36 }
 0x450   :  { %3094 = vst [vmem:[#allocation1 + $0x3] ss:$4 sm:$0xff] %v4924_v39 }
 0x455   :  { %v5077_v5 = vld.sshfl [vmem:[#allocation1 + $0x20] sm:$0xff pattern:$0x73625140] }
 0x456   :  { %1773 = vst [vmem:[#allocation1 + $0x20] ss:$4 sm:$0xff] %v4929_v3 }
 0x457   :  { %v5082_v6 = vld.sshfl [vmem:[#allocation1] sm:$0xff pattern:$0x73625140] }
 0x458   :  { %6099 = vst [vmem:[#allocation2_spill] sm:$0xff] %v5082_v6 }
 0x459   :  { %3178 = vst [vmem:[#allocation1] ss:$4 sm:$0xff] %v4888_v28 }
 0x45a   :  { %3180 = vst [vmem:[#allocation1 + $0x1] ss:$4 sm:$0xff] %v4891_v29 }
 0x45b   :  { %3182 = vst [vmem:[#allocation1 + $0x2] ss:$4 sm:$0xff] %v4894_v30 }
 0x45c   :  { %3184 = vst [vmem:[#allocation1 + $0x3] ss:$4 sm:$0xff] %v4897_v31 }
 0x45d   :  { %v5086_v7 = vld.sshfl [vmem:[#allocation1 + $0x20] sm:$0xff pattern:$0x73625140] }
 0x45e   :  { %1862 = vst [vmem:[#allocation1 + $0x20] ss:$4 sm:$0xff] %v4905_v33 }
 0x463   :  { %v5091_v8 = vld.sshfl [vmem:[#allocation1] sm:$0xff pattern:$0x73625140] }
 0x464   :  { %6100 = vst [vmem:[#allocation3_spill] sm:$0xff] %v5091_v8 }
 0x465   :  { %3219 = vst [vmem:[#allocation1] ss:$4 sm:$0xff] %v4908_v34  ;;  %v5095_v10 = vld.sshfl [vmem:[#allocation1 + $0x20] sm:$0xff pattern:$0x73625140] }
 0x466   :  { %3221 = vst [vmem:[#allocation1 + $0x1] ss:$4 sm:$0xff] %v4914_v35 }
 0x467   :  { %3223 = vst [vmem:[#allocation1 + $0x2] ss:$4 sm:$0xff] %v4917_v36 }
 0x468   :  { %3225 = vst [vmem:[#allocation1 + $0x3] ss:$4 sm:$0xff] %v4924_v39 }
 0x469   :  { %1903 = vst [vmem:[#allocation1 + $0x20] ss:$4 sm:$0xff] %v4929_v3 }
 0x46f   :  { %v5100_v12 = vld.sshfl [vmem:[#allocation1] sm:$0xff pattern:$0x73625140] }
 0x470   :  { %6101 = vst [vmem:[#allocation4_spill] sm:$0xff] %v5100_v12  ;;  %v5104_v13 = vld.sshfl [vmem:[#allocation1 + $0x20] sm:$0xff pattern:$0x73625140] }
 0x471   :  { %3262 = vst [vmem:[#allocation1] ss:$4 sm:$0xff] %v4888_v28 }
 0x472   :  { %3264 = vst [vmem:[#allocation1 + $0x1] ss:$4 sm:$0xff] %v4891_v29 }
 0x473   :  { %3266 = vst [vmem:[#allocation1 + $0x2] ss:$4 sm:$0xff] %v4894_v30 }
 0x474   :  { %3268 = vst [vmem:[#allocation1 + $0x3] ss:$4 sm:$0xff] %v4897_v31 }
 0x475   :  { %3054 = vst [vmem:[#allocation1 + $0x20] ss:$4 sm:$0xff] %v4905_v33 }
 0x47b   :  { %v5109_v15 = vld.sshfl [vmem:[#allocation1] sm:$0xff pattern:$0x73625140] }
 0x47c   :  { %3305 = vst [vmem:[#allocation1] ss:$4 sm:$0xff] %v4908_v34  ;;  %v5113_v16 = vld.sshfl [vmem:[#allocation1 + $0x20] sm:$0xff pattern:$0x73625140] }
 0x47d   :  { %3307 = vst [vmem:[#allocation1 + $0x1] ss:$4 sm:$0xff] %v4914_v35 }
 0x47e   :  { %3309 = vst [vmem:[#allocation1 + $0x2] ss:$4 sm:$0xff] %v4917_v36 }
 0x47f   :  { %3311 = vst [vmem:[#allocation1 + $0x3] ss:$4 sm:$0xff] %v4924_v39 }
 0x480   :  { %3096 = vst [vmem:[#allocation1 + $0x20] ss:$4 sm:$0xff] %v4929_v3 }
 0x486   :  { %v5120_v19 = vld.sshfl [vmem:[#allocation1] sm:$0xff pattern:$0x73625140] }
 0x487   :  { %3394 = vst [vmem:[#allocation1] ss:$4 sm:$0xff] %v4888_v28  ;;  %v5128_v22 = vld.sshfl [vmem:[#allocation1 + $0x20] sm:$0xff pattern:$0x73625140] }
 0x488   :  { %3396 = vst [vmem:[#allocation1 + $0x1] ss:$4 sm:$0xff] %v4891_v29 }
 0x489   :  { %6102 = vst [vmem:[#allocation5_spill] sm:$0xff] %v5128_v22 }
 0x48a   :  { %3398 = vst [vmem:[#allocation1 + $0x2] ss:$4 sm:$0xff] %v4894_v30 }
 0x48b   :  { %3400 = vst [vmem:[#allocation1 + $0x3] ss:$4 sm:$0xff] %v4897_v31 }
 0x48c   :  { %3186 = vst [vmem:[#allocation1 + $0x20] ss:$4 sm:$0xff] %v4905_v33 }
 0x492   :  { %v5135_v25 = vld.sshfl [vmem:[#allocation1] sm:$0xff pattern:$0x73625140] }
 0x493   :  { %6103 = vst [vmem:[#allocation6_spill] sm:$0xff] %v5135_v25  ;;  %v5139_v27 = vld.sshfl [vmem:[#allocation1 + $0x20] sm:$0xff pattern:$0x73625140] }
 0x494   :  { %3435 = vst [vmem:[#allocation1] ss:$4 sm:$0xff] %v4908_v34 }
 0x495   :  { %3437 = vst [vmem:[#allocation1 + $0x1] ss:$4 sm:$0xff] %v4914_v35 }
 0x496   :  { %6104 = vst [vmem:[#allocation7_spill] sm:$0xff] %v5139_v27 }
 0x497   :  { %3439 = vst [vmem:[#allocation1 + $0x2] ss:$4 sm:$0xff] %v4917_v36 }
 0x498   :  { %3441 = vst [vmem:[#allocation1 + $0x3] ss:$4 sm:$0xff] %v4924_v39 }
 0x499   :  { %3227 = vst [vmem:[#allocation1 + $0x20] ss:$4 sm:$0xff] %v4929_v3 }
 0x49c   :  { %v5117_v17 = vpop.f32.mrf.mxu1 }
 0x49f   :  { %v5146_v23 = vld.sshfl [vmem:[#allocation1] sm:$0xff pattern:$0x73625140] }
 0x4a0   :  { %6105 = vst [vmem:[#allocation8_spill] sm:$0xff] %v5146_v23  ;;  %v5156_v12 = vld.sshfl [vmem:[#allocation1 + $0x20] sm:$0xff pattern:$0x73625140] }
 0x4a1   :  { %3544 = vst [vmem:[#allocation1] ss:$4 sm:$0xff] %v4888_v28 }
 0x4a2   :  { %3546 = vst [vmem:[#allocation1 + $0x1] ss:$4 sm:$0xff] %v4891_v29 }
 0x4a3   :  { %6106 = vst [vmem:[#allocation9_spill] sm:$0xff] %v5156_v12 }
 0x4a4   :  { %v5123_v20 = vpop.f32.mrf.mxu1  ;;  %3548 = vst [vmem:[#allocation1 + $0x2] ss:$4 sm:$0xff] %v4894_v30 }
 0x4a5   :  { %v561_v21 = vsel %vm131_vm1, %v5123_v20, -inf  ;;  %3550 = vst [vmem:[#allocation1 + $0x3] ss:$4 sm:$0xff] %v4897_v31 }
 0x4a6   :  { %562 = vmax.xlane.f32.xlu0 %v561_v21  ;;  %3270 = vst [vmem:[#allocation1 + $0x20] ss:$4 sm:$0xff] %v4905_v33 }
 0x4aa   :  { %v5133_v24 = vpop.f32.mrf.mxu2 }
 0x4ac   :  { %v5163_v23 = vld.sshfl [vmem:[#allocation1] sm:$0xff pattern:$0x73625140] }
 0x4ad   :  { %6107 = vst [vmem:[#allocation10_spill] sm:$0xff] %v5163_v23  ;;  %v5165_v25 = vld.sshfl [vmem:[#allocation1 + $0x20] sm:$0xff pattern:$0x73625140] }
 0x4ae   :  { %6108 = vst [vmem:[#allocation11_spill] sm:$0xff] %v5165_v25 }
 0x4af   :  { %3587 = vst [vmem:[#allocation1] ss:$4 sm:$0xff] %v4908_v34 }
 0x4b0   :  { %3313 = vst [vmem:[#allocation1 + $0x20] ss:$4 sm:$0xff] %v4929_v3 }
 0x4b1   :  { %3589 = vst [vmem:[#allocation1 + $0x1] ss:$4 sm:$0xff] %v4914_v35 }
 0x4b2   :  { %v5143_v38 = vpop.f32.mrf.mxu2  ;;  %3591 = vst [vmem:[#allocation1 + $0x2] ss:$4 sm:$0xff] %v4917_v36 }
 0x4b3   :  { %3593 = vst [vmem:[#allocation1 + $0x3] ss:$4 sm:$0xff] %v4924_v39 }
 0x4ba   :  { %609 = vrot.lane.b32.xlu0 %v4800_v9, %s4714_s24  ;;  %v5151_v59 = vpop.f32.mrf.mxu2  ;;  %v5175_v12 = vld.sshfl [vmem:[#allocation1] sm:$0xff pattern:$0x73625140] }
 0x4bb   :  { %v564_v21 = vsel %vm131_vm1, %v5151_v59, -inf  ;;  %6109 = vst [vmem:[#allocation12_spill] sm:$0xff] %v5175_v12  ;;  %v5192_v12 = vpop.f32.mrf.mxu0 }
 0x4bc   :  { %565 = vmax.xlane.f32.xlu1 %v564_v21  ;;  %v5172_v21 = vld.sshfl [vmem:[#allocation1 + $0x20] sm:$0xff pattern:$0x73625140]  ;;  %3676 = vst [vmem:[#allocation1] ss:$4 sm:$0xff] %v4888_v28 }
 0x4bd   :  { %3402 = vst [vmem:[#allocation1 + $0x20] ss:$4 sm:$0xff] %v4905_v33 }
 0x4be   :  { %3678 = vst [vmem:[#allocation1 + $0x1] ss:$4 sm:$0xff] %v4891_v29 }
 0x4bf   :  { %3680 = vst [vmem:[#allocation1 + $0x2] ss:$4 sm:$0xff] %v4894_v30 }
 0x4c0   :  { %3682 = vst [vmem:[#allocation1 + $0x3] ss:$4 sm:$0xff] %v4897_v31 }
 0x4c2   :  { %726 = vrot.lane.b32.xlu0 %v4804_v11, %s4710_s16 }
 0x4c4   :  { %v5181_v23 = vld.sshfl [vmem:[#allocation1 + $0x20] sm:$0xff pattern:$0x73625140] }
 0x4c5   :  { %6110 = vst [vmem:[#allocation13_spill] sm:$0xff] %v5181_v23 }
 0x4c6   :  { %3443 = vst [vmem:[#allocation1 + $0x20] ss:$4 sm:$0xff] %v4929_v3 }
 0x4c7   :  { %v5184_v27 = vld.sshfl [vmem:[#allocation1] sm:$0xff pattern:$0x73625140] }
 0x4c8   :  { %6111 = vst [vmem:[#allocation14_spill] sm:$0xff] %v5184_v27  ;;  %v721_v27 = vpop.f32.mrf.mxu0 }
 0x4c9   :  { %3717 = vst [vmem:[#allocation1] ss:$4 sm:$0xff] %v4908_v34 }
 0x4ca   :  { %3719 = vst [vmem:[#allocation1 + $0x1] ss:$4 sm:$0xff] %v4914_v35 }
 0x4cb   :  { %3721 = vst [vmem:[#allocation1 + $0x2] ss:$4 sm:$0xff] %v4917_v36 }
 0x4cc   :  { %3723 = vst [vmem:[#allocation1 + $0x3] ss:$4 sm:$0xff] %v4924_v39 }
 0x4cd   :  { %v5187_v8 = vld.sshfl [vmem:[#allocation1 + $0x20] sm:$0xff pattern:$0x73625140] }
 0x4ce   :  { %6112 = vst [vmem:[#allocation15_spill] sm:$0xff] %v5187_v8  ;;  %v752_v8 = vsel %vm131_vm1, %v721_v27, -inf }
 0x4cf   :  { %3552 = vst [vmem:[#allocation1 + $0x20] ss:$4 sm:$0xff] %v4905_v33 }
 0x4d3   :  { %v5198_v23 = vld.sshfl [vmem:[#allocation1] sm:$0xff pattern:$0x73625140] }
 0x4d4   :  { %6114 = vst [vmem:[#allocation17_spill] sm:$0xff] %v5198_v23 }
 0x4d5   :  { %3795 = vst [vmem:[#allocation1] ss:$4 sm:$0xff] %v4888_v28 }
 0x4d6   :  { %v5195_v6 = vld.sshfl [vmem:[#allocation1 + $0x20] sm:$0xff pattern:$0x73625140]  ;;  %3797 = vst [vmem:[#allocation1 + $0x1] ss:$4 sm:$0xff] %v4891_v29 }
 0x4d7   :  { %6113 = vst [vmem:[#allocation16_spill] sm:$0xff] %v5195_v6 }
 0x4d8   :  { %3595 = vst [vmem:[#allocation1 + $0x20] ss:$4 sm:$0xff] %v4929_v3 }
 0x4d9   :  { %3799 = vst [vmem:[#allocation1 + $0x2] ss:$4 sm:$0xff] %v4894_v30 }
 0x4da   :  { %3801 = vst [vmem:[#allocation1 + $0x3] ss:$4 sm:$0xff] %v4897_v31 }
 0x4df   :  { %v5205_v22 = vld.sshfl [vmem:[#allocation1 + $0x20] sm:$0xff pattern:$0x73625140] }
 0x4e0   :  { %3684 = vst [vmem:[#allocation1 + $0x20] ss:$4 sm:$0xff] %v4905_v33 }
 0x4e1   :  { %v5208_v6 = vld.sshfl [vmem:[#allocation1] sm:$0xff pattern:$0x73625140] }
 0x4e2   :  { %6115 = vst [vmem:[#allocation18_spill] sm:$0xff] %v5208_v6 }
 0x4e3   :  { %3838 = vst [vmem:[#allocation1] ss:$4 sm:$0xff] %v4908_v34 }
 0x4e4   :  { %3840 = vst [vmem:[#allocation1 + $0x1] ss:$4 sm:$0xff] %v4914_v35 }
 0x4e5   :  { %3842 = vst [vmem:[#allocation1 + $0x2] ss:$4 sm:$0xff] %v4917_v36 }
 0x4e6   :  { %3844 = vst [vmem:[#allocation1 + $0x3] ss:$4 sm:$0xff] %v4924_v39 }
 0x4e7   :  { %v5212_v23 = vld.sshfl [vmem:[#allocation1 + $0x20] sm:$0xff pattern:$0x73625140] }
 0x4e8   :  { %3725 = vst [vmem:[#allocation1 + $0x20] ss:$4 sm:$0xff] %v4929_v3 }
 0x4ec   :  { %753 = vmax.xlane.f32.xlu0 %v752_v8 }
 0x4ed   :  { %v5220_v8 = vld.sshfl [vmem:[#allocation1] sm:$0xff pattern:$0x73625140] }
 0x4ee   :  { %6117 = vst [vmem:[#allocation20_spill] sm:$0xff] %v5220_v8 }
 0x4ef   :  { %v5217_v25 = vld.sshfl [vmem:[#allocation1 + $0x20] sm:$0xff pattern:$0x73625140]  ;;  %3927 = vst [vmem:[#allocation1] ss:$4 sm:$0xff] %v4888_v28 }
 0x4f0   :  { %6116 = vst [vmem:[#allocation19_spill] sm:$0xff] %v5217_v25 }
 0x4f1   :  { %3803 = vst [vmem:[#allocation1 + $0x20] ss:$4 sm:$0xff] %v4905_v33 }
 0x4f2   :  { %3929 = vst [vmem:[#allocation1 + $0x1] ss:$4 sm:$0xff] %v4891_v29 }
 0x4f3   :  { %3931 = vst [vmem:[#allocation1 + $0x2] ss:$4 sm:$0xff] %v4894_v30 }
 0x4f4   :  { %3933 = vst [vmem:[#allocation1 + $0x3] ss:$4 sm:$0xff] %v4897_v31 }
 0x4f8   :  { %v5228_v6 = vld.sshfl [vmem:[#allocation1 + $0x20] sm:$0xff pattern:$0x73625140] }
 0x4f9   :  { %6118 = vst [vmem:[#allocation21_spill] sm:$0xff] %v5228_v6 }
 0x4fa   :  { %3846 = vst [vmem:[#allocation1 + $0x20] ss:$4 sm:$0xff] %v4929_v3 }
 0x4fb   :  { %v5231_v25 = vld.sshfl [vmem:[#allocation1] sm:$0xff pattern:$0x73625140] }
 0x4fc   :  { %6119 = vst [vmem:[#allocation22_spill] sm:$0xff] %v5231_v25 }
 0x4fd   :  { %3968 = vst [vmem:[#allocation1] ss:$4 sm:$0xff] %v4908_v34 }
 0x4fe   :  { %3970 = vst [vmem:[#allocation1 + $0x1] ss:$4 sm:$0xff] %v4914_v35 }
 0x4ff   :  { %3972 = vst [vmem:[#allocation1 + $0x2] ss:$4 sm:$0xff] %v4917_v36 }
 0x500   :  { %440 = vrot.lane.b32.xlu0 %v4779_v2, %s4712_s4  ;;  %3974 = vst [vmem:[#allocation1 + $0x3] ss:$4 sm:$0xff] %v4924_v39 }
 0x501   :  { %v5236_v28 = vld.sshfl [vmem:[#allocation1 + $0x20] sm:$0xff pattern:$0x73625140] }
 0x502   :  { %3935 = vst [vmem:[#allocation1 + $0x20] ss:$4 sm:$0xff] %v4905_v33 }
 0x509   :  { %v5240_v2 = vld.sshfl [vmem:[#allocation1 + $0x20] sm:$0xff pattern:$0x73625140] }
 0x50a   :  { %6120 = vst [vmem:[#allocation23_spill] sm:$0xff] %v5240_v2 }
 0x50b   :  { %3976 = vst [vmem:[#allocation1 + $0x20] ss:$4 sm:$0xff] %v4929_v3 }
 0x519   :  { %v563_v29 = vpop.xlane.xlu0 %562 }
 0x51a   :  { %v567_v30 = vsub.f32 %v5123_v20, %v563_v29 }
 0x51c   :  { %v569_v31 = vmul.f32 1.442695, %v567_v30 }
 0x51e   :  { %4557 = vpow2.f32 %v569_v31 }
 0x524   :  { %v4558_v34 = vpop.eup %4557 }
 0x525   :  { %v573_v35 = vsel %vm131_vm1, %v4558_v34, 0.0 }
 0x526   :  { %574 = vadd.xlane.f32.xlu2 %v573_v35 }
 0x52c   :  { %v610_v36 = vpop.permute.xlu0 %609 }
 0x52d   :  { %630 = vmatpush.msrb.mxu1 %v610_v36 }
 0x52f   :  { %v566_v33 = vpop.xlane.xlu1 %565 }
 0x530   :  { %v568_v20 = vsub.f32 %v5151_v59, %v566_v33 }
 0x532   :  { %v571_v30 = vmul.f32 1.442695, %v568_v20 }
 0x534   :  { %v727_v25 = vpop.permute.xlu0 %726 }
 0x535   :  { %4322 = vmatpush.xpose.msk.msra.mxu1 %vm131_vm1, %v727_v25 }
 0x53e   :  { %724 = vrot.lane.b32.xlu2 %v4804_v11, %s4713_s23 }
 0x546   :  { %800 = vrot.lane.b32.xlu2 %v4800_v9, %s4715_s25 }
 0x55f   :  { %v754_v39 = vpop.xlane.xlu0 %753 }
 0x560   :  { %v758_v3 = vsub.f32 %v721_v27, %v754_v39 }
 0x562   :  { %v760_v29 = vmul.f32 1.442695, %v758_v3 }
 0x564   :  { %4559 = vpow2.f32 %v760_v29 }
 0x565   :  { %4561 = vpow2.f32 %v571_v30 }
 0x56a   :  { %v5251_v31 = vpop.eup %4559 }
 0x56b   :  { %v764_v25 = vsel %vm131_vm1, %v5251_v31, 0.0  ;;  %v4562_v35 = vpop.eup %4561 }
 0x56c   :  { %765 = vadd.xlane.f32.xlu1 %v764_v25  ;;  %v576_v9 = vsel %vm131_vm1, %v4562_v35, 0.0 }
 0x572   :  { %v441_v36 = vpop.permute.xlu0 %440 }
 0x573   :  { %464 = vmatpush.msrb.mxu3 %v441_v36 }
 0x574   :  { %577 = vadd.xlane.f32.xlu1 %v576_v9  ;;  %4308 = vmatmul.msk.f32.vlgmr.msrb.gmra.mxu3 %vm131_vm1, %v5117_v17 }
 0x57c   :  { %4309 = vmatmul.msk.f32.gmra.mxu3 %vm131_vm1, %v5133_v24 }
 0x58d   :  { %635 = vrot.lane.b32.xlu1 %v4804_v11, %s4714_s24 }
 0x595   :  { %662 = vrot.lane.b32.xlu1 %v4773_v1, %s4712_s4 }
 0x599   :  { %v575_v27 = vpop.xlane.xlu2 %574 }
 0x59a   :  { %4563 = vrcp.f32 %v575_v27  ;;  %v590_v3 = vand.u32 2147483648, %v575_v27  ;;  %v588_v17 = vand.u32 2147483647, %v575_v27  ;;  %vm584_vm5 = vweird.f32 %v575_v27 }
 0x59c   :  { %v591_v29 = vor.u32 1.1754944e-38, %v590_v3  ;;  %vm589_vm7 = vcmp.eq.f32.partialorder %v588_v17, 8.507059e+37 }
 0x59d   :  { %853 = vrot.lane.b32.xlu1 %v4768_v0, %s4712_s4 }
 0x5a0   :  { %v4564_v59 = vpop.eup %4563 }
 0x5a1   :  { %v580_v33 = vmul.f32 %v4564_v59, %v575_v27  ;;  %vm585_vm4 = vweird.f32 %v4564_v59  ;;  %v725_v0 = vpop.permute.xlu2 %724 }
 0x5a2   :  { %vm586_vm6 = vmor %vm584_vm5, %vm585_vm4 }
 0x5a3   :  { %v581_v39 = vsub.f32 1.0, %v580_v33 }
 0x5a5   :  { %v582_v20 = vmul.f32 %v4564_v59, %v581_v39  ;;  %826 = vrot.lane.b32.xlu1 %v4804_v11, %s4715_s25 }
 0x5a7   :  { %v583_v24 = vadd.f32 %v4564_v59, %v582_v20 }
 0x5a9   :  { %v587_v1 = vsel %vm586_vm6, %v4564_v59, %v583_v24 }
 0x5aa   :  { %v592_v30 = vsel %vm589_vm7, %v591_v29, %v587_v1 }
 0x5ab   :  { %v593_v25 = vmul.f32 %v4558_v34, %v592_v30 }
 0x5ad   :  { %4316 = vmatmul.msk.f32.vlgmr.msrb.gmra.mxu1 %vm131_vm1, %v593_v25 }
 0x5b5   :  { %4323 = vmatmul.msk.f32.vlgmr.msra.gmra.mxu1 %vm131_vm1, %v725_v0 }
 0x5df   :  { %v766_v36 = vpop.xlane.xlu1 %765 }
 0x5e0   :  { %4565 = vrcp.f32 %v766_v36  ;;  %v781_v0 = vand.u32 2147483648, %v766_v36  ;;  %vm775_vm13 = vweird.f32 %v766_v36  ;;  %v779_v8 = vand.u32 2147483647, %v766_v36 }
 0x5e2   :  { %vm780_vm15 = vcmp.eq.f32.partialorder %v779_v8, 8.507059e+37 }
 0x5e6   :  { %v4566_v33 = vpop.eup %4565 }
 0x5e7   :  { %v578_v9 = vpop.xlane.xlu1 %577  ;;  %v771_v20 = vmul.f32 %v4566_v33, %v766_v36  ;;  %vm776_vm12 = vweird.f32 %v4566_v33 }
 0x5e8   :  { %4567 = vrcp.f32 %v578_v9  ;;  %v605_v17 = vand.u32 2147483648, %v578_v9  ;;  %vm599_vm9 = vweird.f32 %v578_v9  ;;  %v603_v34 = vand.u32 2147483647, %v578_v9  ;;  %vm777_vm14 = vmor %vm775_vm13, %vm776_vm12 }
 0x5e9   :  { %v772_v3 = vsub.f32 1.0, %v771_v20 }
 0x5ea   :  { %v606_v1 = vor.u32 1.1754944e-38, %v605_v17  ;;  %vm604_vm11 = vcmp.eq.f32.partialorder %v603_v34, 8.507059e+37 }
 0x5eb   :  { %v773_v24 = vmul.f32 %v4566_v33, %v772_v3 }
 0x5ed   :  { %v774_v25 = vadd.f32 %v4566_v33, %v773_v24 }
 0x5ee   :  { %v4568_v39 = vpop.eup %4567 }
 0x5ef   :  { %v595_v11 = vmul.f32 %v4568_v39, %v578_v9  ;;  %vm600_vm8 = vweird.f32 %v4568_v39  ;;  %v778_v20 = vsel %vm777_vm14, %v4566_v33, %v774_v25  ;;  %v782_v9 = vor.u32 1.1754944e-38, %v781_v0  ;;  %v5294_v25 = vld [vmem:[%s6092_s6] sm:$0xff] }
 0x5f0   :  { %vm601_vm10 = vmor %vm599_vm9, %vm600_vm8  ;;  %v887_v0 = vperm.slane %v5294_v25, 1 }
 0x5f1   :  { %v596_v27 = vsub.f32 1.0, %v595_v11 }
 0x5f3   :  { %v597_v2 = vmul.f32 %v4568_v39, %v596_v27 }
 0x5f5   :  { %v598_v59 = vadd.f32 %v4568_v39, %v597_v2  ;;  %v801_v2 = vpop.permute.xlu2 %800 }
 0x5f7   :  { %v602_v29 = vsel %vm601_vm10, %v4568_v39, %v598_v59  ;;  %v783_v39 = vsel %vm780_vm15, %v782_v9, %v778_v20  ;;  %v466_v34 = vpop.f32.mrf.mxu3  ;;  %vm1055_vm10 = vcmask 80896  }
 0x5f8   :  { %v607_v30 = vsel %vm604_vm11, %v606_v1, %v602_v29  ;;  %v784_v3 = vmul.f32 %v5251_v31, %v783_v39  ;;  %v500_v1 = vadd.f32 %v5192_v12, %v466_v34 }
 0x5f9   :  { %v608_v11 = vmul.f32 %v4562_v35, %v607_v30 }
 0x5ff   :  { %v636_v6 = vpop.permute.xlu1 %635  ;;  %v5288_v24 = vpop.f32.mrf.mxu3 }
 0x600   :  { %656 = vmatpush.msra.mxu2 %v636_v6 }
 0x601   :  { %4317 = vmatmul.msk.f32.vlgmr.msra.gmra.mxu2 %vm131_vm1, %v608_v11 }
 0x602   :  { %821 = vmatpush.msrb.mxu2 %v801_v2 }
 0x607   :  { %v663_v27 = vpop.permute.xlu1 %662 }
 0x608   :  { %686 = vmatpush.msra.mxu3 %v663_v27 }
 0x609   :  { %4324 = vmatmul.msk.f32.vlgmr.msrb.gmra.mxu2 %vm131_vm1, %v784_v3 }
 0x60a   :  { %4330 = vmatpush.xpose.msk.msrb.mxu3 %vm131_vm1, %v4926_v40 }
 0x60e   :  { %4331 = vmatpush.xpose.msk.msrb.mxu3 %vm131_vm1, %v4919_v37 }
 0x60f   :  { %v854_v6 = vpop.permute.xlu1 %853 }
 0x610   :  { %877 = vmatpush.msrb.mxu1 %v854_v6 }
 0x617   :  { %v827_v35 = vpop.permute.xlu1 %826 }
 0x618   :  { %847 = vmatpush.msrb.mxu0 %v827_v35 }
 0x61a   :  { %4333 = vmatpush.xpose.msk.msra.mxu0 %vm131_vm1, %v4967_v46 }
 0x61e   :  { %4334 = vmatpush.xpose.msk.msra.mxu0 %vm131_vm1, %v4935_v41 }
 0x62a   :  { %v632_v8 = vpop.f32.mrf.mxu1 }
 0x62b   :  { %4318 = vmatmul.msk.f32.vlgmr.msra.gmra.mxu3 %vm131_vm1, %v632_v8 }
 0x632   :  { %v749_v31 = vpop.f32.mrf.mxu1 }
 0x633   :  { %v755_v36 = vsel %vm131_vm1, %v749_v31, -inf }
 0x634   :  { %756 = vmax.xlane.f32.xlu2 %v755_v36 }
 0x684   :  { %v658_v40 = vpop.f32.mrf.mxu2 }
 0x685   :  { %4319 = vmatmul.msk.f32.gmra.mxu3 %vm131_vm1, %v658_v40 }
 0x68c   :  { %v823_v37 = vpop.f32.mrf.mxu2 }
 0x68d   :  { %4326 = vmatmul.msk.f32.vlgmr.msrb.gmra.mxu1 %vm131_vm1, %v823_v37 }
 0x6a7   :  { %v757_v33 = vpop.xlane.xlu2 %756 }
 0x6a8   :  { %v759_v59 = vsub.f32 %v749_v31, %v757_v33 }
 0x6aa   :  { %v762_v17 = vmul.f32 1.442695, %v759_v59 }
 0x6ac   :  { %4569 = vpow2.f32 %v762_v17  ;;  %v4716_v17 = vmov 32.0  }
 0x6ae   :  { %v688_v29 = vpop.f32.mrf.mxu3 }
 0x6af   :  { %v694_v30 = vadd.f32 %v688_v29, %v500_v1 }
 0x6b2   :  { %v4570_v46 = vpop.eup %4569 }
 0x6b3   :  { %v767_v41 = vsel %vm131_vm1, %v4570_v46, 0.0 }
 0x6b4   :  { %768 = vadd.xlane.f32.xlu0 %v767_v41 }
 0x6c8   :  { %1200 = vrot.lane.b32.xlu0 %v4955_v44, %s4707_s22  ;;  %v4700_v44 = vld [vmem:[%s6091_s0] sm:$0xff] }
 0x70a   :  { %v879_v11 = vpop.f32.mrf.mxu1 }
 0x70b   :  { %v885_v2 = vadd.f32 %v879_v11, %v694_v30 }
 0x70d   :  { %v888_v20 = vadd.f32 %v887_v0, %v885_v2 }
 0x70f   :  { %v890_v9 = vadd.f32 %v4700_v44, %v888_v20 }
 0x711   :  { %v892_v12 = vsel %vm42_vm0, %v890_v9, 0.0 }
 0x712   :  { %893 = vadd.xlane.f32.xlu1 %v892_v12 }
 0x727   :  { %v769_v39 = vpop.xlane.xlu0 %768 }
 0x728   :  { %4571 = vrcp.f32 %v769_v39  ;;  %v796_v35 = vand.u32 2147483648, %v769_v39  ;;  %v794_v31 = vand.u32 2147483647, %v769_v39  ;;  %vm790_vm3 = vweird.f32 %v769_v39 }
 0x729   :  { %4573 = vrcp.f32 %v4716_v17 }
 0x72a   :  { %v797_v40 = vor.u32 1.1754944e-38, %v796_v35  ;;  %vm795_vm5 = vcmp.eq.f32.partialorder %v794_v31, 8.507059e+37 }
 0x72e   :  { %v4572_v27 = vpop.eup %4571 }
 0x72f   :  { %v786_v3 = vmul.f32 %v4572_v27, %v769_v39  ;;  %vm791_vm2 = vweird.f32 %v4572_v27  ;;  %v4574_v41 = vpop.eup %4573 }
 0x730   :  { %vm792_vm4 = vmor %vm790_vm3, %vm791_vm2  ;;  %v899_v34 = vmul.f32 32.0, %v4574_v41  ;;  %vm903_vm6 = vweird.f32 %v4574_v41 }
 0x731   :  { %v787_v6 = vsub.f32 1.0, %v786_v3  ;;  %v5318_v3 = vld [vmem:[%s6090_s2 + $0x28] sm:$0xff] }
 0x732   :  { %v900_v29 = vsub.f32 1.0, %v899_v34 }
 0x733   :  { %v788_v8 = vmul.f32 %v4572_v27, %v787_v6  ;;  %v5329_v6 = vld [vmem:[%s6090_s2 + $0x8] sm:$0xff] }
 0x734   :  { %v901_v1 = vmul.f32 %v4574_v41, %v900_v29 }
 0x735   :  { %v789_v36 = vadd.f32 %v4572_v27, %v788_v8 }
 0x736   :  { %v902_v30 = vadd.f32 %v4574_v41, %v901_v1  ;;  %v946_v1 = vperm.slane %v5294_v25, 7 }
 0x737   :  { %v793_v37 = vsel %vm792_vm4, %v4572_v27, %v789_v36  ;;  %v5312_v27 = vld [vmem:[%s6090_s2 + $0x38] sm:$0xff]  ;;  %vm1123_vm4 = vcmask 1041408  }
 0x738   :  { %v798_v33 = vsel %vm795_vm5, %v797_v40, %v793_v37  ;;  %v5304_v11 = vsel %vm903_vm6, %v4574_v41, %v902_v30  ;;  %968 = vmatpush.msra.mxu2 %v5312_v27  ;;  %v943_v41 = vperm.slane %v5294_v25, 6 }
 0x739   :  { %v799_v59 = vmul.f32 %v4570_v46, %v798_v33 }
 0x73a   :  { %969 = vmatpush.msra.mxu2 %v5318_v3 }
 0x73b   :  { %4325 = vmatmul.msk.f32.vlgmr.msrb.gmra.mxu0 %vm131_vm1, %v799_v59 }
 0x785   :  { %v894_v2 = vpop.xlane.xlu1 %893 }
 0x786   :  { %v905_v20 = vmul.f32 %v5304_v11, %v894_v2 }
 0x788   :  { %v907_v44 = vsub.f32 %v890_v9, %v905_v20  ;;  %v5323_v9 = vld [vmem:[%s6090_s2 + $0x18] sm:$0xff]  ;;  %v691_v20 = vpop.f32.mrf.mxu3 }
 0x789   :  { %970 = vmatpush.msra.mxu2 %v5323_v9 }
 0x78a   :  { %v909_v12 = vmul.f32 %v907_v44, %v907_v44 }
 0x78b   :  { %971 = vmatpush.msra.mxu2 %v5329_v6 }
 0x78c   :  { %v911_v39 = vsel %vm42_vm0, %v909_v12, 0.0  ;;  %v503_v12 = vadd.f32 %v5143_v38, %v5288_v24 }
 0x78d   :  { %912 = vadd.xlane.f32.xlu2 %v911_v39 }
 0x78e   :  { %v695_v39 = vadd.f32 %v691_v20, %v503_v12 }
 0x7b8   :  { %v849_v46 = vpop.f32.mrf.mxu0 }
 0x7b9   :  { %4327 = vmatmul.msk.f32.gmra.mxu1 %vm131_vm1, %v849_v46 }
 0x800   :  { %v913_v35 = vpop.xlane.xlu2 %912 }
 0x801   :  { %v917_v8 = vmul.f32 %v913_v35, %v5304_v11 }
 0x803   :  { %v919_v31 = vadd.f32 1e-05, %v917_v8 }
 0x805   :  { %4575 = vrsqrt.f32 %v919_v31  ;;  %vm927_vm8 = vweird.f32 %v919_v31 }
 0x80b   :  { %v4576_v36 = vpop.eup %4575 }
 0x80c   :  { %v922_v40 = vmul.f32 %v4576_v36, %v919_v31  ;;  %vm928_vm7 = vweird.f32 %v4576_v36 }
 0x80d   :  { %vm929_vm9 = vmor %vm927_vm8, %vm928_vm7 }
 0x80e   :  { %v923_v37 = vmul.f32 %v4576_v36, %v922_v40  ;;  %v949_v40 = vperm.slane %v5294_v25, 2 }
 0x810   :  { %v924_v33 = vmul.f32 0.5, %v923_v37 }
 0x812   :  { %v925_v59 = vsub.f32 1.5, %v924_v33 }
 0x814   :  { %v926_v17 = vmul.f32 %v4576_v36, %v925_v59 }
 0x816   :  { %v930_v34 = vsel %vm929_vm9, %v4576_v36, %v926_v17 }
 0x817   :  { %v941_v29 = vmul.f32 %v930_v34, %v907_v44  ;;  %v4701_v44 = vld [vmem:[%s6091_s0 + $0x8] sm:$0xff] }
 0x819   :  { %v944_v30 = vmul.f32 %v943_v41, %v941_v29 }
 0x81b   :  { %v5336_v2 = vadd.f32 %v946_v1, %v944_v30 }
 0x81d   :  { %4328 = vmatmul.msk.f32.vlgmr.msra.gmra.mxu2 %vm42_vm0, %v5336_v2 }
 0x836   :  { %v882_v46 = vpop.f32.mrf.mxu1 }
 0x837   :  { %v886_v35 = vadd.f32 %v882_v46, %v695_v39 }
 0x839   :  { %v889_v8 = vadd.f32 %v887_v0, %v886_v35 }
 0x83b   :  { %v891_v31 = vadd.f32 %v4701_v44, %v889_v8  ;;  %v1201_v8 = vpop.permute.xlu0 %1200 }
 0x83d   :  { %v895_v36 = vsel %vm42_vm0, %v891_v31, 0.0 }
 0x83e   :  { %896 = vadd.xlane.f32.xlu2 %v895_v36 }
 0x8a0   :  { %v973_v37 = vpop.f32.mrf.mxu2 }
 0x8a1   :  { %v5349_v33 = vadd.f32 %v973_v37, %v949_v40 }
 0x8a3   :  { %1187 = vrot.lane.b32.xlu1 %v5349_v33, %s4707_s22  ;;  %4332 = vmatmul.msk.f32.vlgmr.msrb.gmra.mxu3 %vm131_vm1, %v5349_v33 }
 0x8ab   :  { %1245 = vrot.lane.b32.xlu1 %v5003_v18, %s4707_s22 }
 0x8b1   :  { %v897_v38 = vpop.xlane.xlu2 %896 }
 0x8b2   :  { %v906_v24 = vmul.f32 %v5304_v11, %v897_v38 }
 0x8b4   :  { %v908_v0 = vsub.f32 %v891_v31, %v906_v24 }
 0x8b6   :  { %v910_v59 = vmul.f32 %v908_v0, %v908_v0 }
 0x8b8   :  { %v914_v17 = vsel %vm42_vm0, %v910_v59, 0.0 }
 0x8b9   :  { %915 = vadd.xlane.f32.xlu2 %v914_v17 }
 0x8d1   :  { %1202 = vrot.lane.b32.xlu2 %v4992_v60, %s4707_s22 }
 0x915   :  { %v1188_v34 = vpop.permute.xlu1 %1187 }
 0x91d   :  { %v1246_v29 = vpop.permute.xlu1 %1245 }
 0x91e   :  { %4343 = vmatpush.xpose.msk.msrb.mxu2 %vm131_vm1, %v1246_v29 }
 0x926   :  { %v1014_v30 = vpop.f32.mrf.mxu3 }
 0x927   :  { %v1056_v20 = vsel %vm1055_vm10, %v1014_v30, -inf }
 0x928   :  { %1057 = vmax.xlane.f32.xlu0 %v1056_v20 }
 0x92c   :  { %v916_v18 = vpop.xlane.xlu2 %915 }
 0x92d   :  { %v918_v12 = vmul.f32 %v916_v18, %v5304_v11 }
 0x92f   :  { %v920_v39 = vadd.f32 1e-05, %v918_v12 }
 0x931   :  { %4577 = vrsqrt.f32 %v920_v39  ;;  %vm937_vm12 = vweird.f32 %v920_v39 }
 0x934   :  { %v1203_v46 = vpop.permute.xlu2 %1202 }
 0x935   :  { %4340 = vmatpush.xpose.msk.msra.mxu1 %vm131_vm1, %v1203_v46 }
 0x937   :  { %v4578_v35 = vpop.eup %4577 }
 0x938   :  { %v932_v60 = vmul.f32 %v4578_v35, %v920_v39  ;;  %vm938_vm11 = vweird.f32 %v4578_v35 }
 0x939   :  { %4341 = vmatpush.xpose.msk.msra.mxu1 %vm131_vm1, %v1201_v8  ;;  %vm939_vm13 = vmor %vm937_vm12, %vm938_vm11 }
 0x93a   :  { %v933_v44 = vmul.f32 %v4578_v35, %v932_v60 }
 0x93c   :  { %v934_v31 = vmul.f32 0.5, %v933_v44  ;;  %1115 = vrot.lane.b32.xlu0 %v4943_v42, %s4704_s19  ;;  %4342 = vmatmul.msk.f32.vlgmr.msra.gmra.mxu1 %vm131_vm1, %v1188_v34 }
 0x93e   :  { %v935_v36 = vsub.f32 1.5, %v934_v31 }
 0x940   :  { %v936_v37 = vmul.f32 %v4578_v35, %v935_v36 }
 0x942   :  { %v940_v38 = vsel %vm939_vm13, %v4578_v35, %v936_v37 }
 0x943   :  { %v942_v24 = vmul.f32 %v940_v38, %v908_v0 }
 0x944   :  { %1332 = vrot.lane.b32.xlu0 %v4970_v47, %s4705_s20 }
 0x945   :  { %v945_v59 = vmul.f32 %v943_v41, %v942_v24 }
 0x947   :  { %v5371_v17 = vadd.f32 %v946_v1, %v945_v59 }
 0x949   :  { %4329 = vmatmul.msk.f32.gmra.mxu2 %vm42_vm0, %v5371_v17 }
 0x94c   :  { %1484 = vrot.lane.b32.xlu0 %v5041_v53, %s4711_s18 }
 0x99b   :  { %v1058_v42 = vpop.xlane.xlu0 %1057 }
 0x99c   :  { %v1062_v34 = vsub.f32 %v1014_v30, %v1058_v42 }
 0x99e   :  { %v1064_v29 = vmul.f32 1.442695, %v1062_v34 }
 0x9a0   :  { %4579 = vpow2.f32 %v1064_v29 }
 0x9a6   :  { %v4580_v20 = vpop.eup %4579 }
 0x9a7   :  { %v1068_v18 = vsel %vm1055_vm10, %v4580_v20, 0.0 }
 0x9a8   :  { %1069 = vadd.xlane.f32.xlu1 %v1068_v18 }
 0x9ae   :  { %v1116_v39 = vpop.permute.xlu0 %1115 }
 0x9b6   :  { %v1333_v37 = vpop.permute.xlu0 %1332 }
 0x9b9   :  { %v1227_v0 = vpop.f32.mrf.mxu1 }
 0x9ba   :  { %v1273_v47 = vsel %vm1055_vm10, %v1227_v0, -inf }
 0x9bb   :  { %1274 = vmax.xlane.f32.xlu2 %v1273_v47 }
 0x9be   :  { %v1485_v34 = vpop.permute.xlu0 %1484 }
 0x9c1   :  { %1482 = vrot.lane.b32.xlu1 %v4988_v55, %s4711_s18 }
 0x9cc   :  { %v976_v41 = vpop.f32.mrf.mxu2 }
 0x9cd   :  { %v5381_v1 = vadd.f32 %v976_v41, %v949_v40 }
 0x9cf   :  { %4335 = vmatmul.msk.f32.vlgmr.msra.gmra.mxu0 %vm131_vm1, %v5381_v1 }
 0x9d3   :  { %1117 = vrot.lane.b32.xlu2 %v4976_v48, %s4704_s19 }
 0x9db   :  { %1334 = vrot.lane.b32.xlu2 %v5015_v32, %s4705_s20 }
 0x9e3   :  { %1243 = vrot.lane.b32.xlu2 %v4961_v45, %s4707_s22 }
 0x9eb   :  { %1230 = vrot.lane.b32.xlu2 %v5381_v1, %s4707_s22 }
 0xa1b   :  { %v1070_v53 = vpop.xlane.xlu1 %1069 }
 0xa1c   :  { %4581 = vrcp.f32 %v1070_v53  ;;  %v1085_v48 = vand.u32 2147483648, %v1070_v53  ;;  %vm1079_vm15 = vweird.f32 %v1070_v53  ;;  %v1083_v32 = vand.u32 2147483647, %v1070_v53 }
 0xa1e   :  { %v1086_v44 = vor.u32 1.1754944e-38, %v1085_v48  ;;  %vm1084_vm3 = vcmp.eq.f32.partialorder %v1083_v32, 8.507059e+37 }
 0xa22   :  { %v4582_v55 = vpop.eup %4581 }
 0xa23   :  { %v1075_v40 = vmul.f32 %v4582_v55, %v1070_v53  ;;  %vm1080_vm14 = vweird.f32 %v4582_v55 }
 0xa24   :  { %vm1081_vm2 = vmor %vm1079_vm15, %vm1080_vm14 }
 0xa25   :  { %v1076_v30 = vsub.f32 1.0, %v1075_v40 }
 0xa27   :  { %v1077_v12 = vmul.f32 %v4582_v55, %v1076_v30 }
 0xa29   :  { %v1078_v46 = vadd.f32 %v4582_v55, %v1077_v12 }
 0xa2b   :  { %v1082_v45 = vsel %vm1081_vm2, %v4582_v55, %v1078_v46 }
 0xa2c   :  { %v1087_v31 = vsel %vm1084_vm3, %v1086_v44, %v1082_v45 }
 0xa2d   :  { %v1088_v38 = vmul.f32 %v4580_v20, %v1087_v31 }
 0xa2e   :  { %v1275_v35 = vpop.xlane.xlu2 %1274 }
 0xa2f   :  { %v1279_v8 = vsub.f32 %v1227_v0, %v1275_v35 }
 0xa31   :  { %v1281_v60 = vmul.f32 1.442695, %v1279_v8 }
 0xa33   :  { %4583 = vpow2.f32 %v1281_v60  ;;  %v1483_v29 = vpop.permute.xlu1 %1482 }
 0xa36   :  { %v1118_v36 = vpop.permute.xlu2 %1117 }
 0xa37   :  { %4336 = vmatpush.msk.msra.mxu3 %vm1123_vm4, %v1118_v36 }
 0xa39   :  { %v4584_v24 = vpop.eup %4583  ;;  %1141 = vmatpush.msra.mxu3 %v1116_v39 }
 0xa3a   :  { %4337 = vmatmul.msk.f32.vlgmr.msra.gmra.mxu3 %vm1055_vm10, %v1088_v38  ;;  %v1285_v59 = vsel %vm1055_vm10, %v4584_v24, 0.0 }
 0xa3b   :  { %1286 = vadd.xlane.f32.xlu0 %v1285_v59 }
 0xa3e   :  { %v1335_v42 = vpop.permute.xlu2 %1334 }
 0xa3f   :  { %4346 = vmatpush.msk.msrb.mxu3 %vm1123_vm4, %v1335_v42 }
 0xa41   :  { %1357 = vmatpush.msrb.mxu3 %v1333_v37 }
 0xa43   :  { %4354 = vmatpush.xpose.msk.msra.mxu3 %vm131_vm1, %v1485_v34 }
 0xa46   :  { %v1244_v18 = vpop.permute.xlu2 %1243 }
 0xa47   :  { %4355 = vmatpush.xpose.msk.msra.mxu3 %vm131_vm1, %v1483_v29  ;;  %4344 = vmatpush.xpose.msk.msrb.mxu2 %vm131_vm1, %v1244_v18 }
 0xa4c   :  { %v1052_v20 = vpop.f32.mrf.mxu0 }
 0xa4d   :  { %v1059_v0 = vsel %vm1055_vm10, %v1052_v20, -inf }
 0xa4e   :  { %1060 = vmax.xlane.f32.xlu2 %v1059_v0  ;;  %v1231_v47 = vpop.permute.xlu2 %1230 }
 0xa4f   :  { %1469 = vrot.lane.b32.xlu0 %v5349_v33, %s4711_s18  ;;  %4345 = vmatmul.msk.f32.vlgmr.msrb.gmra.mxu2 %vm131_vm1, %v1231_v47 }
 0xa57   :  { %1159 = vrot.lane.b32.xlu0 %v4985_v51, %s4704_s19 }
 0xa5f   :  { %1157 = vrot.lane.b32.xlu0 %v4949_v43, %s4704_s19 }
 0xa66   :  { %1375 = vrot.lane.b32.xlu2 %v5031_v58, %s4705_s20 }
 0xa6e   :  { %1614 = vrot.lane.b32.xlu2 %v5011_v26, %s4708_s11 }
 0xaae   :  { %v1287_v41 = vpop.xlane.xlu0 %1286 }
 0xaaf   :  { %4585 = vrcp.f32 %v1287_v41  ;;  %v1302_v30 = vand.u32 2147483648, %v1287_v41  ;;  %v1300_v39 = vand.u32 2147483647, %v1287_v41  ;;  %vm1296_vm6 = vweird.f32 %v1287_v41 }
 0xab1   :  { %v1303_v51 = vor.u32 1.1754944e-38, %v1302_v30  ;;  %vm1301_vm8 = vcmp.eq.f32.partialorder %v1300_v39, 8.507059e+37 }
 0xab5   :  { %v4586_v53 = vpop.eup %4585 }
 0xab6   :  { %v1292_v55 = vmul.f32 %v4586_v53, %v1287_v41  ;;  %vm1297_vm5 = vweird.f32 %v4586_v53 }
 0xab7   :  { %vm1298_vm7 = vmor %vm1296_vm6, %vm1297_vm5 }
 0xab8   :  { %v1293_v40 = vsub.f32 1.0, %v1292_v55 }
 0xaba   :  { %v1294_v12 = vmul.f32 %v4586_v53, %v1293_v40 }
 0xabc   :  { %v1295_v46 = vadd.f32 %v4586_v53, %v1294_v12 }
 0xabe   :  { %v1299_v43 = vsel %vm1298_vm7, %v4586_v53, %v1295_v46 }
 0xabf   :  { %v1304_v35 = vsel %vm1301_vm8, %v1303_v51, %v1299_v43 }
 0xac0   :  { %v1305_v58 = vmul.f32 %v4584_v24, %v1304_v35 }
 0xac1   :  { %v1061_v48 = vpop.xlane.xlu2 %1060  ;;  %v1470_v8 = vpop.permute.xlu0 %1469 }
 0xac2   :  { %v1063_v26 = vsub.f32 %v1052_v20, %v1061_v48  ;;  %4347 = vmatmul.msk.f32.vlgmr.msrb.gmra.mxu3 %vm1055_vm10, %v1305_v58 }
 0xac4   :  { %v1066_v32 = vmul.f32 1.442695, %v1063_v26 }
 0xac6   :  { %4587 = vpow2.f32 %v1066_v32 }
 0xac9   :  { %v1160_v60 = vpop.permute.xlu0 %1159  ;;  %v1376_v36 = vpop.permute.xlu2 %1375 }
 0xaca   :  { %4338 = vmatpush.msk.msrb.mxu0 %vm1123_vm4, %v1160_v60  ;;  %4356 = vmatmul.msk.f32.vlgmr.msra.gmra.mxu3 %vm131_vm1, %v1470_v8 }
 0xacc   :  { %v4588_v45 = vpop.eup %4587 }
 0xacd   :  { %v1071_v44 = vsel %vm1055_vm10, %v4588_v45, 0.0 }
 0xace   :  { %1072 = vadd.xlane.f32.xlu1 %v1071_v44 }
 0xad1   :  { %v1158_v31 = vpop.permute.xlu0 %1157  ;;  %v1615_v43 = vpop.permute.xlu2 %1614 }
 0xad2   :  { %1182 = vmatpush.msrb.mxu0 %v1158_v31  ;;  %v1270_v37 = vpop.f32.mrf.mxu2 }
 0xad3   :  { %v1276_v38 = vsel %vm1055_vm10, %v1270_v37, -inf }
 0xad4   :  { %4348 = vmatpush.msk.msra.mxu0 %vm1123_vm4, %v1376_v36  ;;  %1277 = vmax.xlane.f32.xlu0 %v1276_v38 }
 0xae7   :  { %1437 = vrot.lane.b32.xlu1 %v5329_v6, %s4704_s19 }
 0xae8   :  { %1373 = vrot.lane.b32.xlu0 %v4979_v49, %s4705_s20  ;;  %v1143_v49 = vpop.f32.mrf.mxu3 }
 0xaef   :  { %1527 = vrot.lane.b32.xlu1 %v5050_v56, %s4711_s18 }
 0xaf0   :  { %1616 = vrot.lane.b32.xlu0 %v5059_v61, %s4708_s11 }
 0xaf7   :  { %1735 = vrot.lane.b32.xlu1 %v5077_v5, %s4713_s23 }
 0xaf8   :  { %1525 = vrot.lane.b32.xlu0 %v4998_v14, %s4711_s18 }
 0xaff   :  { %1733 = vrot.lane.b32.xlu1 %v5037_v52, %s4713_s23 }
 0xb00   :  { %1512 = vrot.lane.b32.xlu0 %v5381_v1, %s4711_s18 }
 0xb08   :  { %1763 = vrot.lane.b32.xlu0 %v5381_v1, %s4713_s23 }
 0xb41   :  { %v1073_v56 = vpop.xlane.xlu1 %1072 }
 0xb42   :  { %4589 = vrcp.f32 %v1073_v56  ;;  %v1100_v29 = vand.u32 2147483648, %v1073_v56  ;;  %v1098_v18 = vand.u32 2147483647, %v1073_v56  ;;  %vm1094_vm11 = vweird.f32 %v1073_v56 }
 0xb44   :  { %v1101_v47 = vor.u32 1.1754944e-38, %v1100_v29  ;;  %vm1099_vm13 = vcmp.eq.f32.partialorder %v1098_v18, 8.507059e+37 }
 0xb45   :  { %v5436_v24 = vpop.f32.mrf.mxu3 }
 0xb47   :  { %v1278_v61 = vpop.xlane.xlu0 %1277 }
 0xb48   :  { %v4590_v59 = vpop.eup %4589  ;;  %v1280_v5 = vsub.f32 %v1270_v37, %v1278_v61 }
 0xb49   :  { %v1090_v42 = vmul.f32 %v4590_v59, %v1073_v56  ;;  %vm1095_vm9 = vweird.f32 %v4590_v59 }
 0xb4a   :  { %v1283_v34 = vmul.f32 1.442695, %v1280_v5  ;;  %vm1096_vm12 = vmor %vm1094_vm11, %vm1095_vm9 }
 0xb4b   :  { %v1091_v14 = vsub.f32 1.0, %v1090_v42 }
 0xb4c   :  { %4591 = vpow2.f32 %v1283_v34 }
 0xb4d   :  { %v1092_v52 = vmul.f32 %v4590_v59, %v1091_v14  ;;  %v1509_v20 = vpop.f32.mrf.mxu3 }
 0xb4e   :  { %v1555_v0 = vsel %vm1055_vm10, %v1509_v20, -inf }
 0xb4f   :  { %v1093_v1 = vadd.f32 %v4590_v59, %v1092_v52  ;;  %1556 = vmax.xlane.f32.xlu2 %v1555_v0 }
 0xb51   :  { %v1097_v41 = vsel %vm1096_vm12, %v4590_v59, %v1093_v1 }
 0xb52   :  { %v4592_v53 = vpop.eup %4591  ;;  %v1102_v55 = vsel %vm1099_vm13, %v1101_v47, %v1097_v41 }
 0xb53   :  { %v1288_v40 = vsel %vm1055_vm10, %v4592_v53, 0.0  ;;  %v1103_v30 = vmul.f32 %v4588_v45, %v1102_v55 }
 0xb54   :  { %1289 = vadd.xlane.f32.xlu1 %v1288_v40 }
 0xb55   :  { %4339 = vmatmul.msk.f32.vlgmr.msrb.gmra.mxu0 %vm1055_vm10, %v1103_v30 }
 0xb59   :  { %v1438_v12 = vpop.permute.xlu1 %1437 }
 0xb5a   :  { %1461 = vmatpush.msra.mxu2 %v1438_v12  ;;  %v1374_v39 = vpop.permute.xlu0 %1373 }
 0xb5b   :  { %1398 = vmatpush.msra.mxu0 %v1374_v39  ;;  %4352 = vmatmul.msk.f32.vlgmr.msra.gmra.mxu2 %vm131_vm1, %v1143_v49 }
 0xb61   :  { %v1528_v46 = vpop.permute.xlu1 %1527 }
 0xb62   :  { %4357 = vmatpush.xpose.msk.msrb.mxu0 %vm131_vm1, %v1528_v46  ;;  %v1617_v51 = vpop.permute.xlu0 %1616 }
 0xb63   :  { %4360 = vmatpush.msk.msrb.mxu3 %vm1123_vm4, %v1617_v51 }
 0xb65   :  { %1639 = vmatpush.msrb.mxu3 %v1615_v43 }
 0xb67   :  { %1778 = vrot.lane.b32.xlu2 %v5086_v7, %s4713_s23 }
 0xb69   :  { %v1736_v35 = vpop.permute.xlu1 %1735 }
 0xb6a   :  { %4366 = vmatpush.xpose.msk.msrb.mxu2 %vm131_vm1, %v1736_v35  ;;  %v1526_v58 = vpop.permute.xlu0 %1525 }
 0xb6b   :  { %4358 = vmatpush.xpose.msk.msrb.mxu0 %vm131_vm1, %v1526_v58 }
 0xb6d   :  { %1720 = vrot.lane.b32.xlu1 %v5349_v33, %s4713_s23 }
 0xb71   :  { %v1734_v48 = vpop.permute.xlu1 %1733 }
 0xb72   :  { %4367 = vmatpush.xpose.msk.msrb.mxu2 %vm131_vm1, %v1734_v48  ;;  %v1513_v29 = vpop.permute.xlu0 %1512 }
 0xb7a   :  { %v1764_v43 = vpop.permute.xlu0 %1763 }
 0xbc2   :  { %v1557_v8 = vpop.xlane.xlu2 %1556 }
 0xbc3   :  { %v1561_v26 = vsub.f32 %v1509_v20, %v1557_v8 }
 0xbc5   :  { %v1563_v32 = vmul.f32 1.442695, %v1561_v26 }
 0xbc7   :  { %4593 = vpow2.f32 %v1563_v32  ;;  %v1290_v60 = vpop.xlane.xlu1 %1289 }
 0xbc8   :  { %4595 = vrcp.f32 %v1290_v60  ;;  %v1317_v33 = vand.u32 2147483648, %v1290_v60  ;;  %v1315_v56 = vand.u32 2147483647, %v1290_v60  ;;  %vm1311_vm15 = vweird.f32 %v1290_v60 }
 0xbca   :  { %v1779_v45 = vpop.permute.xlu2 %1778  ;;  %v1318_v59 = vor.u32 1.1754944e-38, %v1317_v33  ;;  %vm1316_vm3 = vcmp.eq.f32.partialorder %v1315_v56, 8.507059e+37 }
 0xbcb   :  { %4369 = vmatpush.xpose.msk.msra.mxu3 %vm131_vm1, %v1779_v45 }
 0xbcd   :  { %v4594_v7 = vpop.eup %4593 }
 0xbce   :  { %v4596_v44 = vpop.eup %4595  ;;  %v1567_v31 = vsel %vm1055_vm10, %v4594_v7, 0.0 }
 0xbcf   :  { %v1307_v36 = vmul.f32 %v4596_v44, %v1290_v60  ;;  %1568 = vadd.xlane.f32.xlu2 %v1567_v31  ;;  %vm1312_vm14 = vweird.f32 %v4596_v44 }
 0xbd0   :  { %vm1313_vm2 = vmor %vm1311_vm15, %vm1312_vm14 }
 0xbd1   :  { %v1308_v37 = vsub.f32 1.0, %v1307_v36 }
 0xbd2   :  { %v1184_v38 = vpop.f32.mrf.mxu0 }
 0xbd3   :  { %v1309_v49 = vmul.f32 %v4596_v44, %v1308_v37  ;;  %4353 = vmatmul.msk.f32.gmra.mxu2 %vm131_vm1, %v1184_v38 }
 0xbd5   :  { %v1310_v61 = vadd.f32 %v4596_v44, %v1309_v49 }
 0xbd7   :  { %v1314_v5 = vsel %vm1313_vm2, %v4596_v44, %v1310_v61  ;;  %v4505_v61 = vpack.i.bf16 %v5064_v62, %v5055_v57 }
 0xbd8   :  { %v1319_v42 = vsel %vm1316_vm3, %v1318_v59, %v1314_v5 }
 0xbd9   :  { %v1320_v34 = vmul.f32 %v4592_v53, %v1319_v42 }
 0xbdb   :  { %4349 = vmatmul.msk.f32.vlgmr.msra.gmra.mxu0 %vm1055_vm10, %v1320_v34 }
 0xbde   :  { %v5460_v12 = vpop.f32.mrf.mxu2 }
 0xbdf   :  { %v1721_v14 = vpop.permute.xlu1 %1720 }
 0xbe0   :  { %4368 = vmatmul.msk.f32.vlgmr.msrb.gmra.mxu2 %vm131_vm1, %v1721_v14 }
 0xbe3   :  { %4359 = vmatmul.msk.f32.vlgmr.msrb.gmra.mxu0 %vm131_vm1, %v1513_v29 }
 0xbe7   :  { %1776 = vrot.lane.b32.xlu2 %v5046_v54, %s4713_s23 }
 0xc42   :  { %v1569_v52 = vpop.xlane.xlu2 %1568 }
 0xc43   :  { %4597 = vrcp.f32 %v1569_v52  ;;  %v1584_v47 = vand.u32 2147483648, %v1569_v52  ;;  %v1582_v53 = vand.u32 2147483647, %v1569_v52  ;;  %vm1578_vm6 = vweird.f32 %v1569_v52 }
 0xc45   :  { %v1585_v40 = vor.u32 1.1754944e-38, %v1584_v47  ;;  %vm1583_vm8 = vcmp.eq.f32.partialorder %v1582_v53, 8.507059e+37 }
 0xc49   :  { %v4598_v18 = vpop.eup %4597 }
 0xc4a   :  { %v1574_v20 = vmul.f32 %v4598_v18, %v1569_v52  ;;  %v1777_v0 = vpop.permute.xlu2 %1776  ;;  %vm1579_vm5 = vweird.f32 %v4598_v18 }
 0xc4b   :  { %4370 = vmatpush.xpose.msk.msra.mxu3 %vm131_vm1, %v1777_v0  ;;  %vm1580_vm7 = vmor %vm1578_vm6, %vm1579_vm5 }
 0xc4c   :  { %v1575_v1 = vsub.f32 1.0, %v1574_v20 }
 0xc4e   :  { %v1576_v41 = vmul.f32 %v4598_v18, %v1575_v1 }
 0xc50   :  { %v1577_v55 = vadd.f32 %v4598_v18, %v1576_v41 }
 0xc52   :  { %v1581_v30 = vsel %vm1580_vm7, %v4598_v18, %v1577_v55 }
 0xc53   :  { %v1586_v54 = vsel %vm1583_vm8, %v1585_v40, %v1581_v30 }
 0xc54   :  { %v1587_v39 = vmul.f32 %v4594_v7, %v1586_v54 }
 0xc56   :  { %4361 = vmatmul.msk.f32.vlgmr.msrb.gmra.mxu3 %vm1055_vm10, %v1587_v39  ;;  %v5465_v51 = vpop.f32.mrf.mxu2 }
 0xc58   :  { %v5463_v46 = vpop.f32.mrf.mxu0 }
 0xc5e   :  { %4371 = vmatmul.msk.f32.vlgmr.msra.gmra.mxu3 %vm131_vm1, %v1764_v43 }
 0xc60   :  { %v1552_v35 = vpop.f32.mrf.mxu0 }
 0xc61   :  { %v1558_v58 = vsel %vm1055_vm10, %v1552_v35, -inf }
 0xc62   :  { %1559 = vmax.xlane.f32.xlu2 %v1558_v58 }
 0xc63   :  { %v1760_v48 = vpop.f32.mrf.mxu2 }
 0xc64   :  { %v1806_v8 = vsel %vm1055_vm10, %v1760_v48, -inf }
 0xc65   :  { %1807 = vmax.xlane.f32.xlu1 %v1806_v8 }
 0xc7a   :  { %1657 = vrot.lane.b32.xlu2 %v5068_v63, %s4708_s11 }
 0xcd5   :  { %v1560_v26 = vpop.xlane.xlu2 %1559 }
 0xcd6   :  { %v1562_v32 = vsub.f32 %v1552_v35, %v1560_v26 }
 0xcd8   :  { %v1565_v60 = vmul.f32 1.442695, %v1562_v32  ;;  %v1808_v45 = vpop.xlane.xlu1 %1807 }
 0xcd9   :  { %v1812_v7 = vsub.f32 %v1760_v48, %v1808_v45  ;;  %v5472_v44 = vpop.f32.mrf.mxu3 }
 0xcda   :  { %4599 = vpow2.f32 %v1565_v60 }
 0xcdb   :  { %v1814_v31 = vmul.f32 1.442695, %v1812_v7 }
 0xcdd   :  { %4601 = vpow2.f32 %v1814_v31  ;;  %v1658_v36 = vpop.permute.xlu2 %1657 }
 0xcde   :  { %4362 = vmatpush.msk.msra.mxu0 %vm1123_vm4, %v1658_v36 }
 0xce0   :  { %v4600_v37 = vpop.eup %4599 }
 0xce1   :  { %v1803_v33 = vpop.f32.mrf.mxu3  ;;  %v1570_v38 = vsel %vm1055_vm10, %v4600_v37, 0.0 }
 0xce2   :  { %1571 = vadd.xlane.f32.xlu2 %v1570_v38  ;;  %v1809_v63 = vsel %vm1055_vm10, %v1803_v33, -inf }
 0xce3   :  { %v4602_v49 = vpop.eup %4601  ;;  %1810 = vmax.xlane.f32.xlu0 %v1809_v63 }
 0xce4   :  { %v1818_v56 = vsel %vm1055_vm10, %v4602_v49, 0.0 }
 0xce5   :  { %1819 = vadd.xlane.f32.xlu1 %v1818_v56 }
 0xcf7   :  { %1867 = vrot.lane.b32.xlu0 %v5095_v10, %s4710_s16 }
 0xcfa   :  { %4506 = vrot.lane.b32.xlu2 %v4505_v61, %s4710_s16 }
 0xcfe   :  { %1655 = vrot.lane.b32.xlu1 %v5026_v50, %s4708_s11 }
 0xd02   :  { %1937 = vrot.lane.b32.xlu2 %v5312_v27, %s4704_s19 }
 0xd06   :  { %1404 = vrot.lane.b32.xlu1 %v5323_v9, %s4704_s19 }
 0xd55   :  { %v1572_v59 = vpop.xlane.xlu2 %1571 }
 0xd56   :  { %4603 = vrcp.f32 %v1572_v59  ;;  %v1811_v5 = vpop.xlane.xlu0 %1810  ;;  %v1599_v47 = vand.u32 2147483648, %v1572_v59  ;;  %vm1593_vm11 = vweird.f32 %v1572_v59  ;;  %v1597_v41 = vand.u32 2147483647, %v1572_v59 }
 0xd57   :  { %v1813_v42 = vsub.f32 %v1803_v33, %v1811_v5 }
 0xd58   :  { %v1820_v34 = vpop.xlane.xlu1 %1819  ;;  %v1600_v40 = vor.u32 1.1754944e-38, %v1599_v47  ;;  %vm1598_vm13 = vcmp.eq.f32.partialorder %v1597_v41, 8.507059e+37 }
 0xd59   :  { %v1816_v10 = vmul.f32 1.442695, %v1813_v42  ;;  %4605 = vrcp.f32 %v1820_v34  ;;  %v1835_v39 = vand.u32 2147483648, %v1820_v34  ;;  %vm1829_vm15 = vweird.f32 %v1820_v34 }
 0xd5a   :  { %v1833_v43 = vand.u32 2147483647, %v1820_v34 }
 0xd5b   :  { %4607 = vpow2.f32 %v1816_v10  ;;  %v1836_v32 = vor.u32 1.1754944e-38, %v1835_v39 }
 0xd5c   :  { %v4604_v57 = vpop.eup %4603  ;;  %vm1834_vm3 = vcmp.eq.f32.partialorder %v1833_v43, 8.507059e+37 }
 0xd5d   :  { %v1589_v62 = vmul.f32 %v4604_v57, %v1572_v59  ;;  %vm1594_vm9 = vweird.f32 %v4604_v57  ;;  %v4507_v35 = vpop.permute.xlu2 %4506 }
 0xd5e   :  { %vm1595_vm12 = vmor %vm1593_vm11, %vm1594_vm9  ;;  %v4508_v60 = vunpack.i.l.bf16 %v4507_v35 }
 0xd5f   :  { %v4606_v14 = vpop.eup %4605  ;;  %v1590_v29 = vsub.f32 1.0, %v1589_v62 }
 0xd60   :  { %v1825_v18 = vmul.f32 %v4606_v14, %v1820_v34  ;;  %vm1830_vm14 = vweird.f32 %v4606_v14 }
 0xd61   :  { %v5489_v52 = vpop.eup %4607  ;;  %v1591_v50 = vmul.f32 %v4604_v57, %v1590_v29  ;;  %vm1831_vm2 = vmor %vm1829_vm15, %vm1830_vm14 }
 0xd62   :  { %v1821_v20 = vsel %vm1055_vm10, %v5489_v52, 0.0  ;;  %v1826_v1 = vsub.f32 1.0, %v1825_v18 }
 0xd63   :  { %1822 = vadd.xlane.f32.xlu0 %v1821_v20  ;;  %v1592_v0 = vadd.f32 %v4604_v57, %v1591_v50 }
 0xd64   :  { %v1827_v55 = vmul.f32 %v4606_v14, %v1826_v1 }
 0xd65   :  { %v1596_v53 = vsel %vm1595_vm12, %v4604_v57, %v1592_v0  ;;  %v1938_v36 = vpop.permute.xlu2 %1937  ;;  %v1971_v0 = vperm.slane %v5294_v25, 3 }
 0xd66   :  { %v1601_v30 = vsel %vm1598_vm13, %v1600_v40, %v1596_v53  ;;  %v1828_v54 = vadd.f32 %v4606_v14, %v1827_v55  ;;  %1961 = vmatpush.msrb.mxu3 %v1938_v36 }
 0xd67   :  { %v1602_v48 = vmul.f32 %v4600_v37, %v1601_v30 }
 0xd68   :  { %v1832_v8 = vsel %vm1831_vm2, %v4606_v14, %v1828_v54  ;;  %vm2079_vm2 = vcmask 523264  }
 0xd69   :  { %v1868_v26 = vpop.permute.xlu0 %1867  ;;  %v1837_v45 = vsel %vm1834_vm3, %v1836_v32, %v1832_v8 }
 0xd6a   :  { %v1838_v31 = vmul.f32 %v4602_v49, %v1837_v45 }
 0xd70   :  { %v1656_v58 = vpop.permute.xlu1 %1655 }
 0xd71   :  { %1680 = vmatpush.msra.mxu0 %v1656_v58 }
 0xd72   :  { %4363 = vmatmul.msk.f32.vlgmr.msra.gmra.mxu0 %vm1055_vm10, %v1602_v48 }
 0xd73   :  { %4372 = vmatpush.msk.msrb.mxu0 %vm1123_vm4, %v1868_v26  ;;  %v4510_v26 = vpack.i.bf16 %v5318_v3, %v5312_v27 }
 0xd75   :  { %1890 = vmatpush.msrb.mxu0 %v4508_v60 }
 0xd77   :  { %1908 = vrot.lane.b32.xlu0 %v5104_v13, %s4710_s16 }
 0xd78   :  { %v1405_v7 = vpop.permute.xlu1 %1404 }
 0xd79   :  { %1428 = vmatpush.msrb.mxu1 %v1405_v7 }
 0xd7a   :  { %4350 = vmatmul.msk.f32.vlgmr.msrb.gmra.mxu1 %vm131_vm1, %v5436_v24  ;;  %4373 = vmatmul.msk.f32.vlgmr.msrb.gmra.mxu0 %vm1055_vm10, %v1838_v31 }
 0xd7f   :  { %1686 = vrot.lane.b32.xlu0 %v5318_v3, %s4704_s19 }
 0xd82   :  { %4351 = vmatmul.msk.f32.gmra.mxu1 %vm131_vm1, %v5463_v46  ;;  %v4509_v46 = vunpack.i.h.bf16 %v4507_v35 }
 0xdd6   :  { %v1823_v37 = vpop.xlane.xlu0 %1822 }
 0xdd7   :  { %4609 = vrcp.f32 %v1823_v37  ;;  %v1850_v49 = vand.u32 2147483648, %v1823_v37  ;;  %v1848_v56 = vand.u32 2147483647, %v1823_v37  ;;  %vm1844_vm6 = vweird.f32 %v1823_v37 }
 0xdd9   :  { %v1851_v59 = vor.u32 1.1754944e-38, %v1850_v49  ;;  %vm1849_vm8 = vcmp.eq.f32.partialorder %v1848_v56, 8.507059e+37 }
 0xddd   :  { %v4610_v33 = vpop.eup %4609 }
 0xdde   :  { %v1840_v13 = vmul.f32 %v4610_v33, %v1823_v37  ;;  %vm1845_vm5 = vweird.f32 %v4610_v33 }
 0xddf   :  { %vm1846_vm7 = vmor %vm1844_vm6, %vm1845_vm5 }
 0xde0   :  { %v1841_v38 = vsub.f32 1.0, %v1840_v13 }
 0xde2   :  { %v1842_v63 = vmul.f32 %v4610_v33, %v1841_v38 }
 0xde4   :  { %v1843_v24 = vadd.f32 %v4610_v33, %v1842_v63  ;;  %v5537_v63 = vld [vmem:[%s6092_s6 + $0x8] sm:$0xf] }
 0xde6   :  { %v1847_v61 = vsel %vm1846_vm7, %v4610_v33, %v1843_v24 }
 0xde7   :  { %v1852_v5 = vsel %vm1849_vm8, %v1851_v59, %v1847_v61 }
 0xde8   :  { %v1853_v34 = vmul.f32 %v5489_v52, %v1852_v5  ;;  %v2020_v5 = vperm.slane %v5537_v63, 0 }
 0xde9   :  { %v1909_v42 = vpop.permute.xlu0 %1908 }
 0xdea   :  { %4374 = vmatpush.msk.msra.mxu2 %vm1123_vm4, %v1909_v42 }
 0xdec   :  { %1931 = vmatpush.msra.mxu2 %v4509_v46 }
 0xded   :  { %4375 = vmatmul.msk.f32.vlgmr.msra.gmra.mxu2 %vm1055_vm10, %v1853_v34  ;;  %v2023_v34 = vperm.slane %v5537_v63, 1 }
 0xdef   :  { %v1682_v10 = vpop.f32.mrf.mxu0 }
 0xdf1   :  { %v1687_v57 = vpop.permute.xlu0 %1686 }
 0xdf2   :  { %1710 = vmatpush.msra.mxu1 %v1687_v57 }
 0xdf3   :  { %4364 = vmatmul.msk.f32.vlgmr.msra.gmra.mxu1 %vm131_vm1, %v5472_v44 }
 0xdf7   :  { %v1892_v62 = vpop.f32.mrf.mxu0  ;;  %v1430_v14 = vpop.f32.mrf.mxu1 }
 0xdf8   :  { %4376 = vmatmul.msk.f32.vlgmr.msrb.gmra.mxu3 %vm131_vm1, %v1892_v62  ;;  %v1464_v18 = vadd.f32 %v5460_v12, %v1430_v14  ;;  %v2077_v62 = vld [vmem:[%s6096_s5 + $0x38] sm:$0xff]  ;;  %v2076_v14 = vld [vmem:[%s6096_s5 + $0x30] sm:$0xff] }
 0xdf9   :  { %2094 = vmatpush.msrb.mxu1 %v2077_v62 }
 0xdfb   :  { %4365 = vmatmul.msk.f32.gmra.mxu1 %vm131_vm1, %v1682_v10 }
 0xdfc   :  { %2095 = vmatpush.msrb.mxu1 %v2076_v14 }
 0xdff   :  { %v1433_v29 = vpop.f32.mrf.mxu1 }
 0xe00   :  { %v1467_v40 = vadd.f32 %v5465_v51, %v1433_v29  ;;  %v4515_v51 = vpack.i.bf16 %v5329_v6, %v5323_v9  ;;  %v2075_v29 = vld [vmem:[%s6096_s5 + $0x28] sm:$0xff] }
 0xe01   :  { %2096 = vmatpush.msrb.mxu1 %v2075_v29 }
 0xe70   :  { %v1933_v50 = vpop.f32.mrf.mxu2  ;;  %v1712_v52 = vpop.f32.mrf.mxu1 }
 0xe71   :  { %4377 = vmatmul.msk.f32.gmra.mxu3 %vm131_vm1, %v1933_v50  ;;  %v1718_v20 = vadd.f32 %v1712_v52, %v1464_v18  ;;  %v2074_v50 = vld [vmem:[%s6096_s5 + $0x20] sm:$0xff]  ;;  %v2073_v52 = vld [vmem:[%s6096_s5 + $0x18] sm:$0xff] }
 0xe72   :  { %2097 = vmatpush.msrb.mxu1 %v2074_v50 }
 0xe74   :  { %2098 = vmatpush.msrb.mxu1 %v2073_v52 }
 0xe78   :  { %v1715_v55 = vpop.f32.mrf.mxu1 }
 0xe79   :  { %v1719_v30 = vadd.f32 %v1715_v55, %v1467_v40 }
 0xe7b   :  { %v1963_v1 = vpop.f32.mrf.mxu3 }
 0xe7c   :  { %v1969_v47 = vadd.f32 %v1963_v1, %v1718_v20  ;;  %v2072_v1 = vld [vmem:[%s6096_s5 + $0x10] sm:$0xff] }
 0xe7d   :  { %2099 = vmatpush.msrb.mxu1 %v2072_v1 }
 0xe7e   :  { %v1972_v41 = vadd.f32 %v1971_v0, %v1969_v47  ;;  %v2071_v47 = vld [vmem:[%s6096_s5 + $0x8] sm:$0xff] }
 0xe7f   :  { %2100 = vmatpush.msrb.mxu1 %v2071_v47 }
 0xe80   :  { %v1974_v44 = vadd.f32 %v1972_v41, %v5336_v2  ;;  %v2070_v41 = vld [vmem:[%s6096_s5] sm:$0xff] }
 0xe81   :  { %2101 = vmatpush.msrb.mxu1 %v2070_v41  ;;  %v2158_v41 = vperm.slane %v5537_v63, 3 }
 0xe82   :  { %v1976_v53 = vsel %vm42_vm0, %v1974_v44, 0.0 }
 0xe83   :  { %1977 = vadd.xlane.f32.xlu1 %v1976_v53 }
 0xef4   :  { %v1966_v54 = vpop.f32.mrf.mxu3 }
 0xef5   :  { %v1970_v39 = vadd.f32 %v1966_v54, %v1719_v30 }
 0xef6   :  { %v1978_v43 = vpop.xlane.xlu1 %1977 }
 0xef7   :  { %v1973_v35 = vadd.f32 %v1971_v0, %v1970_v39  ;;  %v1982_v12 = vmul.f32 %v1978_v43, %v5304_v11 }
 0xef9   :  { %v1984_v58 = vsub.f32 %v1974_v44, %v1982_v12  ;;  %v1975_v25 = vadd.f32 %v1973_v35, %v5371_v17 }
 0xefb   :  { %v1979_v48 = vsel %vm42_vm0, %v1975_v25, 0.0  ;;  %v1986_v8 = vmul.f32 %v1984_v58, %v1984_v58 }
 0xefc   :  { %1980 = vadd.xlane.f32.xlu2 %v1979_v48 }
 0xefd   :  { %v1988_v2 = vsel %vm42_vm0, %v1986_v8, 0.0 }
 0xefe   :  { %1989 = vadd.xlane.f32.xlu0 %v1988_v2 }
 0xf12   :  { %4516 = vrot.lane.b32.xlu0 %v4515_v51, %s4706_s21 }
 0xf14   :  { %4511 = vrot.lane.b32.xlu2 %v4510_v26, %s4706_s21 }
 0xf6f   :  { %v1981_v32 = vpop.xlane.xlu2 %1980 }
 0xf70   :  { %v1983_v17 = vmul.f32 %v1981_v32, %v5304_v11 }
 0xf71   :  { %v1990_v60 = vpop.xlane.xlu0 %1989 }
 0xf72   :  { %v5528_v45 = vsub.f32 %v1975_v25, %v1983_v17  ;;  %v1994_v7 = vmul.f32 %v1990_v60, %v5304_v11 }
 0xf74   :  { %v1996_v31 = vadd.f32 1e-05, %v1994_v7  ;;  %v1987_v36 = vmul.f32 %v5528_v45, %v5528_v45 }
 0xf76   :  { %4611 = vrsqrt.f32 %v1996_v31  ;;  %v1991_v9 = vsel %vm42_vm0, %v1987_v36, 0.0  ;;  %vm2004_vm11 = vweird.f32 %v1996_v31 }
 0xf77   :  { %1992 = vadd.xlane.f32.xlu1 %v1991_v9  ;;  %v4512_v27 = vpop.permute.xlu2 %4511 }
 0xf78   :  { %v4514_v3 = vunpack.i.h.bf16 %v4512_v27  ;;  %v4513_v6 = vunpack.i.l.bf16 %v4512_v27 }
 0xf7a   :  { %2057 = vmatpush.msra.mxu0 %v4513_v6 }
 0xf7c   :  { %v4612_v37 = vpop.eup %4611  ;;  %2058 = vmatpush.msra.mxu0 %v4514_v3 }
 0xf7d   :  { %v1999_v33 = vmul.f32 %v4612_v37, %v1996_v31  ;;  %vm2005_vm9 = vweird.f32 %v4612_v37 }
 0xf7e   :  { %vm2006_vm12 = vmor %vm2004_vm11, %vm2005_vm9 }
 0xf7f   :  { %v2000_v13 = vmul.f32 %v4612_v37, %v1999_v33 }
 0xf81   :  { %v2001_v38 = vmul.f32 0.5, %v2000_v13 }
 0xf83   :  { %v2002_v49 = vsub.f32 1.5, %v2001_v38 }
 0xf84   :  { %v4517_v56 = vpop.permute.xlu0 %4516 }
 0xf85   :  { %v2003_v24 = vmul.f32 %v4612_v37, %v2002_v49  ;;  %v4519_v61 = vunpack.i.h.bf16 %v4517_v56  ;;  %v4518_v59 = vunpack.i.l.bf16 %v4517_v56 }
 0xf87   :  { %v2007_v42 = vsel %vm2006_vm12, %v4612_v37, %v2003_v24  ;;  %2059 = vmatpush.msra.mxu0 %v4518_v59  ;;  %v5582_v24 = vld [vmem:[%s6090_s2 + $0x70] sm:$0xff] }
 0xf88   :  { %v2018_v46 = vmul.f32 %v2007_v42, %v1984_v58  ;;  %v4702_v58 = vld [vmem:[%s6092_s6] sm:$0xff]  ;;  %2192 = vmatpush.msrb.mxu2 %v5582_v24 }
 0xf89   :  { %2060 = vmatpush.msra.mxu0 %v4519_v61  ;;  %v2026_v25 = vperm.slane %v4702_v58, 4  ;;  %v2078_v17 = vperm.slane %v4702_v58, 5  ;;  %v5587_v61 = vld [vmem:[%s6090_s2 + $0x60] sm:$0xff] }
 0xf8a   :  { %v2021_v10 = vmul.f32 %v2020_v5, %v2018_v46  ;;  %2193 = vmatpush.msrb.mxu2 %v5587_v61  ;;  %v5599_v46 = vld [vmem:[%s6090_s2 + $0x40] sm:$0xff] }
 0xf8c   :  { %v2024_v57 = vadd.f32 %v2023_v34, %v2021_v10 }
 0xf8e   :  { %4378 = vmatmul.msk.f32.vlgmr.msra.gmra.mxu0 %vm42_vm0, %v2024_v57 }
 0xfea   :  { %v1993_v18 = vpop.xlane.xlu1 %1992 }
 0xfeb   :  { %v1995_v20 = vmul.f32 %v1993_v18, %v5304_v11 }
 0xfed   :  { %v1997_v0 = vadd.f32 1e-05, %v1995_v20 }
 0xfef   :  { %4613 = vrsqrt.f32 %v1997_v0  ;;  %vm2014_vm14 = vweird.f32 %v1997_v0 }
 0xff5   :  { %v4614_v44 = vpop.eup %4613 }
 0xff6   :  { %v2009_v53 = vmul.f32 %v4614_v44, %v1997_v0  ;;  %vm2015_vm13 = vweird.f32 %v4614_v44  ;;  %v2155_v0 = vperm.slane %v5537_v63, 2 }
 0xff7   :  { %vm2016_vm15 = vmor %vm2014_vm14, %vm2015_vm13 }
 0xff8   :  { %v2010_v55 = vmul.f32 %v4614_v44, %v2009_v53 }
 0xffa   :  { %v2011_v40 = vmul.f32 0.5, %v2010_v55 }
 0xffc   :  { %v2012_v30 = vsub.f32 1.5, %v2011_v40 }
 0xffe   :  { %v2013_v54 = vmul.f32 %v4614_v44, %v2012_v30 }
0x1000   :  { %v2017_v39 = vsel %vm2016_vm15, %v4614_v44, %v2013_v54 }
0x1001   :  { %v2019_v43 = vmul.f32 %v2017_v39, %v5528_v45 }
0x1003   :  { %v2022_v35 = vmul.f32 %v2020_v5, %v2019_v43  ;;  %v5593_v5 = vld [vmem:[%s6090_s2 + $0x50] sm:$0xff] }
0x1004   :  { %2194 = vmatpush.msrb.mxu2 %v5593_v5 }
0x1005   :  { %v2025_v12 = vadd.f32 %v2023_v34, %v2022_v35 }
0x1006   :  { %2195 = vmatpush.msrb.mxu2 %v5599_v46 }
0x1007   :  { %4379 = vmatmul.msk.f32.gmra.mxu0 %vm42_vm0, %v2025_v12 }
0x100b   :  { %v2062_v48 = vpop.f32.mrf.mxu0 }
0x100c   :  { %v2063_v8 = vadd.f32 %v2062_v48, %v2026_v25 }
0x100e   :  { %v2068_v2 = vmax.f32 %v2063_v8, 0.0 }
0x1010   :  { %4380 = vmatmul.msk.f32.vlgmr.msrb.gmra.mxu1 %vm2079_vm2, %v2068_v2  ;;  %v5619_v2 = vld [vmem:[%s6092_s6 + $0x10] sm:$0xff] }
0x1084   :  { %v2065_v51 = vpop.f32.mrf.mxu0 }
0x1085   :  { %v2066_v26 = vadd.f32 %v2065_v51, %v2026_v25  ;;  %v2173_v51 = vperm.slane %v5619_v2, 0 }
0x1087   :  { %v2069_v32 = vmax.f32 %v2066_v26, 0.0 }
0x1089   :  { %4381 = vmatmul.msk.f32.gmra.mxu1 %vm2079_vm2, %v2069_v32 }
0x108d   :  { %v2103_v60 = vpop.f32.mrf.mxu1 }
0x108e   :  { %v2104_v45 = vadd.f32 %v2103_v60, %v2078_v17 }
0x1090   :  { %v2109_v7 = vadd.f32 %v2104_v45, %v2024_v57 }
0x1092   :  { %v2111_v31 = vsel %vm42_vm0, %v2109_v7, 0.0 }
0x1093   :  { %2112 = vadd.xlane.f32.xlu1 %v2111_v31 }
0x1106   :  { %v2106_v36 = vpop.f32.mrf.mxu1  ;;  %v2113_v9 = vpop.xlane.xlu1 %2112 }
0x1107   :  { %v2107_v27 = vadd.f32 %v2106_v36, %v2078_v17  ;;  %v2117_v3 = vmul.f32 %v2113_v9, %v5304_v11 }
0x1109   :  { %v2110_v6 = vadd.f32 %v2107_v27, %v2025_v12  ;;  %v2119_v37 = vsub.f32 %v2109_v7, %v2117_v3 }
0x110b   :  { %v2114_v33 = vsel %vm42_vm0, %v2110_v6, 0.0  ;;  %v2121_v13 = vmul.f32 %v2119_v37, %v2119_v37 }
0x110c   :  { %2115 = vadd.xlane.f32.xlu1 %v2114_v33 }
0x110d   :  { %v2123_v38 = vsel %vm42_vm0, %v2121_v13, 0.0 }
0x1114   :  { %2124 = vadd.xlane.f32.xlu1 %v2123_v38 }
0x117f   :  { %v2116_v49 = vpop.xlane.xlu1 %2115 }
0x1180   :  { %v2118_v56 = vmul.f32 %v2116_v49, %v5304_v11 }
0x1182   :  { %v2120_v59 = vsub.f32 %v2110_v6, %v2118_v56 }
0x1184   :  { %v2122_v42 = vmul.f32 %v2120_v59, %v2120_v59 }
0x1186   :  { %v2126_v34 = vsel %vm42_vm0, %v2122_v42, 0.0 }
0x1187   :  { %2127 = vadd.xlane.f32.xlu2 %v2126_v34  ;;  %v2125_v10 = vpop.xlane.xlu1 %2124 }
0x1188   :  { %v2129_v57 = vmul.f32 %v2125_v10, %v5304_v11 }
0x118a   :  { %v2131_v62 = vadd.f32 1e-05, %v2129_v57 }
0x118c   :  { %4615 = vrsqrt.f32 %v2131_v62  ;;  %vm2139_vm5 = vweird.f32 %v2131_v62 }
0x1192   :  { %v4616_v14 = vpop.eup %4615 }
0x1193   :  { %v2134_v29 = vmul.f32 %v4616_v14, %v2131_v62  ;;  %vm2140_vm3 = vweird.f32 %v4616_v14 }
0x1194   :  { %vm2141_vm6 = vmor %vm2139_vm5, %vm2140_vm3 }
0x1195   :  { %v2135_v50 = vmul.f32 %v4616_v14, %v2134_v29 }
0x1197   :  { %v2136_v52 = vmul.f32 0.5, %v2135_v50 }
0x1199   :  { %v2137_v18 = vsub.f32 1.5, %v2136_v52 }
0x119b   :  { %v2138_v20 = vmul.f32 %v4616_v14, %v2137_v18 }
0x119d   :  { %v2142_v1 = vsel %vm2141_vm6, %v4616_v14, %v2138_v20 }
0x119e   :  { %v2153_v47 = vmul.f32 %v2142_v1, %v2119_v37 }
0x11a0   :  { %v2156_v44 = vmul.f32 %v2155_v0, %v2153_v47 }
0x11a2   :  { %v5607_v53 = vadd.f32 %v2158_v41, %v2156_v44 }
0x11a4   :  { %4392 = vmatmul.msk.f32.vlgmr.msrb.gmra.mxu2 %vm42_vm0, %v5607_v53 }
0x11fa   :  { %v2128_v55 = vpop.xlane.xlu2 %2127 }
0x11fb   :  { %v2130_v40 = vmul.f32 %v2128_v55, %v5304_v11 }
0x11fd   :  { %v2132_v30 = vadd.f32 1e-05, %v2130_v40 }
0x11ff   :  { %4617 = vrsqrt.f32 %v2132_v30  ;;  %vm2149_vm8 = vweird.f32 %v2132_v30 }
0x1205   :  { %v4618_v54 = vpop.eup %4617 }
0x1206   :  { %v2144_v39 = vmul.f32 %v4618_v54, %v2132_v30  ;;  %vm2150_vm7 = vweird.f32 %v4618_v54 }
0x1207   :  { %vm2151_vm9 = vmor %vm2149_vm8, %vm2150_vm7 }
0x1208   :  { %v2145_v43 = vmul.f32 %v4618_v54, %v2144_v39 }
0x120a   :  { %v2146_v35 = vmul.f32 0.5, %v2145_v43 }
0x120c   :  { %v2147_v12 = vsub.f32 1.5, %v2146_v35 }
0x120e   :  { %v2148_v58 = vmul.f32 %v4618_v54, %v2147_v12 }
0x1210   :  { %v2152_v63 = vsel %vm2151_vm9, %v4618_v54, %v2148_v58 }
0x1211   :  { %v2154_v25 = vmul.f32 %v2152_v63, %v2120_v59 }
0x1213   :  { %v2157_v48 = vmul.f32 %v2155_v0, %v2154_v25 }
0x1215   :  { %v5612_v8 = vadd.f32 %v2158_v41, %v2157_v48 }
0x1217   :  { %4393 = vmatmul.msk.f32.gmra.mxu2 %vm42_vm0, %v5612_v8 }
0x1227   :  { %v2197_v26 = vpop.f32.mrf.mxu2 }
0x1228   :  { %v5622_v32 = vadd.f32 %v2197_v26, %v2173_v51 }
0x122a   :  { %2204 = vrot.lane.b32.xlu0 %v5622_v32, %s4704_s19 }
0x1232   :  { %2359 = vrot.lane.b32.xlu0 %v5622_v32, %s4705_s20 }
0x123a   :  { %2357 = vrot.lane.b32.xlu0 %v5622_v32, %s4707_s22 }
0x129a   :  { %v2200_v17 = vpop.f32.mrf.mxu2 }
0x129b   :  { %v5630_v60 = vadd.f32 %v2200_v17, %v2173_v51 }
0x129c   :  { %v2205_v45 = vpop.permute.xlu0 %2204 }
0x129d   :  { %2231 = vrot.lane.b32.xlu1 %v5630_v60, %s4704_s19  ;;  %2387 = vrot.lane.b32.xlu0 %v5630_v60, %s4705_s20  ;;  %v4520_v41 = vpack.i.bf16 %v5630_v60, %v5622_v32 }
0x129e   :  { %4394 = vmatpush.xpose.msk.msra.mxu3 %vm131_vm1, %v2205_v45 }
0x12a1   :  { %4395 = vmatmul.msk.f32.vlgmr.msra.gmra.mxu3 %vm131_vm1, %v5622_v32 }
0x12a4   :  { %v2360_v7 = vpop.permute.xlu0 %2359 }
0x12a5   :  { %2385 = vrot.lane.b32.xlu1 %v5630_v60, %s4707_s22  ;;  %4400 = vmatpush.xpose.msk.msrb.mxu3 %vm131_vm1, %v2360_v7 }
0x12ac   :  { %v2358_v31 = vpop.permute.xlu0 %2357 }
0x12ad   :  { %4401 = vmatmul.msk.f32.vlgmr.msrb.gmra.mxu3 %vm131_vm1, %v2358_v31 }
0x130f   :  { %v2232_v36 = vpop.permute.xlu1 %2231  ;;  %v2388_v9 = vpop.permute.xlu0 %2387 }
0x1310   :  { %4396 = vmatpush.xpose.msk.msrb.mxu0 %vm131_vm1, %v2232_v36 }
0x1313   :  { %4397 = vmatmul.msk.f32.vlgmr.msrb.gmra.mxu0 %vm131_vm1, %v5630_v60 }
0x1314   :  { %4402 = vmatpush.xpose.msk.msra.mxu0 %vm131_vm1, %v2388_v9 }
0x1317   :  { %v2386_v27 = vpop.permute.xlu1 %2385 }
0x131b   :  { %4403 = vmatmul.msk.f32.vlgmr.msra.gmra.mxu0 %vm131_vm1, %v2386_v27 }
0x1324   :  { %v2227_v3 = vpop.f32.mrf.mxu3 }
0x1325   :  { %v2257_v6 = vsel %vm131_vm1, %v2227_v3, -inf }
0x1326   :  { %2258 = vmax.xlane.f32.xlu0 %v2257_v6 }
0x1330   :  { %v2382_v37 = vpop.f32.mrf.mxu3 }
0x1331   :  { %v2413_v33 = vsel %vm131_vm1, %v2382_v37, -inf }
0x1332   :  { %2414 = vmax.xlane.f32.xlu2 %v2413_v33 }
0x1390   :  { %v2254_v13 = vpop.f32.mrf.mxu0 }
0x1391   :  { %v2260_v38 = vsel %vm131_vm1, %v2254_v13, -inf }
0x1392   :  { %2261 = vmax.xlane.f32.xlu1 %v2260_v38 }
0x1398   :  { %v2410_v49 = vpop.f32.mrf.mxu0 }
0x1399   :  { %v2259_v56 = vpop.xlane.xlu0 %2258  ;;  %v2416_v59 = vsel %vm131_vm1, %v2410_v49, -inf }
0x139a   :  { %v2263_v42 = vsub.f32 %v2227_v3, %v2259_v56  ;;  %2417 = vmax.xlane.f32.xlu1 %v2416_v59 }
0x139c   :  { %v2265_v34 = vmul.f32 1.442695, %v2263_v42 }
0x139e   :  { %4619 = vpow2.f32 %v2265_v34 }
0x13a4   :  { %v5652_v10 = vpop.eup %4619 }
0x13a5   :  { %v2415_v57 = vpop.xlane.xlu2 %2414  ;;  %v2269_v62 = vsel %vm131_vm1, %v5652_v10, 0.0 }
0x13a6   :  { %v2419_v14 = vsub.f32 %v2382_v37, %v2415_v57  ;;  %2270 = vadd.xlane.f32.xlu2 %v2269_v62 }
0x13a8   :  { %v2421_v29 = vmul.f32 1.442695, %v2419_v14 }
0x13aa   :  { %4621 = vpow2.f32 %v2421_v29 }
0x13b0   :  { %v5656_v50 = vpop.eup %4621 }
0x13b1   :  { %v2425_v52 = vsel %vm131_vm1, %v5656_v50, 0.0 }
0x13b2   :  { %2426 = vadd.xlane.f32.xlu0 %v2425_v52 }
0x13b3   :  { %2581 = vrot.lane.b32.xlu1 %v5622_v32, %s4708_s11 }
0x13bb   :  { %2609 = vrot.lane.b32.xlu1 %v5630_v60, %s4708_s11 }
0x13c3   :  { %2772 = vrot.lane.b32.xlu1 %v5622_v32, %s4710_s16 }
0x13c6   :  { %2461 = vrot.lane.b32.xlu0 %v5622_v32, %s4709_s12 }
0x13ce   :  { %2487 = vrot.lane.b32.xlu0 %v5630_v60, %s4709_s12 }
0x13d6   :  { %2547 = vrot.lane.b32.xlu0 %v5599_v46, %s4712_s4 }
0x13de   :  { %2607 = vrot.lane.b32.xlu0 %v5630_v60, %s4711_s18 }
0x13e6   :  { %2770 = vrot.lane.b32.xlu0 %v5622_v32, %s4713_s23 }
0x1405   :  { %v2262_v18 = vpop.xlane.xlu1 %2261 }
0x1406   :  { %v2264_v20 = vsub.f32 %v2254_v13, %v2262_v18 }
0x1408   :  { %v2267_v0 = vmul.f32 1.442695, %v2264_v20 }
0x140a   :  { %4623 = vpow2.f32 %v2267_v0 }
0x140d   :  { %v2418_v46 = vpop.xlane.xlu1 %2417 }
0x140e   :  { %v2420_v43 = vsub.f32 %v2410_v49, %v2418_v46 }
0x1410   :  { %v5676_v1 = vpop.eup %4623  ;;  %v2423_v12 = vmul.f32 1.442695, %v2420_v43 }
0x1411   :  { %v2272_v47 = vsel %vm131_vm1, %v5676_v1, 0.0 }
0x1412   :  { %2273 = vadd.xlane.f32.xlu2 %v2272_v47  ;;  %4625 = vpow2.f32 %v2423_v12 }
0x1418   :  { %v5692_v58 = vpop.eup %4625 }
0x1419   :  { %v2428_v63 = vsel %vm131_vm1, %v5692_v58, 0.0  ;;  %v2271_v25 = vpop.xlane.xlu2 %2270 }
0x141a   :  { %4627 = vrcp.f32 %v2271_v25  ;;  %v2286_v27 = vand.u32 2147483648, %v2271_v25  ;;  %vm2280_vm12 = vweird.f32 %v2271_v25  ;;  %v2284_v3 = vand.u32 2147483647, %v2271_v25 }
0x141c   :  { %v2287_v33 = vor.u32 1.1754944e-38, %v2286_v27  ;;  %vm2285_vm14 = vcmp.eq.f32.partialorder %v2284_v3, 8.507059e+37 }
0x1420   :  { %v4628_v48 = vpop.eup %4627 }
0x1421   :  { %v2276_v51 = vmul.f32 %v4628_v48, %v2271_v25  ;;  %vm2281_vm11 = vweird.f32 %v4628_v48 }
0x1422   :  { %vm2282_vm13 = vmor %vm2280_vm12, %vm2281_vm11 }
0x1423   :  { %v2277_v26 = vsub.f32 1.0, %v2276_v51 }
0x1425   :  { %v5683_v44 = vpop.xlane.xlu0 %2426  ;;  %v5687_v55 = vpop.permute.xlu1 %2581  ;;  %v2278_v45 = vmul.f32 %v4628_v48, %v2277_v26 }
0x1426   :  { %4629 = vrcp.f32 %v5683_v44  ;;  %v2442_v42 = vand.u32 2147483648, %v5683_v44  ;;  %vm2436_vm3 = vweird.f32 %v5683_v44  ;;  %v2440_v62 = vand.u32 2147483647, %v5683_v44 }
0x1427   :  { %v2279_v31 = vadd.f32 %v4628_v48, %v2278_v45 }
0x1428   :  { %vm2441_vm7 = vcmp.eq.f32.partialorder %v2440_v62, 8.507059e+37 }
0x1429   :  { %v2283_v6 = vsel %vm2282_vm13, %v4628_v48, %v2279_v31 }
0x142a   :  { %4521 = vrot.lane.b32.xlu2 %v4520_v41, %s4706_s21  ;;  %v2288_v38 = vsel %vm2285_vm14, %v2287_v33, %v2283_v6  ;;  %v2443_v41 = vor.u32 1.1754944e-38, %v2442_v42 }
0x142b   :  { %v2289_v29 = vmul.f32 %v5652_v10, %v2288_v38 }
0x142c   :  { %v4630_v17 = vpop.eup %4629 }
0x142d   :  { %v5689_v30 = vpop.permute.xlu1 %2609  ;;  %v2432_v7 = vmul.f32 %v4630_v17, %v5683_v44  ;;  %vm2437_vm15 = vweird.f32 %v4630_v17 }
0x142e   :  { %vm5704_vm5 = vmor %vm2436_vm3, %vm2437_vm15 }
0x142f   :  { %v2433_v36 = vsub.f32 1.0, %v2432_v7 }
0x1431   :  { %v2434_v37 = vmul.f32 %v4630_v17, %v2433_v36 }
0x1432   :  { %2579 = vrot.lane.b32.xlu2 %v5622_v32, %s4711_s18 }
0x1433   :  { %v2435_v49 = vadd.f32 %v4630_v17, %v2434_v37 }
0x1435   :  { %v2773_v35 = vpop.permute.xlu1 %2772  ;;  %v2439_v20 = vsel %vm5704_vm5, %v4630_v17, %v2435_v49 }
0x1436   :  { %v2444_v46 = vsel %vm2441_vm7, %v2443_v41, %v2439_v20 }
0x1437   :  { %v2445_v12 = vmul.f32 %v5656_v50, %v2444_v46 }
0x1438   :  { %v2462_v40 = vpop.permute.xlu0 %2461 }
0x1440   :  { %v2488_v54 = vpop.permute.xlu0 %2487 }
0x1448   :  { %v2548_v39 = vpop.permute.xlu0 %2547 }
0x1449   :  { %2571 = vmatpush.msrb.mxu0 %v2548_v39 }
0x144b   :  { %4418 = vmatpush.xpose.msk.msra.mxu0 %vm131_vm1, %v2773_v35 }
0x1450   :  { %v2608_v31 = vpop.permute.xlu0 %2607 }
0x1458   :  { %v2771_v37 = vpop.permute.xlu0 %2770 }
0x145b   :  { %2429 = vadd.xlane.f32.xlu2 %v2428_v63 }
0x1473   :  { %2683 = vrot.lane.b32.xlu2 %v5622_v32, %s4714_s24 }
0x1485   :  { %v2274_v9 = vpop.xlane.xlu2 %2273 }
0x1486   :  { %4631 = vrcp.f32 %v2274_v9  ;;  %v2301_v18 = vand.u32 2147483648, %v2274_v9  ;;  %v2299_v47 = vand.u32 2147483647, %v2274_v9  ;;  %vm2295_vm8 = vweird.f32 %v2274_v9 }
0x1488   :  { %v2302_v44 = vor.u32 1.1754944e-38, %v2301_v18  ;;  %vm2300_vm11 = vcmp.eq.f32.partialorder %v2299_v47, 8.507059e+37 }
0x148c   :  { %v4632_v13 = vpop.eup %4631 }
0x148d   :  { %v2291_v56 = vmul.f32 %v4632_v13, %v2274_v9  ;;  %v4522_v59 = vpop.permute.xlu2 %4521  ;;  %vm2296_vm6 = vweird.f32 %v4632_v13 }
0x148e   :  { %v4524_v34 = vunpack.i.h.bf16 %v4522_v59  ;;  %v4523_v57 = vunpack.i.l.bf16 %v4522_v59  ;;  %vm2297_vm9 = vmor %vm2295_vm8, %vm2296_vm6 }
0x148f   :  { %v2292_v14 = vsub.f32 1.0, %v2291_v56 }
0x1490   :  { %2326 = vmatpush.msra.mxu1 %v4523_v57  ;;  %2352 = vmatpush.msra.mxu2 %v4524_v34 }
0x1491   :  { %v2293_v0 = vmul.f32 %v4632_v13, %v2292_v14  ;;  %4398 = vmatmul.msk.f32.vlgmr.msra.gmra.mxu1 %vm131_vm1, %v2289_v29 }
0x1492   :  { %2508 = vmatpush.msrb.mxu2 %v2488_v54  ;;  %2482 = vmatpush.msrb.mxu1 %v2462_v40 }
0x1493   :  { %v2294_v10 = vadd.f32 %v4632_v13, %v2293_v0 }
0x1494   :  { %4410 = vmatpush.xpose.msk.msra.mxu1 %vm131_vm1, %v5687_v55 }
0x1495   :  { %v2298_v39 = vsel %vm2297_vm9, %v4632_v13, %v2294_v10  ;;  %v2580_v40 = vpop.permute.xlu2 %2579 }
0x1496   :  { %v2303_v43 = vsel %vm2300_vm11, %v2302_v44, %v2298_v39 }
0x1497   :  { %v2304_v35 = vmul.f32 %v5676_v1, %v2303_v43 }
0x1499   :  { %4399 = vmatmul.msk.f32.vlgmr.msra.gmra.mxu2 %vm131_vm1, %v2304_v35  ;;  %4404 = vmatmul.msk.f32.vlgmr.msrb.gmra.mxu1 %vm131_vm1, %v2445_v12 }
0x149a   :  { %4412 = vmatpush.xpose.msk.msra.mxu2 %vm131_vm1, %v5689_v30 }
0x14a1   :  { %4411 = vmatmul.msk.f32.vlgmr.msra.gmra.mxu1 %vm131_vm1, %v2580_v40 }
0x14ce   :  { %v2430_v55 = vpop.xlane.xlu2 %2429 }
0x14cf   :  { %4633 = vrcp.f32 %v2430_v55  ;;  %v2457_v1 = vand.u32 2147483648, %v2430_v55  ;;  %v2455_v50 = vand.u32 2147483647, %v2430_v55  ;;  %vm2451_vm13 = vweird.f32 %v2430_v55 }
0x14d1   :  { %v2458_v17 = vor.u32 1.1754944e-38, %v2457_v1  ;;  %vm2456_vm15 = vcmp.eq.f32.partialorder %v2455_v50, 8.507059e+37 }
0x14d5   :  { %v4634_v54 = vpop.eup %4633 }
0x14d6   :  { %v2447_v63 = vmul.f32 %v4634_v54, %v2430_v55  ;;  %v2684_v25 = vpop.permute.xlu2 %2683  ;;  %vm2452_vm12 = vweird.f32 %v4634_v54 }
0x14d7   :  { %2704 = vmatpush.msrb.mxu1 %v2684_v25  ;;  %vm2453_vm14 = vmor %vm2451_vm13, %vm2452_vm12 }
0x14d8   :  { %v2448_v48 = vsub.f32 1.0, %v2447_v63 }
0x14da   :  { %v2449_v51 = vmul.f32 %v4634_v54, %v2448_v48 }
0x14dc   :  { %v2450_v26 = vadd.f32 %v4634_v54, %v2449_v51 }
0x14de   :  { %v2454_v45 = vsel %vm2453_vm14, %v4634_v54, %v2450_v26 }
0x14df   :  { %v2459_v30 = vsel %vm2456_vm15, %v2458_v17, %v2454_v45 }
0x14e0   :  { %v2460_v7 = vmul.f32 %v5692_v58, %v2459_v30 }
0x14e2   :  { %4405 = vmatmul.msk.f32.vlgmr.msrb.gmra.mxu2 %vm131_vm1, %v2460_v7 }
0x14ea   :  { %4413 = vmatmul.msk.f32.vlgmr.msra.gmra.mxu2 %vm131_vm1, %v2608_v31 }
0x150e   :  { %v2328_v36 = vpop.f32.mrf.mxu1 }
0x150f   :  { %4408 = vmatmul.msk.f32.vlgmr.msrb.gmra.mxu0 %vm131_vm1, %v2328_v36 }
0x1516   :  { %v5724_v9 = vpop.f32.mrf.mxu1 }
0x151c   :  { %v2354_v27 = vpop.f32.mrf.mxu2 }
0x151d   :  { %4409 = vmatmul.msk.f32.gmra.mxu0 %vm131_vm1, %v2354_v27 }
0x151e   :  { %v2604_v3 = vpop.f32.mrf.mxu1 }
0x151f   :  { %v2635_v6 = vsel %vm131_vm1, %v2604_v3, -inf }
0x1520   :  { %2636 = vmax.xlane.f32.xlu1 %v2635_v6 }
0x1525   :  { %4419 = vmatmul.msk.f32.vlgmr.msra.gmra.mxu0 %vm131_vm1, %v2771_v37 }
0x1565   :  { %v5729_v58 = vpop.f32.mrf.mxu2 }
0x156d   :  { %v2632_v33 = vpop.f32.mrf.mxu2 }
0x156e   :  { %v2638_v13 = vsel %vm131_vm1, %v2632_v33, -inf }
0x156f   :  { %2639 = vmax.xlane.f32.xlu2 %v2638_v13 }
0x1587   :  { %2800 = vrot.lane.b32.xlu2 %v5630_v60, %s4710_s16 }
0x158c   :  { %v5734_v38 = vpop.f32.mrf.mxu0 }
0x1593   :  { %v2637_v49 = vpop.xlane.xlu1 %2636 }
0x1594   :  { %v2641_v56 = vsub.f32 %v2604_v3, %v2637_v49 }
0x1596   :  { %v2643_v59 = vmul.f32 1.442695, %v2641_v56 }
0x1598   :  { %4635 = vpow2.f32 %v2643_v59 }
0x159a   :  { %v5736_v42 = vpop.f32.mrf.mxu0 }
0x159e   :  { %v4636_v34 = vpop.eup %4635 }
0x159f   :  { %v2647_v57 = vsel %vm131_vm1, %v4636_v34, 0.0 }
0x15a0   :  { %2648 = vadd.xlane.f32.xlu0 %v2647_v57 }
0x15a2   :  { %v2795_v62 = vpop.f32.mrf.mxu0 }
0x15a3   :  { %v2826_v14 = vsel %vm131_vm1, %v2795_v62, -inf }
0x15a4   :  { %2827 = vmax.xlane.f32.xlu1 %v2826_v14 }
0x15b4   :  { %2798 = vrot.lane.b32.xlu0 %v5630_v60, %s4713_s23 }
0x15bc   :  { %2874 = vrot.lane.b32.xlu0 %v5622_v32, %s4715_s25 }
0x15e2   :  { %v2640_v29 = vpop.xlane.xlu2 %2639 }
0x15e3   :  { %v2642_v52 = vsub.f32 %v2632_v33, %v2640_v29 }
0x15e5   :  { %v2645_v18 = vmul.f32 1.442695, %v2642_v52 }
0x15e7   :  { %4637 = vpow2.f32 %v2645_v18 }
0x15ea   :  { %v2801_v20 = vpop.permute.xlu2 %2800 }
0x15eb   :  { %4420 = vmatpush.xpose.msk.msra.mxu1 %vm131_vm1, %v2801_v20 }
0x15ed   :  { %v5745_v0 = vpop.eup %4637 }
0x15ee   :  { %v2650_v47 = vsel %vm131_vm1, %v5745_v0, 0.0 }
0x15ef   :  { %2651 = vadd.xlane.f32.xlu2 %v2650_v47 }
0x1607   :  { %2736 = vrot.lane.b32.xlu2 %v5587_v61, %s4712_s4 }
0x160f   :  { %2900 = vrot.lane.b32.xlu2 %v5630_v60, %s4715_s25 }
0x1613   :  { %v2649_v32 = vpop.xlane.xlu0 %2648 }
0x1614   :  { %4639 = vrcp.f32 %v2649_v32  ;;  %v2664_v35 = vand.u32 2147483648, %v2649_v32  ;;  %v2662_v40 = vand.u32 2147483647, %v2649_v32  ;;  %vm2658_vm5 = vweird.f32 %v2649_v32 }
0x1616   :  { %v2665_v61 = vor.u32 1.1754944e-38, %v2664_v35  ;;  %vm2663_vm7 = vcmp.eq.f32.partialorder %v2662_v40, 8.507059e+37 }
0x1617   :  { %v2828_v41 = vpop.xlane.xlu1 %2827 }
0x1618   :  { %v2832_v10 = vsub.f32 %v2795_v62, %v2828_v41 }
0x161a   :  { %v4640_v46 = vpop.eup %4639  ;;  %v2834_v44 = vmul.f32 1.442695, %v2832_v10 }
0x161b   :  { %v2654_v39 = vmul.f32 %v4640_v46, %v2649_v32  ;;  %vm2659_vm3 = vweird.f32 %v4640_v46 }
0x161c   :  { %4641 = vpow2.f32 %v2834_v44  ;;  %vm2660_vm6 = vmor %vm2658_vm5, %vm2659_vm3 }
0x161d   :  { %v2655_v43 = vsub.f32 1.0, %v2654_v39 }
0x161f   :  { %v2656_v12 = vmul.f32 %v4640_v46, %v2655_v43 }
0x1621   :  { %v2657_v55 = vadd.f32 %v4640_v46, %v2656_v12 }
0x1622   :  { %v4642_v54 = vpop.eup %4641 }
0x1623   :  { %v2661_v63 = vsel %vm2660_vm6, %v4640_v46, %v2657_v55  ;;  %v2838_v25 = vsel %vm131_vm1, %v4642_v54, 0.0 }
0x1624   :  { %v2666_v48 = vsel %vm2663_vm7, %v2665_v61, %v2661_v63  ;;  %2839 = vadd.xlane.f32.xlu1 %v2838_v25 }
0x1625   :  { %v2667_v1 = vmul.f32 %v4636_v34, %v2666_v48 }
0x1626   :  { %v2799_v51 = vpop.permute.xlu0 %2798 }
0x1627   :  { %4414 = vmatmul.msk.f32.vlgmr.msrb.gmra.mxu1 %vm131_vm1, %v2667_v1 }
0x162e   :  { %v2875_v18 = vpop.permute.xlu0 %2874 }
0x162f   :  { %4421 = vmatmul.msk.f32.vlgmr.msra.gmra.mxu1 %vm131_vm1, %v2799_v51 }
0x163d   :  { %2709 = vrot.lane.b32.xlu1 %v5630_v60, %s4714_s24 }
0x1645   :  { %2514 = vrot.lane.b32.xlu1 %v5593_v5, %s4712_s4 }
0x164d   :  { %2927 = vrot.lane.b32.xlu1 %v5582_v24, %s4712_s4 }
0x1662   :  { %v2652_v50 = vpop.xlane.xlu2 %2651 }
0x1663   :  { %4643 = vrcp.f32 %v2652_v50  ;;  %v2679_v37 = vand.u32 2147483648, %v2652_v50  ;;  %vm2673_vm9 = vweird.f32 %v2652_v50  ;;  %v2677_v24 = vand.u32 2147483647, %v2652_v50 }
0x1665   :  { %v2680_v49 = vor.u32 1.1754944e-38, %v2679_v37  ;;  %vm2678_vm12 = vcmp.eq.f32.partialorder %v2677_v24, 8.507059e+37 }
0x1669   :  { %v4644_v45 = vpop.eup %4643 }
0x166a   :  { %v2737_v26 = vpop.permute.xlu2 %2736  ;;  %v2669_v7 = vmul.f32 %v4644_v45, %v2652_v50  ;;  %vm2674_vm8 = vweird.f32 %v4644_v45 }
0x166b   :  { %vm2675_vm11 = vmor %vm2673_vm9, %vm2674_vm8 }
0x166c   :  { %v2670_v31 = vsub.f32 1.0, %v2669_v7 }
0x166e   :  { %v2671_v27 = vmul.f32 %v4644_v45, %v2670_v31  ;;  %v2961_v31 = vperm.slane %v5619_v2, 1 }
0x1670   :  { %v2672_v6 = vadd.f32 %v4644_v45, %v2671_v27 }
0x1672   :  { %v2901_v17 = vpop.permute.xlu2 %2900  ;;  %v2676_v33 = vsel %vm2675_vm11, %v4644_v45, %v2672_v6 }
0x1673   :  { %2921 = vmatpush.msrb.mxu0 %v2901_v17  ;;  %v2681_v56 = vsel %vm2678_vm12, %v2680_v49, %v2676_v33  ;;  %v5798_v49 = vld [vmem:[%s6090_s2 + $0x68] sm:$0xff] }
0x1674   :  { %v2682_v52 = vmul.f32 %v5745_v0, %v2681_v56  ;;  %v5811_v56 = vld [vmem:[%s6090_s2 + $0x48] sm:$0xff] }
0x1697   :  { %v2840_v30 = vpop.xlane.xlu1 %2839 }
0x1698   :  { %4645 = vrcp.f32 %v2840_v30  ;;  %v2855_v62 = vand.u32 2147483648, %v2840_v30  ;;  %vm2849_vm14 = vweird.f32 %v2840_v30  ;;  %v2853_v14 = vand.u32 2147483647, %v2840_v30 }
0x169a   :  { %v2856_v47 = vor.u32 1.1754944e-38, %v2855_v62  ;;  %vm2854_vm3 = vcmp.eq.f32.partialorder %v2853_v14, 8.507059e+37 }
0x169e   :  { %v4646_v36 = vpop.eup %4645 }
0x169f   :  { %v2845_v3 = vmul.f32 %v4646_v36, %v2840_v30  ;;  %vm2850_vm13 = vweird.f32 %v4646_v36 }
0x16a0   :  { %vm2851_vm15 = vmor %vm2849_vm14, %vm2850_vm13 }
0x16a1   :  { %v2846_v5 = vsub.f32 1.0, %v2845_v3 }
0x16a3   :  { %v2847_v13 = vmul.f32 %v4646_v36, %v2846_v5 }
0x16a4   :  { %v2706_v60 = vpop.f32.mrf.mxu1 }
0x16a5   :  { %v2848_v34 = vadd.f32 %v4646_v36, %v2847_v13 }
0x16a7   :  { %v2852_v20 = vsel %vm2851_vm15, %v4646_v36, %v2848_v34 }
0x16a8   :  { %v2857_v32 = vsel %vm2854_vm3, %v2856_v47, %v2852_v20 }
0x16a9   :  { %v2858_v10 = vmul.f32 %v4642_v54, %v2857_v32 }
0x16ac   :  { %v2823_v59 = vpop.f32.mrf.mxu1 }
0x16ad   :  { %v2829_v57 = vsel %vm131_vm1, %v2823_v59, -inf }
0x16ae   :  { %2830 = vmax.xlane.f32.xlu0 %v2829_v57 }
0x16af   :  { %v2710_v29 = vpop.permute.xlu1 %2709 }
0x16b0   :  { %2730 = vmatpush.msrb.mxu2 %v2710_v29 }
0x16b1   :  { %4415 = vmatmul.msk.f32.vlgmr.msrb.gmra.mxu2 %vm131_vm1, %v2682_v52 }
0x16b2   :  { %2895 = vmatpush.msra.mxu2 %v2875_v18 }
0x16b7   :  { %v2515_v41 = vpop.permute.xlu1 %2514 }
0x16b8   :  { %2538 = vmatpush.msra.mxu3 %v2515_v41 }
0x16b9   :  { %4406 = vmatmul.msk.f32.vlgmr.msra.gmra.mxu3 %vm131_vm1, %v5724_v9  ;;  %4422 = vmatmul.msk.f32.vlgmr.msra.gmra.mxu2 %vm131_vm1, %v2858_v10 }
0x16ba   :  { %2760 = vmatpush.msrb.mxu3 %v2737_v26 }
0x16bf   :  { %v2928_v0 = vpop.permute.xlu1 %2927 }
0x16c0   :  { %2951 = vmatpush.msrb.mxu1 %v2928_v0 }
0x16c1   :  { %4407 = vmatmul.msk.f32.gmra.mxu3 %vm131_vm1, %v5729_v58 }
0x16c9   :  { %4416 = vmatmul.msk.f32.vlgmr.msrb.gmra.mxu3 %vm131_vm1, %v2706_v60 }
0x1721   :  { %v2831_v46 = vpop.xlane.xlu0 %2830 }
0x1722   :  { %v2833_v44 = vsub.f32 %v2823_v59, %v2831_v46 }
0x1724   :  { %v2836_v39 = vmul.f32 1.442695, %v2833_v44 }
0x1726   :  { %4647 = vpow2.f32 %v2836_v39  ;;  %v3010_v39 = vperm.slane %v5619_v2, 6 }
0x172c   :  { %v4648_v43 = vpop.eup %4647 }
0x172d   :  { %v2841_v35 = vsel %vm131_vm1, %v4648_v43, 0.0 }
0x172e   :  { %2842 = vadd.xlane.f32.xlu1 %v2841_v35  ;;  %v3013_v35 = vperm.slane %v5619_v2, 7 }
0x1734   :  { %v2732_v12 = vpop.f32.mrf.mxu2 }
0x1735   :  { %4417 = vmatmul.msk.f32.gmra.mxu3 %vm131_vm1, %v2732_v12 }
0x173c   :  { %v2897_v9 = vpop.f32.mrf.mxu2  ;;  %v2540_v40 = vpop.f32.mrf.mxu3 }
0x173d   :  { %4424 = vmatmul.msk.f32.vlgmr.msrb.gmra.mxu1 %vm131_vm1, %v2897_v9  ;;  %v2574_v30 = vadd.f32 %v5734_v38, %v2540_v40 }
0x1744   :  { %v2543_v63 = vpop.f32.mrf.mxu3 }
0x1747   :  { %3057 = vrot.lane.b32.xlu1 %v5073_v4, %s4706_s21 }
0x174c   :  { %v2762_v4 = vpop.f32.mrf.mxu3 }
0x174d   :  { %v2768_v7 = vadd.f32 %v2762_v4, %v2574_v30 }
0x17a1   :  { %v2843_v58 = vpop.xlane.xlu1 %2842 }
0x17a2   :  { %4649 = vrcp.f32 %v2843_v58  ;;  %v2870_v25 = vand.u32 2147483648, %v2843_v58  ;;  %v2868_v1 = vand.u32 2147483647, %v2843_v58  ;;  %vm2864_vm6 = vweird.f32 %v2843_v58 }
0x17a4   :  { %v2871_v50 = vor.u32 1.1754944e-38, %v2870_v25  ;;  %vm2869_vm8 = vcmp.eq.f32.partialorder %v2868_v1, 8.507059e+37  ;;  %v6123_v1 = vld [vmem:[#allocation11_spill] sm:$0xff] }
0x17a8   :  { %v4650_v55 = vpop.eup %4649 }
0x17a9   :  { %v2860_v54 = vmul.f32 %v4650_v55, %v2843_v58  ;;  %vm2865_vm5 = vweird.f32 %v4650_v55 }
0x17aa   :  { %vm2866_vm7 = vmor %vm2864_vm6, %vm2865_vm5 }
0x17ab   :  { %v2861_v61 = vsub.f32 1.0, %v2860_v54 }
0x17ad   :  { %v2862_v48 = vmul.f32 %v4650_v55, %v2861_v61 }
0x17af   :  { %v2863_v51 = vadd.f32 %v4650_v55, %v2862_v48 }
0x17b1   :  { %v2867_v26 = vsel %vm2866_vm7, %v4650_v55, %v2863_v51  ;;  %v6124_v51 = vld [vmem:[#allocation5_spill] sm:$0xff] }
0x17b2   :  { %v2872_v17 = vsel %vm2869_vm8, %v2871_v50, %v2867_v26 }
0x17b3   :  { %v2873_v45 = vmul.f32 %v4648_v43, %v2872_v17  ;;  %v6125_v17 = vld [vmem:[#allocation2_spill] sm:$0xff] }
0x17b5   :  { %4423 = vmatmul.msk.f32.vlgmr.msrb.gmra.mxu0 %vm131_vm1, %v2873_v45 }
0x17b9   :  { %v3058_v48 = vpop.permute.xlu1 %3057 }
0x17ba   :  { %v2953_v36 = vpop.f32.mrf.mxu1 }
0x17bb   :  { %v2959_v27 = vadd.f32 %v2953_v36, %v2768_v7 }
0x17bd   :  { %v2962_v3 = vadd.f32 %v2961_v31, %v2959_v27 }
0x17bf   :  { %v2964_v60 = vadd.f32 %v2962_v3, %v5607_v53  ;;  %v5793_v53 = vld [vmem:[%s6090_s2 + $0x78] sm:$0xff] }
0x17c0   :  { %3035 = vmatpush.msrb.mxu2 %v5793_v53 }
0x17c1   :  { %v2966_v6 = vsel %vm42_vm0, %v2964_v60, 0.0 }
0x17c2   :  { %2967 = vadd.xlane.f32.xlu0 %v2966_v6  ;;  %3036 = vmatpush.msrb.mxu2 %v5798_v49 }
0x1832   :  { %v2923_v5 = vpop.f32.mrf.mxu0 }
0x1833   :  { %4425 = vmatmul.msk.f32.gmra.mxu1 %vm131_vm1, %v2923_v5 }
0x1835   :  { %v2968_v37 = vpop.xlane.xlu0 %2967 }
0x1836   :  { %v2972_v24 = vmul.f32 %v2968_v37, %v5304_v11 }
0x1838   :  { %v2974_v33 = vsub.f32 %v2964_v60, %v2972_v24 }
0x183a   :  { %v2976_v13 = vmul.f32 %v2974_v33, %v2974_v33 }
0x183c   :  { %v2978_v38 = vsel %vm42_vm0, %v2976_v13, 0.0 }
0x183d   :  { %2979 = vadd.xlane.f32.xlu2 %v2978_v38 }
0x1855   :  { %3273 = vrot.lane.b32.xlu2 %v5109_v15, %s4709_s12  ;;  %v5804_v15 = vld [vmem:[%s6090_s2 + $0x58] sm:$0xff]  ;;  %s4717_s2 = smov 24  }
0x1856   :  { %3037 = vmatpush.msrb.mxu2 %v5804_v15 }
0x1858   :  { %3038 = vmatpush.msrb.mxu2 %v5811_v56 }
0x185d   :  { %3318 = vrot.lane.b32.xlu2 %v5172_v21, %s4709_s12  ;;  %v2765_v21 = vpop.f32.mrf.mxu3 }
0x1865   :  { %3316 = vrot.lane.b32.xlu2 %v5120_v19, %s4709_s12  ;;  %v2577_v19 = vadd.f32 %v5736_v42, %v2543_v63 }
0x1867   :  { %v2769_v59 = vadd.f32 %v2765_v21, %v2577_v19 }
0x18b0   :  { %v2956_v34 = vpop.f32.mrf.mxu1  ;;  %v2980_v57 = vpop.xlane.xlu2 %2979 }
0x18b1   :  { %v2960_v62 = vadd.f32 %v2956_v34, %v2769_v59  ;;  %v2984_v14 = vmul.f32 %v2980_v57, %v5304_v11  ;;  %v6126_v59 = vld [vmem:[#allocation3_spill] sm:$0xff]  ;;  %v6127_v34 = vld [vmem:[#allocation13_spill] sm:$0xff]  ;;  %v6128_v57 = vld [vmem:[#allocation16_spill] sm:$0xff] }
0x18b3   :  { %v2963_v29 = vadd.f32 %v2961_v31, %v2960_v62  ;;  %v2986_v52 = vadd.f32 1e-05, %v2984_v14 }
0x18b5   :  { %4651 = vrsqrt.f32 %v2986_v52  ;;  %v2965_v42 = vadd.f32 %v2963_v29, %v5612_v8  ;;  %vm2994_vm11 = vweird.f32 %v2986_v52 }
0x18b7   :  { %v2969_v18 = vsel %vm42_vm0, %v2965_v42, 0.0 }
0x18b8   :  { %2970 = vadd.xlane.f32.xlu0 %v2969_v18  ;;  %v3274_v20 = vpop.permute.xlu2 %3273 }
0x18bb   :  { %v4652_v47 = vpop.eup %4651 }
0x18bc   :  { %v2989_v32 = vmul.f32 %v4652_v47, %v2986_v52  ;;  %vm2995_vm9 = vweird.f32 %v4652_v47 }
0x18bd   :  { %vm2996_vm12 = vmor %vm2994_vm11, %vm2995_vm9 }
0x18be   :  { %v2990_v41 = vmul.f32 %v4652_v47, %v2989_v32 }
0x18c0   :  { %v2991_v10 = vmul.f32 0.5, %v2990_v41  ;;  %v3319_v0 = vpop.permute.xlu2 %3318  ;;  %v6129_v41 = vld [vmem:[#allocation7_spill] sm:$0xff] }
0x18c1   :  { %4441 = vmatpush.xpose.msk.msra.mxu2 %vm131_vm1, %v3319_v0  ;;  %v6131_v0 = vld [vmem:[#allocation10_spill] sm:$0xff] }
0x18c2   :  { %v2992_v46 = vsub.f32 1.5, %v2991_v10  ;;  %v6130_v10 = vld [vmem:[#allocation6_spill] sm:$0xff] }
0x18c4   :  { %v2993_v44 = vmul.f32 %v4652_v47, %v2992_v46 }
0x18c6   :  { %v2997_v43 = vsel %vm2996_vm12, %v4652_v47, %v2993_v44 }
0x18c7   :  { %v3008_v8 = vmul.f32 %v2997_v43, %v2974_v33 }
0x18c8   :  { %v3317_v12 = vpop.permute.xlu2 %3316 }
0x18c9   :  { %v3011_v9 = vmul.f32 %v3010_v39, %v3008_v8  ;;  %4442 = vmatpush.xpose.msk.msra.mxu2 %vm131_vm1, %v3317_v12 }
0x18cb   :  { %v5822_v58 = vadd.f32 %v3013_v35, %v3011_v9 }
0x18cc   :  { %3059 = vrot.lane.b32.xlu0 %v5113_v16, %s4706_s21  ;;  %v3016_v16 = vperm.slane %v5619_v2, 2 }
0x18cd   :  { %4426 = vmatmul.msk.f32.vlgmr.msrb.gmra.mxu2 %vm42_vm0, %v5822_v58 }
0x192b   :  { %v2971_v40 = vpop.xlane.xlu0 %2970 }
0x192c   :  { %v2973_v55 = vmul.f32 %v2971_v40, %v5304_v11 }
0x192e   :  { %v2975_v54 = vsub.f32 %v2965_v42, %v2973_v55 }
0x1930   :  { %v2977_v61 = vmul.f32 %v2975_v54, %v2975_v54 }
0x1932   :  { %v2981_v63 = vsel %vm42_vm0, %v2977_v61, 0.0 }
0x1933   :  { %2982 = vadd.xlane.f32.xlu0 %v2981_v63 }
0x193e   :  { %v3060_v25 = vpop.permute.xlu0 %3059 }
0x193f   :  { %4428 = vmatpush.xpose.msk.msra.mxu3 %vm131_vm1, %v3060_v25 }
0x1943   :  { %4429 = vmatpush.xpose.msk.msra.mxu3 %vm131_vm1, %v3058_v48 }
0x1947   :  { %3275 = vrot.lane.b32.xlu0 %v6123_v1, %s4709_s12  ;;  %s4719_s12 = smov 8  }
0x194f   :  { %3101 = vrot.lane.b32.xlu0 %v6124_v51, %s4706_s21 }
0x1950   :  { %v3040_v50 = vpop.f32.mrf.mxu2 }
0x1951   :  { %v5837_v26 = vadd.f32 %v3040_v50, %v3016_v16 }
0x1953   :  { %3260 = vrot.lane.b32.xlu1 %v5837_v26, %s4707_s22  ;;  %4430 = vmatmul.msk.f32.vlgmr.msra.gmra.mxu3 %vm131_vm1, %v5837_v26 }
0x195b   :  { %3099 = vrot.lane.b32.xlu1 %v6125_v17, %s4706_s21 }
0x19a6   :  { %v2983_v45 = vpop.xlane.xlu0 %2982 }
0x19a7   :  { %v2985_v4 = vmul.f32 %v2983_v45, %v5304_v11 }
0x19a9   :  { %v2987_v30 = vadd.f32 1e-05, %v2985_v4 }
0x19ab   :  { %4653 = vrsqrt.f32 %v2987_v30  ;;  %vm3004_vm14 = vweird.f32 %v2987_v30 }
0x19b1   :  { %v4654_v2 = vpop.eup %4653 }
0x19b2   :  { %v2999_v7 = vmul.f32 %v4654_v2, %v2987_v30  ;;  %vm3005_vm13 = vweird.f32 %v4654_v2 }
0x19b3   :  { %vm3006_vm15 = vmor %vm3004_vm14, %vm3005_vm13 }
0x19b4   :  { %v3000_v31 = vmul.f32 %v4654_v2, %v2999_v7 }
0x19b6   :  { %v3001_v36 = vmul.f32 0.5, %v3000_v31  ;;  %v6132_v31 = vld [vmem:[#allocation9_spill] sm:$0xff] }
0x19b8   :  { %v3002_v27 = vsub.f32 1.5, %v3001_v36  ;;  %v6133_v36 = vld [vmem:[#allocation15_spill] sm:$0xff] }
0x19b9   :  { %v3276_v3 = vpop.permute.xlu0 %3275 }
0x19ba   :  { %v3003_v60 = vmul.f32 %v4654_v2, %v3002_v27  ;;  %4438 = vmatpush.xpose.msk.msra.mxu1 %vm131_vm1, %v3276_v3  ;;  %v6134_v3 = vld [vmem:[#allocation4_spill] sm:$0xff] }
0x19bc   :  { %v3007_v6 = vsel %vm3006_vm15, %v4654_v2, %v3003_v60  ;;  %v6135_v60 = vld [vmem:[#allocation12_spill] sm:$0xff] }
0x19bd   :  { %v3009_v5 = vmul.f32 %v3007_v6, %v2975_v54 }
0x19be   :  { %4439 = vmatpush.xpose.msk.msra.mxu1 %vm131_vm1, %v3274_v20 }
0x19bf   :  { %v3012_v37 = vmul.f32 %v3010_v39, %v3009_v5 }
0x19c1   :  { %v3102_v24 = vpop.permute.xlu0 %3101  ;;  %v5848_v33 = vadd.f32 %v3013_v35, %v3012_v37 }
0x19c2   :  { %4431 = vmatpush.xpose.msk.msra.mxu0 %vm131_vm1, %v3102_v24 }
0x19c3   :  { %4427 = vmatmul.msk.f32.gmra.mxu2 %vm42_vm0, %v5848_v33 }
0x19c5   :  { %v3261_v13 = vpop.permute.xlu1 %3260 }
0x19c6   :  { %4440 = vmatmul.msk.f32.vlgmr.msra.gmra.mxu1 %vm131_vm1, %v3261_v13 }
0x19cd   :  { %v3100_v38 = vpop.permute.xlu1 %3099 }
0x19ce   :  { %4432 = vmatpush.xpose.msk.msra.mxu0 %vm131_vm1, %v3100_v38 }
0x19d6   :  { %v3085_v21 = vpop.f32.mrf.mxu3 }
0x19d7   :  { %v3130_v19 = vsel %vm1055_vm10, %v3085_v21, -inf }
0x19d8   :  { %3131 = vmax.xlane.f32.xlu0 %v3130_v19 }
0x19ec   :  { %3189 = vrot.lane.b32.xlu0 %v6126_v59, %s4712_s4 }
0x19f4   :  { %3407 = vrot.lane.b32.xlu0 %v6127_v34, %s4717_s2 }
0x19fc   :  { %3557 = vrot.lane.b32.xlu0 %v6128_v57, %s4714_s24 }
0x1a43   :  { %v3300_v62 = vpop.f32.mrf.mxu1 }
0x1a44   :  { %v3346_v14 = vsel %vm1055_vm10, %v3300_v62, -inf }
0x1a45   :  { %3347 = vmax.xlane.f32.xlu1 %v3346_v14 }
0x1a46   :  { %v3043_v29 = vpop.f32.mrf.mxu2 }
0x1a47   :  { %v5863_v52 = vadd.f32 %v3043_v29, %v3016_v16 }
0x1a49   :  { %4433 = vmatmul.msk.f32.vlgmr.msra.gmra.mxu0 %vm131_vm1, %v5863_v52 }
0x1a4b   :  { %v3132_v42 = vpop.xlane.xlu0 %3131 }
0x1a4c   :  { %v3136_v18 = vsub.f32 %v3085_v21, %v3132_v42 }
0x1a4e   :  { %v3138_v20 = vmul.f32 1.442695, %v3136_v18 }
0x1a50   :  { %4655 = vpow2.f32 %v3138_v20 }
0x1a56   :  { %v4656_v47 = vpop.eup %4655 }
0x1a57   :  { %v3142_v32 = vsel %vm1055_vm10, %v4656_v47, 0.0 }
0x1a58   :  { %3143 = vadd.xlane.f32.xlu2 %v3142_v32 }
0x1a5e   :  { %3191 = vrot.lane.b32.xlu1 %v6129_v41, %s4712_s4  ;;  %v3190_v9 = vpop.permute.xlu0 %3189 }
0x1a66   :  { %3405 = vrot.lane.b32.xlu1 %v6130_v10, %s4717_s2  ;;  %v3408_v61 = vpop.permute.xlu0 %3407 }
0x1a6e   :  { %3303 = vrot.lane.b32.xlu1 %v5863_v52, %s4707_s22  ;;  %v3558_v2 = vpop.permute.xlu0 %3557  ;;  %s4718_s22 = smov 16  }
0x1a70   :  { %3555 = vrot.lane.b32.xlu2 %v6131_v0, %s4714_s24 }
0x1ab8   :  { %v3348_v46 = vpop.xlane.xlu1 %3347 }
0x1ab9   :  { %v3352_v44 = vsub.f32 %v3300_v62, %v3348_v46 }
0x1abb   :  { %v3354_v39 = vmul.f32 1.442695, %v3352_v44  ;;  %v6136_v44 = vld [vmem:[#allocation14_spill] sm:$0xff] }
0x1abd   :  { %4657 = vpow2.f32 %v3354_v39  ;;  %v6137_v39 = vld [vmem:[#allocation8_spill] sm:$0xff] }
0x1ac3   :  { %v5876_v43 = vpop.eup %4657 }
0x1ac4   :  { %v3358_v8 = vsel %vm1055_vm10, %v5876_v43, 0.0 }
0x1ac5   :  { %3359 = vadd.xlane.f32.xlu0 %v3358_v8  ;;  %v6139_v8 = vld [vmem:[#allocation18_spill] sm:$0xff] }
0x1ac6   :  { %v3127_v35 = vpop.f32.mrf.mxu0 }
0x1ac7   :  { %v3133_v12 = vsel %vm1055_vm10, %v3127_v35, -inf }
0x1ac8   :  { %3134 = vmax.xlane.f32.xlu1 %v3133_v12 }
0x1acb   :  { %v3144_v40 = vpop.xlane.xlu2 %3143 }
0x1acc   :  { %4659 = vrcp.f32 %v3144_v40  ;;  %v3159_v48 = vand.u32 2147483648, %v3144_v40  ;;  %v3157_v16 = vand.u32 2147483647, %v3144_v40  ;;  %vm3153_vm5 = vweird.f32 %v3144_v40 }
0x1ace   :  { %v3160_v17 = vor.u32 1.1754944e-38, %v3159_v48  ;;  %vm3158_vm7 = vcmp.eq.f32.partialorder %v3157_v16, 8.507059e+37 }
0x1ad0   :  { %v3192_v55 = vpop.permute.xlu1 %3191 }
0x1ad1   :  { %4434 = vmatpush.msk.msrb.mxu3 %vm1123_vm4, %v3192_v55 }
0x1ad2   :  { %v4660_v54 = vpop.eup %4659 }
0x1ad3   :  { %v3149_v63 = vmul.f32 %v4660_v54, %v3144_v40  ;;  %3214 = vmatpush.msrb.mxu3 %v3190_v9  ;;  %vm3154_vm3 = vweird.f32 %v4660_v54  ;;  %v3556_v27 = vpop.permute.xlu2 %3555 }
0x1ad4   :  { %vm3155_vm6 = vmor %vm3153_vm5, %vm3154_vm3 }
0x1ad5   :  { %4444 = vmatpush.msk.msra.mxu3 %vm1123_vm4, %v3408_v61  ;;  %v3150_v25 = vsub.f32 1.0, %v3149_v63 }
0x1ad7   :  { %v3151_v1 = vmul.f32 %v4660_v54, %v3150_v25 }
0x1ad8   :  { %v3406_v51 = vpop.permute.xlu1 %3405 }
0x1ad9   :  { %v3152_v50 = vadd.f32 %v4660_v54, %v3151_v1  ;;  %3542 = vrot.lane.b32.xlu0 %v5837_v26, %s4711_s18  ;;  %3430 = vmatpush.msra.mxu3 %v3406_v51 }
0x1adb   :  { %v3156_v45 = vsel %vm3155_vm6, %v4660_v54, %v3152_v50 }
0x1adc   :  { %v3161_v4 = vsel %vm3158_vm7, %v3160_v17, %v3156_v45 }
0x1add   :  { %v3162_v30 = vmul.f32 %v4656_v47, %v3161_v4 }
0x1adf   :  { %4435 = vmatmul.msk.f32.vlgmr.msrb.gmra.mxu3 %vm1055_vm10, %v3162_v30 }
0x1ae0   :  { %4452 = vmatpush.xpose.msk.msrb.mxu3 %vm131_vm1, %v3558_v2  ;;  %v3304_v7 = vpop.permute.xlu1 %3303 }
0x1ae1   :  { %3232 = vrot.lane.b32.xlu0 %v6132_v31, %s4712_s4  ;;  %4443 = vmatmul.msk.f32.vlgmr.msra.gmra.mxu2 %vm131_vm1, %v3304_v7 }
0x1ae2   :  { %3448 = vrot.lane.b32.xlu1 %v6133_v36, %s4717_s2 }
0x1ae4   :  { %4453 = vmatpush.xpose.msk.msrb.mxu3 %vm131_vm1, %v3556_v27 }
0x1ae9   :  { %3230 = vrot.lane.b32.xlu0 %v6134_v3, %s4712_s4 }
0x1aea   :  { %3689 = vrot.lane.b32.xlu1 %v5212_v23, %s4718_s22 }
0x1af2   :  { %3598 = vrot.lane.b32.xlu1 %v6135_v60, %s4714_s24 }
0x1b38   :  { %v3360_v6 = vpop.xlane.xlu0 %3359 }
0x1b39   :  { %4661 = vrcp.f32 %v3360_v6  ;;  %v3375_v19 = vand.u32 2147483648, %v3360_v6  ;;  %v3373_v34 = vand.u32 2147483647, %v3360_v6  ;;  %vm3369_vm9 = vweird.f32 %v3360_v6 }
0x1b3b   :  { %v3135_v5 = vpop.xlane.xlu1 %3134  ;;  %v3376_v23 = vor.u32 1.1754944e-38, %v3375_v19  ;;  %vm3374_vm12 = vcmp.eq.f32.partialorder %v3373_v34, 8.507059e+37 }
0x1b3c   :  { %v3137_v37 = vsub.f32 %v3127_v35, %v3135_v5  ;;  %v6140_v5 = vld [vmem:[#allocation20_spill] sm:$0xff] }
0x1b3e   :  { %v3140_v24 = vmul.f32 1.442695, %v3137_v37 }
0x1b3f   :  { %v4662_v13 = vpop.eup %4661 }
0x1b40   :  { %v3365_v38 = vmul.f32 %v4662_v13, %v3360_v6  ;;  %4663 = vpow2.f32 %v3140_v24  ;;  %vm3370_vm8 = vweird.f32 %v4662_v13 }
0x1b41   :  { %vm3371_vm11 = vmor %vm3369_vm9, %vm3370_vm8 }
0x1b42   :  { %v3366_v21 = vsub.f32 1.0, %v3365_v38 }
0x1b44   :  { %v3367_v59 = vmul.f32 %v4662_v13, %v3366_v21 }
0x1b46   :  { %v4664_v57 = vpop.eup %4663  ;;  %v3368_v62 = vadd.f32 %v4662_v13, %v3367_v59 }
0x1b47   :  { %v3145_v14 = vsel %vm1055_vm10, %v4664_v57, 0.0 }
0x1b48   :  { %v3372_v29 = vsel %vm3371_vm11, %v4662_v13, %v3368_v62  ;;  %3146 = vadd.xlane.f32.xlu2 %v3145_v14 }
0x1b49   :  { %v3377_v42 = vsel %vm3374_vm12, %v3376_v23, %v3372_v29 }
0x1b4a   :  { %v3378_v18 = vmul.f32 %v5876_v43, %v3377_v42  ;;  %v6138_v43 = vld [vmem:[#allocation21_spill] sm:$0xff] }
0x1b4b   :  { %v3543_v20 = vpop.permute.xlu0 %3542 }
0x1b4c   :  { %4445 = vmatmul.msk.f32.vlgmr.msra.gmra.mxu3 %vm1055_vm10, %v3378_v18 }
0x1b53   :  { %v3233_v47 = vpop.permute.xlu0 %3232 }
0x1b54   :  { %v3449_v32 = vpop.permute.xlu1 %3448  ;;  %4436 = vmatpush.msk.msrb.mxu0 %vm1123_vm4, %v3233_v47  ;;  %4454 = vmatmul.msk.f32.vlgmr.msrb.gmra.mxu3 %vm131_vm1, %v3543_v20 }
0x1b5b   :  { %v3231_v41 = vpop.permute.xlu0 %3230 }
0x1b5c   :  { %v3690_v10 = vpop.permute.xlu1 %3689  ;;  %3255 = vmatpush.msrb.mxu0 %v3231_v41 }
0x1b5d   :  { %4458 = vmatpush.msk.msra.mxu3 %vm1123_vm4, %v3690_v10 }
0x1b5e   :  { %4446 = vmatpush.msk.msra.mxu0 %vm1123_vm4, %v3449_v32 }
0x1b60   :  { %3510 = vrot.lane.b32.xlu2 %v5811_v56, %s4704_s19 }
0x1b62   :  { %v3216_v40 = vpop.f32.mrf.mxu3 }
0x1b64   :  { %v3343_v0 = vpop.f32.mrf.mxu2  ;;  %v3599_v3 = vpop.permute.xlu1 %3598 }
0x1b65   :  { %v3349_v46 = vsel %vm1055_vm10, %v3343_v0, -inf }
0x1b66   :  { %3350 = vmax.xlane.f32.xlu0 %v3349_v46 }
0x1b68   :  { %3600 = vrot.lane.b32.xlu2 %v5205_v22, %s4714_s24 }
0x1b70   :  { %3687 = vrot.lane.b32.xlu2 %v6136_v44, %s4718_s22 }
0x1b78   :  { %3851 = vrot.lane.b32.xlu2 %v5236_v28, %s4715_s25 }
0x1b7a   :  { %3446 = vrot.lane.b32.xlu0 %v6137_v39, %s4717_s2 }
0x1b82   :  { %3808 = vrot.lane.b32.xlu0 %v6138_v43, %s4715_s25 }
0x1b8a   :  { %3806 = vrot.lane.b32.xlu0 %v6139_v8, %s4715_s25 }
0x1b92   :  { %3793 = vrot.lane.b32.xlu0 %v5837_v26, %s4713_s23 }
0x1bbb   :  { %v3147_v35 = vpop.xlane.xlu2 %3146 }
0x1bbc   :  { %4665 = vrcp.f32 %v3147_v35  ;;  %v3174_v55 = vand.u32 2147483648, %v3147_v35  ;;  %v3172_v61 = vand.u32 2147483647, %v3147_v35  ;;  %vm3168_vm14 = vweird.f32 %v3147_v35 }
0x1bbe   :  { %v3175_v25 = vor.u32 1.1754944e-38, %v3174_v55  ;;  %vm3173_vm3 = vcmp.eq.f32.partialorder %v3172_v61, 8.507059e+37 }
0x1bc2   :  { %v4666_v22 = vpop.eup %4665 }
0x1bc3   :  { %v3164_v12 = vmul.f32 %v4666_v22, %v3147_v35  ;;  %v3511_v9 = vpop.permute.xlu2 %3510  ;;  %vm3169_vm13 = vweird.f32 %v4666_v22 }
0x1bc4   :  { %3534 = vmatpush.msrb.mxu2 %v3511_v9  ;;  %vm3170_vm15 = vmor %vm3168_vm14, %vm3169_vm13 }
0x1bc5   :  { %v3165_v28 = vsub.f32 1.0, %v3164_v12  ;;  %4450 = vmatmul.msk.f32.vlgmr.msrb.gmra.mxu2 %vm131_vm1, %v3216_v40 }
0x1bc7   :  { %v3166_v54 = vmul.f32 %v4666_v22, %v3165_v28 }
0x1bc9   :  { %v3167_v63 = vadd.f32 %v4666_v22, %v3166_v54 }
0x1bcb   :  { %v3171_v48 = vsel %vm3170_vm15, %v4666_v22, %v3167_v63  ;;  %v3601_v26 = vpop.permute.xlu2 %3600 }
0x1bcc   :  { %v3176_v1 = vsel %vm3173_vm3, %v3175_v25, %v3171_v48 }
0x1bcd   :  { %v3177_v16 = vmul.f32 %v4664_v57, %v3176_v1 }
0x1bcf   :  { %4437 = vmatmul.msk.f32.vlgmr.msrb.gmra.mxu0 %vm1055_vm10, %v3177_v16  ;;  %v5925_v51 = vpop.f32.mrf.mxu3 }
0x1bd3   :  { %v3688_v50 = vpop.permute.xlu2 %3687 }
0x1bd4   :  { %3712 = vmatpush.msra.mxu3 %v3688_v50 }
0x1bd7   :  { %v3582_v17 = vpop.f32.mrf.mxu3 }
0x1bd8   :  { %v3628_v45 = vsel %vm1055_vm10, %v3582_v17, -inf }
0x1bd9   :  { %3629 = vmax.xlane.f32.xlu1 %v3628_v45  ;;  %v3351_v4 = vpop.xlane.xlu0 %3350 }
0x1bda   :  { %v3353_v30 = vsub.f32 %v3343_v0, %v3351_v4 }
0x1bdb   :  { %v3852_v2 = vpop.permute.xlu2 %3851 }
0x1bdc   :  { %v3356_v7 = vmul.f32 1.442695, %v3353_v30  ;;  %4467 = vmatpush.xpose.msk.msrb.mxu3 %vm131_vm1, %v3852_v2 }
0x1bde   :  { %4667 = vpow2.f32 %v3356_v7 }
0x1be4   :  { %v4668_v31 = vpop.eup %4667 }
0x1be5   :  { %v3361_v36 = vsel %vm1055_vm10, %v4668_v31, 0.0 }
0x1be6   :  { %3362 = vadd.xlane.f32.xlu2 %v3361_v36 }
0x1bec   :  { %v3447_v27 = vpop.permute.xlu0 %3446 }
0x1bed   :  { %3471 = vmatpush.msra.mxu0 %v3447_v27 }
0x1bef   :  { %4455 = vmatpush.xpose.msk.msrb.mxu0 %vm131_vm1, %v3601_v26 }
0x1bf2   :  { %3585 = vrot.lane.b32.xlu1 %v5863_v52, %s4711_s18 }
0x1bf3   :  { %4456 = vmatpush.xpose.msk.msrb.mxu0 %vm131_vm1, %v3599_v3  ;;  %v6141_v3 = vld [vmem:[#allocation17_spill] sm:$0xff] }
0x1bf4   :  { %v3809_v60 = vpop.permute.xlu0 %3808 }
0x1bf5   :  { %4464 = vmatpush.xpose.msk.msra.mxu2 %vm131_vm1, %v3809_v60  ;;  %v3977_v60 = vld.sshfl [vmem:[#allocation1] sm:$0xff pattern:$0x73625140] }
0x1bfc   :  { %v3807_v6 = vpop.permute.xlu0 %3806 }
0x1bfd   :  { %4465 = vmatpush.xpose.msk.msra.mxu2 %vm131_vm1, %v3807_v6 }
0x1bfe   :  { %3849 = vrot.lane.b32.xlu2 %v6140_v5, %s4715_s25 }
0x1c04   :  { %v3794_v21 = vpop.permute.xlu0 %3793 }
0x1c48   :  { %v5946_v46 = vpop.f32.mrf.mxu2 }
0x1c4c   :  { %v3630_v37 = vpop.xlane.xlu1 %3629  ;;  %v3257_v24 = vpop.f32.mrf.mxu0 }
0x1c4d   :  { %v3634_v13 = vsub.f32 %v3582_v17, %v3630_v37  ;;  %4451 = vmatmul.msk.f32.gmra.mxu2 %vm131_vm1, %v3257_v24  ;;  %v6142_v37 = vld [vmem:[#allocation22_spill] sm:$0xff] }
0x1c4e   :  { %v4525_v24 = vpack.i.bf16 %v3977_v60, %v6142_v37 }
0x1c4f   :  { %v3636_v38 = vmul.f32 1.442695, %v3634_v13  ;;  %v6143_v13 = vld [vmem:[#allocation19_spill] sm:$0xff] }
0x1c51   :  { %4669 = vpow2.f32 %v3636_v38  ;;  %v3978_v38 = vld.sshfl [vmem:[#allocation1 + $0x20] sm:$0xff pattern:$0x73625140] }
0x1c55   :  { %4466 = vmatmul.msk.f32.vlgmr.msra.gmra.mxu2 %vm131_vm1, %v3794_v21 }
0x1c57   :  { %v4670_v19 = vpop.eup %4669 }
0x1c58   :  { %v3640_v59 = vsel %vm1055_vm10, %v4670_v19, 0.0 }
0x1c59   :  { %3641 = vadd.xlane.f32.xlu1 %v3640_v59  ;;  %v3363_v34 = vpop.xlane.xlu2 %3362 }
0x1c5a   :  { %4671 = vrcp.f32 %v3363_v34  ;;  %v3390_v29 = vand.u32 2147483648, %v3363_v34  ;;  %v3388_v18 = vand.u32 2147483647, %v3363_v34  ;;  %vm3384_vm6 = vweird.f32 %v3363_v34 }
0x1c5c   :  { %v3391_v47 = vor.u32 1.1754944e-38, %v3390_v29  ;;  %vm3389_vm8 = vcmp.eq.f32.partialorder %v3388_v18, 8.507059e+37 }
0x1c60   :  { %v4672_v57 = vpop.eup %4671 }
0x1c61   :  { %v3380_v62 = vmul.f32 %v4672_v57, %v3363_v34  ;;  %v3850_v23 = vpop.permute.xlu2 %3849  ;;  %vm3385_vm5 = vweird.f32 %v4672_v57 }
0x1c62   :  { %4468 = vmatpush.xpose.msk.msrb.mxu3 %vm131_vm1, %v3850_v23  ;;  %vm3386_vm7 = vmor %vm3384_vm6, %vm3385_vm5 }
0x1c63   :  { %v3381_v14 = vsub.f32 1.0, %v3380_v62 }
0x1c64   :  { %v3586_v0 = vpop.permute.xlu1 %3585 }
0x1c65   :  { %v3382_v42 = vmul.f32 %v4672_v57, %v3381_v14 }
0x1c67   :  { %v3383_v20 = vadd.f32 %v4672_v57, %v3382_v42 }
0x1c69   :  { %v3387_v32 = vsel %vm3386_vm7, %v4672_v57, %v3383_v20 }
0x1c6a   :  { %v3392_v41 = vsel %vm3389_vm8, %v3391_v47, %v3387_v32 }
0x1c6b   :  { %v3393_v10 = vmul.f32 %v4668_v31, %v3392_v41 }
0x1c6d   :  { %4447 = vmatmul.msk.f32.vlgmr.msra.gmra.mxu0 %vm1055_vm10, %v3393_v10 }
0x1c72   :  { %3836 = vrot.lane.b32.xlu1 %v5863_v52, %s4713_s23 }
0x1c75   :  { %4457 = vmatmul.msk.f32.vlgmr.msrb.gmra.mxu0 %vm131_vm1, %v3586_v0 }
0x1ccc   :  { %v3642_v44 = vpop.xlane.xlu1 %3641 }
0x1ccd   :  { %4673 = vrcp.f32 %v3642_v44  ;;  %v3657_v22 = vand.u32 2147483648, %v3642_v44  ;;  %v3655_v9 = vand.u32 2147483647, %v3642_v44  ;;  %vm3651_vm11 = vweird.f32 %v3642_v44 }
0x1ccf   :  { %v3658_v55 = vor.u32 1.1754944e-38, %v3657_v22  ;;  %vm3656_vm13 = vcmp.eq.f32.partialorder %v3655_v9, 8.507059e+37  ;;  %v6144_v9 = vld [vmem:[#allocation23_spill] sm:$0xff] }
0x1cd0   :  { %v5948_v39 = vpop.f32.mrf.mxu2 }
0x1cd3   :  { %v4674_v43 = vpop.eup %4673 }
0x1cd4   :  { %v3647_v8 = vmul.f32 %v4674_v43, %v3642_v44  ;;  %vm3652_vm9 = vweird.f32 %v4674_v43 }
0x1cd5   :  { %vm3653_vm12 = vmor %vm3651_vm11, %vm3652_vm9 }
0x1cd6   :  { %v3648_v35 = vsub.f32 1.0, %v3647_v8 }
0x1cd8   :  { %v3649_v12 = vmul.f32 %v4674_v43, %v3648_v35  ;;  %v3833_v40 = vpop.f32.mrf.mxu2 }
0x1cd9   :  { %v3879_v28 = vsel %vm1055_vm10, %v3833_v40, -inf }
0x1cda   :  { %v3650_v52 = vadd.f32 %v4674_v43, %v3649_v12  ;;  %3880 = vmax.xlane.f32.xlu0 %v3879_v28 }
0x1cdc   :  { %v3654_v54 = vsel %vm3653_vm12, %v4674_v43, %v3650_v52 }
0x1cdd   :  { %v3659_v61 = vsel %vm3656_vm13, %v3658_v55, %v3654_v54 }
0x1cde   :  { %v3660_v63 = vmul.f32 %v4670_v19, %v3659_v61 }
0x1ce0   :  { %4459 = vmatmul.msk.f32.vlgmr.msra.gmra.mxu3 %vm1055_vm10, %v3660_v63 }
0x1ce4   :  { %v3837_v25 = vpop.permute.xlu1 %3836 }
0x1ce8   :  { %4469 = vmatmul.msk.f32.vlgmr.msrb.gmra.mxu3 %vm131_vm1, %v3837_v25 }
0x1cea   :  { %v5953_v48 = vpop.f32.mrf.mxu0 }
0x1cf2   :  { %v3625_v26 = vpop.f32.mrf.mxu0 }
0x1cf3   :  { %v3631_v1 = vsel %vm1055_vm10, %v3625_v26, -inf }
0x1cf4   :  { %3632 = vmax.xlane.f32.xlu2 %v3631_v1 }
0x1d4d   :  { %v3881_v16 = vpop.xlane.xlu0 %3880 }
0x1d4e   :  { %v3885_v50 = vsub.f32 %v3833_v40, %v3881_v16 }
0x1d50   :  { %v3887_v17 = vmul.f32 1.442695, %v3885_v50 }
0x1d52   :  { %4675 = vpow2.f32 %v3887_v17 }
0x1d58   :  { %v5956_v45 = vpop.eup %4675 }
0x1d59   :  { %v3891_v4 = vsel %vm1055_vm10, %v5956_v45, 0.0 }
0x1d5a   :  { %3892 = vadd.xlane.f32.xlu0 %v3891_v4 }
0x1d63   :  { %v5960_v30 = vpop.f32.mrf.mxu3 }
0x1d67   :  { %v3633_v2 = vpop.xlane.xlu2 %3632 }
0x1d68   :  { %v3635_v7 = vsub.f32 %v3625_v26, %v3633_v2 }
0x1d6a   :  { %v3638_v31 = vmul.f32 1.442695, %v3635_v7 }
0x1d6b   :  { %v3876_v36 = vpop.f32.mrf.mxu3 }
0x1d6c   :  { %4677 = vpow2.f32 %v3638_v31  ;;  %v3882_v27 = vsel %vm1055_vm10, %v3876_v36, -inf }
0x1d6d   :  { %3883 = vmax.xlane.f32.xlu1 %v3882_v27 }
0x1d6e   :  { %3728 = vrot.lane.b32.xlu0 %v6141_v3, %s4718_s22 }
0x1d72   :  { %v4678_v6 = vpop.eup %4677 }
0x1d73   :  { %v3643_v5 = vsel %vm1055_vm10, %v4678_v6, 0.0 }
0x1d74   :  { %3644 = vadd.xlane.f32.xlu2 %v3643_v5 }
0x1d76   :  { %4526 = vrot.lane.b32.xlu0 %v4525_v24, %s4719_s12 }
0x1d7e   :  { %3477 = vrot.lane.b32.xlu0 %v5804_v15, %s4704_s19 }
0x1d86   :  { %3730 = vrot.lane.b32.xlu1 %v6143_v13, %s4718_s22 }
0x1d8e   :  { %3981 = vrot.lane.b32.xlu1 %v3978_v38, %s4719_s12 }
0x1d96   :  { %3759 = vrot.lane.b32.xlu1 %v5798_v49, %s4704_s19 }
0x1dcd   :  { %v3893_v21 = vpop.xlane.xlu0 %3892 }
0x1dce   :  { %v3908_v25 = vand.u32 2147483648, %v3893_v21  ;;  %vm3902_vm7 = vweird.f32 %v3893_v21 }
0x1dd0   :  { %v3909_v1 = vor.u32 1.1754944e-38, %v3908_v25 }
0x1de0   :  { %v3884_v19 = vpop.xlane.xlu1 %3883  ;;  %v3729_v59 = vpop.permute.xlu0 %3728 }
0x1de1   :  { %v3886_v34 = vsub.f32 %v3876_v36, %v3884_v19 }
0x1de3   :  { %v3889_v57 = vmul.f32 1.442695, %v3886_v34 }
0x1de5   :  { %4679 = vpow2.f32 %v3889_v57 }
0x1de7   :  { %v3645_v62 = vpop.xlane.xlu2 %3644 }
0x1de8   :  { %4681 = vrcp.f32 %v3645_v62  ;;  %v4527_v23 = vpop.permute.xlu0 %4526  ;;  %v3672_v32 = vand.u32 2147483648, %v3645_v62  ;;  %v3670_v10 = vand.u32 2147483647, %v3645_v62  ;;  %vm3666_vm15 = vweird.f32 %v3645_v62 }
0x1de9   :  { %v4529_v12 = vunpack.i.h.bf16 %v4527_v23  ;;  %4683 = vrcp.f32 %v3893_v21 }
0x1dea   :  { %v3673_v44 = vor.u32 1.1754944e-38, %v3672_v32  ;;  %vm3671_vm5 = vcmp.eq.f32.partialorder %v3670_v10, 8.507059e+37 }
0x1deb   :  { %v5975_v14 = vpop.eup %4679 }
0x1dec   :  { %v3894_v29 = vsel %vm1055_vm10, %v5975_v14, 0.0 }
0x1ded   :  { %3895 = vadd.xlane.f32.xlu2 %v3894_v29 }
0x1dee   :  { %v4682_v42 = vpop.eup %4681 }
0x1def   :  { %v3662_v18 = vmul.f32 %v4682_v42, %v3645_v62  ;;  %vm3667_vm14 = vweird.f32 %v4682_v42  ;;  %v4684_v28 = vpop.eup %4683  ;;  %v6004_v62 = vld [vmem:[%s6092_s6 + $0x10] sm:$0xff] }
0x1df0   :  { %v3478_v20 = vpop.permute.xlu0 %3477  ;;  %vm3668_vm3 = vmor %vm3666_vm15, %vm3667_vm14  ;;  %v3898_v52 = vmul.f32 %v4684_v28, %v3893_v21  ;;  %vm3903_vm6 = vweird.f32 %v4684_v28 }
0x1df1   :  { %v3663_v47 = vsub.f32 1.0, %v3662_v18  ;;  %3501 = vmatpush.msrb.mxu1 %v3478_v20  ;;  %vm3904_vm8 = vmor %vm3902_vm7, %vm3903_vm6 }
0x1df2   :  { %4448 = vmatmul.msk.f32.vlgmr.msrb.gmra.mxu1 %vm131_vm1, %v5925_v51  ;;  %v3899_v55 = vsub.f32 1.0, %v3898_v52 }
0x1df3   :  { %v3664_v41 = vmul.f32 %v4682_v42, %v3663_v47 }
0x1df4   :  { %v3900_v54 = vmul.f32 %v4684_v28, %v3899_v55 }
0x1df5   :  { %v3665_v0 = vadd.f32 %v4682_v42, %v3664_v41 }
0x1df6   :  { %v3901_v61 = vadd.f32 %v4684_v28, %v3900_v54 }
0x1df7   :  { %v3669_v43 = vsel %vm3668_vm3, %v4682_v42, %v3665_v0 }
0x1df8   :  { %v3674_v8 = vsel %vm3671_vm5, %v3673_v44, %v3669_v43  ;;  %v3731_v35 = vpop.permute.xlu1 %3730  ;;  %v3905_v26 = vsel %vm3904_vm8, %v4684_v28, %v3901_v61 }
0x1df9   :  { %v3675_v22 = vmul.f32 %v4678_v6, %v3674_v8  ;;  %4460 = vmatpush.msk.msra.mxu0 %vm1123_vm4, %v3731_v35  ;;  %v4530_v8 = vpack.i.bf16 %v5798_v49, %v5793_v53 }
0x1dfa   :  { %4449 = vmatmul.msk.f32.gmra.mxu1 %vm131_vm1, %v5953_v48  ;;  %v3906_v48 = vand.u32 2147483647, %v3893_v21 }
0x1dfb   :  { %3753 = vmatpush.msra.mxu0 %v3729_v59 }
0x1dfc   :  { %4461 = vmatmul.msk.f32.vlgmr.msra.gmra.mxu0 %vm1055_vm10, %v3675_v22  ;;  %vm3907_vm9 = vcmp.eq.f32.partialorder %v3906_v48, 8.507059e+37  ;;  %v4485_v48 = vld [vmem:[%s6096_s5 + $0x78] sm:$0xff] }
0x1dfd   :  { %v3910_v50 = vsel %vm3907_vm9, %v3909_v1, %v3905_v26  ;;  %v4483_v26 = vld [vmem:[%s6096_s5 + $0x68] sm:$0xff] }
0x1dfe   :  { %v3911_v2 = vmul.f32 %v5956_v45, %v3910_v50 }
0x1e00   :  { %v3982_v51 = vpop.permute.xlu1 %3981 }
0x1e01   :  { %4472 = vmatpush.msk.msrb.mxu2 %vm1123_vm4, %v3982_v51 }
0x1e03   :  { %4004 = vmatpush.msrb.mxu2 %v4529_v12 }
0x1e05   :  { %3940 = vrot.lane.b32.xlu2 %v6144_v9, %s4719_s12 }
0x1e08   :  { %v3760_v40 = vpop.permute.xlu1 %3759 }
0x1e09   :  { %3783 = vmatpush.msra.mxu1 %v3760_v40 }
0x1e0a   :  { %4462 = vmatmul.msk.f32.vlgmr.msra.gmra.mxu1 %vm131_vm1, %v5960_v30  ;;  %v4528_v30 = vunpack.i.l.bf16 %v4527_v23  ;;  %v4044_v23 = vperm.slane %v6004_v62, 3 }
0x1e0b   :  { %4167 = vmatpush.msrb.mxu1 %v4485_v48 }
0x1e0d   :  { %4010 = vrot.lane.b32.xlu2 %v5793_v53, %s4704_s19  ;;  %v4535_v53 = vpack.i.bf16 %v5811_v56, %v5804_v15  ;;  %v4484_v15 = vld [vmem:[%s6096_s5 + $0x70] sm:$0xff] }
0x1e0e   :  { %4168 = vmatpush.msrb.mxu1 %v4484_v15 }
0x1e10   :  { %4169 = vmatpush.msrb.mxu1 %v4483_v26 }
0x1e60   :  { %v3896_v63 = vpop.xlane.xlu2 %3895 }
0x1e61   :  { %4685 = vrcp.f32 %v3896_v63  ;;  %v3923_v31 = vand.u32 2147483648, %v3896_v63  ;;  %v3921_v27 = vand.u32 2147483647, %v3896_v63  ;;  %vm3917_vm12 = vweird.f32 %v3896_v63 }
0x1e63   :  { %v3924_v60 = vor.u32 1.1754944e-38, %v3923_v31  ;;  %vm3922_vm14 = vcmp.eq.f32.partialorder %v3921_v27, 8.507059e+37 }
0x1e67   :  { %v4686_v16 = vpop.eup %4685 }
0x1e68   :  { %v3913_v17 = vmul.f32 %v4686_v16, %v3896_v63  ;;  %v3941_v4 = vpop.permute.xlu2 %3940  ;;  %vm3918_vm11 = vweird.f32 %v4686_v16 }
0x1e69   :  { %4470 = vmatpush.msk.msrb.mxu0 %vm1123_vm4, %v3941_v4  ;;  %vm3919_vm13 = vmor %vm3917_vm12, %vm3918_vm11 }
0x1e6a   :  { %v3914_v7 = vsub.f32 1.0, %v3913_v17  ;;  %v4482_v17 = vld [vmem:[%s6096_s5 + $0x60] sm:$0xff] }
0x1e6b   :  { %3963 = vmatpush.msrb.mxu0 %v4528_v30  ;;  %4170 = vmatpush.msrb.mxu1 %v4482_v17 }
0x1e6c   :  { %v3915_v36 = vmul.f32 %v4686_v16, %v3914_v7  ;;  %4471 = vmatmul.msk.f32.vlgmr.msrb.gmra.mxu0 %vm1055_vm10, %v3911_v2  ;;  %v4481_v2 = vld [vmem:[%s6096_s5 + $0x58] sm:$0xff] }
0x1e6d   :  { %v6042_v7 = vld [vmem:[%s6092_s6 + $0x18] sm:$0xf]  ;;  %4171 = vmatpush.msrb.mxu1 %v4481_v2 }
0x1e6e   :  { %v3916_v3 = vadd.f32 %v4686_v16, %v3915_v36  ;;  %v4093_v27 = vperm.slane %v6042_v7, 0 }
0x1e6f   :  { %v3503_v21 = vpop.f32.mrf.mxu1 }
0x1e70   :  { %v3920_v6 = vsel %vm3919_vm13, %v4686_v16, %v3916_v3  ;;  %v4011_v5 = vpop.permute.xlu2 %4010  ;;  %v3537_v34 = vadd.f32 %v5946_v46, %v3503_v21 }
0x1e71   :  { %v3925_v37 = vsel %vm3922_vm14, %v3924_v60, %v3920_v6  ;;  %4034 = vmatpush.msra.mxu3 %v4011_v5  ;;  %v4096_v60 = vperm.slane %v6042_v7, 1 }
0x1e72   :  { %v3926_v24 = vmul.f32 %v5975_v14, %v3925_v37 }
0x1e74   :  { %4473 = vmatmul.msk.f32.vlgmr.msrb.gmra.mxu2 %vm1055_vm10, %v3926_v24 }
0x1e77   :  { %v3506_v19 = vpop.f32.mrf.mxu1 }
0x1e78   :  { %v3540_v32 = vadd.f32 %v5948_v39, %v3506_v19 }
0x1e79   :  { %v3755_v45 = vpop.f32.mrf.mxu0 }
0x1e7a   :  { %4463 = vmatmul.msk.f32.gmra.mxu1 %vm131_vm1, %v3755_v45 }
0x1e87   :  { %v3785_v59 = vpop.f32.mrf.mxu1 }
0x1e88   :  { %v3791_v57 = vadd.f32 %v3785_v59, %v3537_v34 }
0x1ee9   :  { %v3965_v13 = vpop.f32.mrf.mxu0 }
0x1eea   :  { %4474 = vmatmul.msk.f32.vlgmr.msra.gmra.mxu3 %vm131_vm1, %v3965_v13 }
0x1ef7   :  { %v4006_v38 = vpop.f32.mrf.mxu2  ;;  %v3788_v47 = vpop.f32.mrf.mxu1 }
0x1ef8   :  { %4475 = vmatmul.msk.f32.gmra.mxu3 %vm131_vm1, %v4006_v38  ;;  %v3792_v46 = vadd.f32 %v3788_v47, %v3540_v32  ;;  %v4478_v47 = vld [vmem:[%s6096_s5 + $0x40] sm:$0xff]  ;;  %v4099_v32 = vperm.slane %v6004_v62, 4 }
0x1f6d   :  { %v4036_v14 = vpop.f32.mrf.mxu3 }
0x1f6e   :  { %v4042_v29 = vadd.f32 %v4036_v14, %v3791_v57 }
0x1f70   :  { %v4045_v42 = vadd.f32 %v4044_v23, %v4042_v29 }
0x1f72   :  { %v4047_v18 = vadd.f32 %v4045_v42, %v5822_v58 }
0x1f74   :  { %v4049_v20 = vsel %vm42_vm0, %v4047_v18, 0.0 }
0x1f75   :  { %4050 = vadd.xlane.f32.xlu0 %v4049_v20  ;;  %v4479_v20 = vld [vmem:[%s6096_s5 + $0x48] sm:$0xff] }
0x1f7b   :  { %v4039_v41 = vpop.f32.mrf.mxu3 }
0x1f7c   :  { %v4043_v10 = vadd.f32 %v4039_v41, %v3792_v46 }
0x1f7e   :  { %v4046_v0 = vadd.f32 %v4044_v23, %v4043_v10 }
0x1f80   :  { %v4048_v44 = vadd.f32 %v4046_v0, %v5848_v33 }
0x1f82   :  { %v4052_v43 = vsel %vm42_vm0, %v4048_v44, 0.0 }
0x1f83   :  { %4053 = vadd.xlane.f32.xlu2 %v4052_v43 }
0x1f9b   :  { %4531 = vrot.lane.b32.xlu2 %v4530_v8, %s4706_s21  ;;  %v4152_v8 = vperm.slane %v6004_v62, 5 }
0x1fe8   :  { %v4051_v58 = vpop.xlane.xlu0 %4050 }
0x1fe9   :  { %v4055_v35 = vmul.f32 %v4051_v58, %v5304_v11 }
0x1feb   :  { %v4057_v22 = vsub.f32 %v4047_v18, %v4055_v35  ;;  %v4480_v18 = vld [vmem:[%s6096_s5 + $0x50] sm:$0xff] }
0x1fec   :  { %4172 = vmatpush.msrb.mxu1 %v4480_v18 }
0x1fed   :  { %v4059_v51 = vmul.f32 %v4057_v22, %v4057_v22 }
0x1fee   :  { %4173 = vmatpush.msrb.mxu1 %v4479_v20 }
0x1fef   :  { %v4061_v39 = vsel %vm42_vm0, %v4059_v51, 0.0 }
0x1ff0   :  { %4062 = vadd.xlane.f32.xlu1 %v4061_v39  ;;  %4174 = vmatpush.msrb.mxu1 %v4478_v47 }
0x1ff6   :  { %v4054_v12 = vpop.xlane.xlu2 %4053 }
0x1ff7   :  { %v4056_v9 = vmul.f32 %v4054_v12, %v5304_v11 }
0x1ff9   :  { %v4058_v33 = vsub.f32 %v4048_v44, %v4056_v9 }
0x1ffb   :  { %v4060_v40 = vmul.f32 %v4058_v33, %v4058_v33 }
0x1ffd   :  { %v4064_v28 = vsel %vm42_vm0, %v4060_v40, 0.0 }
0x1ffe   :  { %4065 = vadd.xlane.f32.xlu0 %v4064_v28  ;;  %v4532_v54 = vpop.permute.xlu2 %4531 }
0x1fff   :  { %v4534_v61 = vunpack.i.h.bf16 %v4532_v54  ;;  %v4533_v63 = vunpack.i.l.bf16 %v4532_v54 }
0x2001   :  { %4130 = vmatpush.msra.mxu0 %v4533_v63 }
0x2003   :  { %4131 = vmatpush.msra.mxu0 %v4534_v61 }
0x2009   :  { %4536 = vrot.lane.b32.xlu1 %v4535_v53, %s4706_s21 }
0x2063   :  { %v4063_v49 = vpop.xlane.xlu1 %4062 }
0x2064   :  { %v4067_v52 = vmul.f32 %v4063_v49, %v5304_v11 }
0x2066   :  { %v4069_v55 = vadd.f32 1e-05, %v4067_v52 }
0x2068   :  { %4687 = vrsqrt.f32 %v4069_v55  ;;  %vm4077_vm10 = vweird.f32 %v4069_v55 }
0x206e   :  { %v4688_v25 = vpop.eup %4687 }
0x206f   :  { %v4072_v56 = vmul.f32 %v4688_v25, %v4069_v55  ;;  %vm4078_vm1 = vweird.f32 %v4688_v25 }
0x2070   :  { %vm4079_vm4 = vmor %vm4077_vm10, %vm4078_vm1 }
0x2071   :  { %v4073_v1 = vmul.f32 %v4688_v25, %v4072_v56  ;;  %v4066_v16 = vpop.xlane.xlu0 %4065 }
0x2072   :  { %v4068_v50 = vmul.f32 %v4066_v16, %v5304_v11 }
0x2073   :  { %v4074_v4 = vmul.f32 0.5, %v4073_v1 }
0x2074   :  { %v4070_v30 = vadd.f32 1e-05, %v4068_v50 }
0x2075   :  { %v4075_v31 = vsub.f32 1.5, %v4074_v4 }
0x2076   :  { %4689 = vrsqrt.f32 %v4070_v30  ;;  %vm4087_vm3 = vweird.f32 %v4070_v30 }
0x2077   :  { %v4076_v36 = vmul.f32 %v4688_v25, %v4075_v31  ;;  %v4228_v31 = vperm.slane %v6042_v7, 2 }
0x2079   :  { %v4080_v3 = vsel %vm4079_vm4, %v4688_v25, %v4076_v36 }
0x207a   :  { %v4091_v6 = vmul.f32 %v4080_v3, %v4057_v22  ;;  %v4231_v3 = vperm.slane %v6042_v7, 3 }
0x207b   :  { %v4537_v5 = vpop.permute.xlu1 %4536 }
0x207c   :  { %v4690_v37 = vpop.eup %4689  ;;  %v4094_v24 = vmul.f32 %v4093_v27, %v4091_v6  ;;  %v4539_v45 = vunpack.i.h.bf16 %v4537_v5  ;;  %v4538_v13 = vunpack.i.l.bf16 %v4537_v5 }
0x207d   :  { %v4082_v38 = vmul.f32 %v4690_v37, %v4070_v30  ;;  %vm4088_vm15 = vweird.f32 %v4690_v37 }
0x207e   :  { %v4097_v21 = vadd.f32 %v4096_v60, %v4094_v24  ;;  %4132 = vmatpush.msra.mxu0 %v4538_v13  ;;  %vm4089_vm5 = vmor %vm4087_vm3, %vm4088_vm15 }
0x207f   :  { %v4083_v19 = vmul.f32 %v4690_v37, %v4082_v38 }
0x2080   :  { %4133 = vmatpush.msra.mxu0 %v4539_v45 }
0x2081   :  { %v4084_v59 = vmul.f32 0.5, %v4083_v19  ;;  %4476 = vmatmul.msk.f32.vlgmr.msra.gmra.mxu0 %vm42_vm0, %v4097_v21 }
0x2083   :  { %v4085_v34 = vsub.f32 1.5, %v4084_v59 }
0x2085   :  { %v4086_v57 = vmul.f32 %v4690_v37, %v4085_v34 }
0x2087   :  { %v4090_v23 = vsel %vm4089_vm5, %v4690_v37, %v4086_v57 }
0x2088   :  { %v4092_v14 = vmul.f32 %v4090_v23, %v4058_v33 }
0x208a   :  { %v4095_v29 = vmul.f32 %v4093_v27, %v4092_v14 }
0x208c   :  { %v4098_v42 = vadd.f32 %v4096_v60, %v4095_v29 }
0x208e   :  { %4477 = vmatmul.msk.f32.gmra.mxu0 %vm42_vm0, %v4098_v42 }
0x20fe   :  { %v4135_v46 = vpop.f32.mrf.mxu0 }
0x20ff   :  { %v4136_v41 = vadd.f32 %v4135_v46, %v4099_v32 }
0x2101   :  { %v4141_v10 = vmax.f32 %v4136_v41, 0.0 }
0x2103   :  { %4486 = vmatmul.msk.f32.vlgmr.msrb.gmra.mxu1 %vm2079_vm2, %v4141_v10 }
0x210b   :  { %v4138_v0 = vpop.f32.mrf.mxu0 }
0x210c   :  { %v4139_v44 = vadd.f32 %v4138_v0, %v4099_v32 }
0x210e   :  { %v4142_v43 = vmax.f32 %v4139_v44, 0.0 }
0x2110   :  { %4487 = vmatmul.msk.f32.gmra.mxu1 %vm2079_vm2, %v4142_v43 }
0x2180   :  { %v4176_v58 = vpop.f32.mrf.mxu1 }
0x2181   :  { %v4177_v35 = vadd.f32 %v4176_v58, %v4152_v8 }
0x2183   :  { %v4182_v22 = vadd.f32 %v4177_v35, %v4097_v21 }
0x2185   :  { %v4184_v51 = vsel %vm42_vm0, %v4182_v22, 0.0 }
0x2186   :  { %4185 = vadd.xlane.f32.xlu0 %v4184_v51 }
0x218d   :  { %v4179_v39 = vpop.f32.mrf.mxu1 }
0x218e   :  { %v4180_v12 = vadd.f32 %v4179_v39, %v4152_v8 }
0x2190   :  { %v4183_v9 = vadd.f32 %v4180_v12, %v4098_v42  ;;  %v4234_v12 = vld [vmem:[%s6097_s7] sm:$0x3] }
0x2192   :  { %v4187_v33 = vsel %vm42_vm0, %v4183_v9, 0.0 }
0x2193   :  { %4188 = vadd.xlane.f32.xlu0 %v4187_v33 }
0x21f9   :  { %v4186_v40 = vpop.xlane.xlu0 %4185 }
0x21fa   :  { %v4190_v28 = vmul.f32 %v4186_v40, %v5304_v11  ;;  %v4279_v40 = vperm.slane %v4234_v12, 0 }
0x21fc   :  { %v4192_v53 = vsub.f32 %v4182_v22, %v4190_v28 }
0x21fe   :  { %v4194_v49 = vmul.f32 %v4192_v53, %v4192_v53 }
0x2200   :  { %v4196_v52 = vsel %vm42_vm0, %v4194_v49, 0.0 }
0x2201   :  { %4197 = vadd.xlane.f32.xlu0 %v4196_v52 }
0x2206   :  { %v4189_v62 = vpop.xlane.xlu0 %4188 }
0x2207   :  { %v4191_v55 = vmul.f32 %v4189_v62, %v5304_v11 }
0x2209   :  { %v4193_v54 = vsub.f32 %v4183_v9, %v4191_v55 }
0x220b   :  { %v4195_v61 = vmul.f32 %v4193_v54, %v4193_v54 }
0x220d   :  { %v4199_v63 = vsel %vm42_vm0, %v4195_v61, 0.0 }
0x220e   :  { %4200 = vadd.xlane.f32.xlu2 %v4199_v63 }
0x2274   :  { %v4198_v25 = vpop.xlane.xlu0 %4197 }
0x2275   :  { %v4202_v48 = vmul.f32 %v4198_v25, %v5304_v11 }
0x2277   :  { %v4204_v15 = vadd.f32 1e-05, %v4202_v48 }
0x2279   :  { %4691 = vrsqrt.f32 %v4204_v15  ;;  %vm4212_vm6 = vweird.f32 %v4204_v15 }
0x227f   :  { %v4692_v56 = vpop.eup %4691 }
0x2280   :  { %v4207_v26 = vmul.f32 %v4692_v56, %v4204_v15  ;;  %vm4213_vm2 = vweird.f32 %v4692_v56 }
0x2281   :  { %v4201_v1 = vpop.xlane.xlu2 %4200  ;;  %vm4214_vm7 = vmor %vm4212_vm6, %vm4213_vm2 }
0x2282   :  { %v4208_v16 = vmul.f32 %v4692_v56, %v4207_v26  ;;  %v4203_v50 = vmul.f32 %v4201_v1, %v5304_v11 }
0x2284   :  { %v4209_v17 = vmul.f32 0.5, %v4208_v16  ;;  %v4205_v4 = vadd.f32 1e-05, %v4203_v50 }
0x2286   :  { %v4210_v30 = vsub.f32 1.5, %v4209_v17  ;;  %4693 = vrsqrt.f32 %v4205_v4  ;;  %vm4222_vm9 = vweird.f32 %v4205_v4 }
0x2288   :  { %v4211_v2 = vmul.f32 %v4692_v56, %v4210_v30 }
0x228a   :  { %v4215_v36 = vsel %vm4214_vm7, %v4692_v56, %v4211_v2 }
0x228b   :  { %v4226_v27 = vmul.f32 %v4215_v36, %v4192_v53  ;;  %v4282_v53 = vperm.slane %v4234_v12, 1 }
0x228c   :  { %v4694_v60 = vpop.eup %4693 }
0x228d   :  { %v4217_v6 = vmul.f32 %v4694_v60, %v4205_v4  ;;  %v4229_v5 = vmul.f32 %v4228_v31, %v4226_v27  ;;  %vm4223_vm8 = vweird.f32 %v4694_v60 }
0x228e   :  { %vm4224_vm11 = vmor %vm4222_vm9, %vm4223_vm8 }
0x228f   :  { %v4218_v37 = vmul.f32 %v4694_v60, %v4217_v6  ;;  %v4232_v24 = vadd.f32 %v4231_v3, %v4229_v5 }
0x2291   :  { %v4219_v45 = vmul.f32 0.5, %v4218_v37  ;;  %v4235_v13 = vsel %vm42_vm0, %v4232_v24, 0.0 }
0x2292   :  { %4236 = vadd.xlane.f32.xlu1 %v4235_v13 }
0x2293   :  { %v4220_v38 = vsub.f32 1.5, %v4219_v45 }
0x2295   :  { %v4221_v21 = vmul.f32 %v4694_v60, %v4220_v38 }
0x2297   :  { %v4225_v19 = vsel %vm4224_vm11, %v4694_v60, %v4221_v21 }
0x2298   :  { %v4227_v59 = vmul.f32 %v4225_v19, %v4193_v54 }
0x229a   :  { %v4230_v34 = vmul.f32 %v4228_v31, %v4227_v59 }
0x229c   :  { %v4233_v57 = vadd.f32 %v4231_v3, %v4230_v34 }
0x229e   :  { %v4238_v7 = vsel %vm42_vm0, %v4233_v57, 0.0 }
0x229f   :  { %4239 = vadd.xlane.f32.xlu0 %v4238_v7 }
0x2305   :  { %v4237_v23 = vpop.xlane.xlu1 %4236 }
0x2306   :  { %v4241_v14 = vmul.f32 %v4237_v23, %v5304_v11 }
0x2308   :  { %v4243_v29 = vsub.f32 %v4232_v24, %v4241_v14 }
0x230a   :  { %v4245_v42 = vmul.f32 %v4243_v29, %v4243_v29 }
0x230c   :  { %v4247_v18 = vsel %vm42_vm0, %v4245_v42, 0.0 }
0x230d   :  { %4248 = vadd.xlane.f32.xlu0 %v4247_v18 }
0x2312   :  { %v4240_v20 = vpop.xlane.xlu0 %4239 }
0x2313   :  { %v4242_v47 = vmul.f32 %v4240_v20, %v5304_v11 }
0x2315   :  { %v4244_v32 = vsub.f32 %v4233_v57, %v4242_v47 }
0x2317   :  { %v4246_v46 = vmul.f32 %v4244_v32, %v4244_v32 }
0x2319   :  { %v4250_v41 = vsel %vm42_vm0, %v4246_v46, 0.0 }
0x231a   :  { %4251 = vadd.xlane.f32.xlu0 %v4250_v41 }
0x2380   :  { %v4249_v10 = vpop.xlane.xlu0 %4248 }
0x2381   :  { %v4253_v0 = vmul.f32 %v4249_v10, %v5304_v11 }
0x2383   :  { %v4255_v44 = vadd.f32 1e-05, %v4253_v0 }
0x2385   :  { %4695 = vrsqrt.f32 %v4255_v44  ;;  %vm4263_vm13 = vweird.f32 %v4255_v44 }
0x238b   :  { %v4696_v43 = vpop.eup %4695 }
0x238c   :  { %v4258_v8 = vmul.f32 %v4696_v43, %v4255_v44  ;;  %vm4264_vm12 = vweird.f32 %v4696_v43 }
0x238d   :  { %v4252_v58 = vpop.xlane.xlu0 %4251  ;;  %vm4265_vm14 = vmor %vm4263_vm13, %vm4264_vm12 }
0x238e   :  { %v4259_v35 = vmul.f32 %v4696_v43, %v4258_v8  ;;  %v4254_v22 = vmul.f32 %v4252_v58, %v5304_v11 }
0x2390   :  { %v4260_v51 = vmul.f32 0.5, %v4259_v35  ;;  %v4256_v39 = vadd.f32 1e-05, %v4254_v22 }
0x2392   :  { %v4261_v9 = vsub.f32 1.5, %v4260_v51  ;;  %4697 = vrsqrt.f32 %v4256_v39  ;;  %vm4273_vm10 = vweird.f32 %v4256_v39 }
0x2394   :  { %v4262_v33 = vmul.f32 %v4696_v43, %v4261_v9 }
0x2396   :  { %v4266_v28 = vsel %vm4265_vm14, %v4696_v43, %v4262_v33 }
0x2397   :  { %v4277_v49 = vmul.f32 %v4266_v28, %v4243_v29 }
0x2398   :  { %v4698_v52 = vpop.eup %4697 }
0x2399   :  { %v4280_v62 = vmul.f32 %v4279_v40, %v4277_v49  ;;  %v4268_v55 = vmul.f32 %v4698_v52, %v4256_v39  ;;  %vm4274_vm1 = vweird.f32 %v4698_v52 }
0x239a   :  { %vm4275_vm4 = vmor %vm4273_vm10, %vm4274_vm1 }
0x239b   :  { %v4283_v11 = vadd.f32 %v4282_v53, %v4280_v62  ;;  %v4269_v54 = vmul.f32 %v4698_v52, %v4268_v55 }
0x239d   :  { %4285 = vst.msk [vmem:[%s6098_s8] sm:$0xff] %vm42_vm0, %v4283_v11  ;;  %v4270_v61 = vmul.f32 0.5, %v4269_v54 }
0x239f   :  { %v4271_v63 = vsub.f32 1.5, %v4270_v61 }
0x23a1   :  { %v4272_v25 = vmul.f32 %v4698_v52, %v4271_v63 }
0x23a3   :  { %v4276_v48 = vsel %vm4275_vm4, %v4698_v52, %v4272_v25 }
0x23a4   :  { %v4278_v15 = vmul.f32 %v4276_v48, %v4244_v32 }
0x23a6   :  { %v4281_v56 = vmul.f32 %v4279_v40, %v4278_v15 }
0x23a8   :  { %v4284_v26 = vadd.f32 %v4282_v53, %v4281_v56 }
0x23aa   :  { %4286 = vst.msk [vmem:[%s6098_s8 + $0x8] sm:$0xff] %vm42_vm0, %v4284_v26 }

</bundles_post_ra>
